<compile_context>
chip_gen: v5e
topology: v5e:2x2
jax: 0.10.0
libtpu: 0.0.40
codegen_flags: <defaults>
</compile_context>

<pallas_src>
import functools
from math import sqrt

import jax
import jax.numpy as jnp
from jax.experimental import pallas as pl
from jax.experimental.pallas import tpu as pltpu


# ----------------------------- in-kernel helpers -----------------------------

def _ln(x, g, b, eps):
    """LayerNorm over the last dim in f32. x: (R, D), g/b: (1, D)."""
    mean = jnp.mean(x, axis=-1, keepdims=True)
    var = jnp.mean((x - mean) ** 2, axis=-1, keepdims=True)
    return (x - mean) * jax.lax.rsqrt(var + eps) * g + b


def _mm(a_f32, w_bf16):
    """MXU matmul: activation cast to bf16 operand, f32 accumulation."""
    return jnp.dot(a_f32.astype(jnp.bfloat16), w_bf16,
                   preferred_element_type=jnp.float32)


def _row_tile(n):
    for t in (256, 128, 64, 32, 16, 8):
        if n % t == 0:
            return t
    return n


# ----------------------------- fused attention block -----------------------------

def _attn_block_kernel(x_ref, kv_ref, wq_ref, bq_ref, wkv_ref, bkv_ref,
                       wo_ref, bo_ref, lng_ref, lnb_ref, o_ref,
                       *, n_heads, scale, ln_query, eps):
    x = x_ref[0].astype(jnp.float32)          # (tq, D): residual + query source
    kv_src = kv_ref[0].astype(jnp.float32)    # (Lk, D)

    q_src = _ln(x, lng_ref[...], lnb_ref[...], eps) if ln_query else x

    q = _mm(q_src, wq_ref[...]) + bq_ref[...]        # (tq, D)
    kv = _mm(kv_src, wkv_ref[...]) + bkv_ref[...]    # (Lk, 2D): [K | V]

    D = q.shape[-1]
    E = D // n_heads
    wo = wo_ref[...]                                  # (D, D) bf16

    proj = bo_ref[...]                                # (1, D) f32, broadcasts
    for h in range(n_heads):                          # static unroll over heads
        qh = q[:, h * E:(h + 1) * E]                  # (tq, E)
        kh = kv[:, h * E:(h + 1) * E]                 # (Lk, E)
        vh = kv[:, D + h * E:D + (h + 1) * E]         # (Lk, E)
        # scores: contract last axes directly (no explicit transpose of K)
        s = jax.lax.dot_general(
            qh.astype(jnp.bfloat16), kh.astype(jnp.bfloat16),
            (((1,), (1,)), ((), ())),
            preferred_element_type=jnp.float32) * scale          # (tq, Lk)
        m = jnp.max(s, axis=-1, keepdims=True)
        p = jnp.exp(s - m)
        p = p * pl.reciprocal(jnp.sum(p, axis=-1, keepdims=True), approx=True)
        oh = _mm(p, vh.astype(jnp.bfloat16))                     # (tq, E)
        # attn @ Wo == sum_h o_h @ Wo[h*E:(h+1)*E, :]  (out-proj folded per head)
        proj = proj + _mm(oh, wo[h * E:(h + 1) * E, :])

    o_ref[0] = (x + proj).astype(o_ref.dtype)         # residual add fused


def attention_block(x, kv_src, p, n_heads, *, ln_query, ln_g, ln_b):
    """Fused AttentionLayer: (optional LN on query) + QKV proj + softmax attention
    + output projection + residual add.  One pallas_call, grid (batch, q-tile)."""
    N, Lq, D = x.shape
    Lk = kv_src.shape[1]
    E = D // n_heads
    tq = _row_tile(Lq)
    rep = lambda b, i: (0, 0)
    kernel = functools.partial(
        _attn_block_kernel, n_heads=n_heads, scale=1.0 / sqrt(E),
        ln_query=ln_query, eps=1e-5)
    return pl.pallas_call(
        kernel,
        out_shape=jax.ShapeDtypeStruct((N, Lq, D), x.dtype),
        grid=(N, Lq // tq),
        in_specs=[
            pl.BlockSpec((1, tq, D), lambda b, i: (b, i, 0)),   # x (residual/query)
            pl.BlockSpec((1, Lk, D), lambda b, i: (b, 0, 0)),   # K/V source
            pl.BlockSpec((D, D), rep),        # Wq   (bf16)
            pl.BlockSpec((1, D), rep),        # bq
            pl.BlockSpec((D, 2 * D), rep),    # Wkv  (bf16, fused [Wk|Wv])
            pl.BlockSpec((1, 2 * D), rep),    # bkv
            pl.BlockSpec((D, D), rep),        # Wo   (bf16)
            pl.BlockSpec((1, D), rep),        # bo
            pl.BlockSpec((1, D), rep),        # LN1 gamma (used for cross attn)
            pl.BlockSpec((1, D), rep),        # LN1 beta
        ],
        out_specs=pl.BlockSpec((1, tq, D), lambda b, i: (b, i, 0)),
        compiler_params=pltpu.CompilerParams(
            dimension_semantics=("parallel", "parallel")),
    )(x, kv_src, p["wq"], p["bq"], p["wkv"], p["bkv"],
      p["wo"], p["bo"], ln_g, ln_b)


# ----------------------------- fused FFN block -----------------------------

def _ffn_kernel(x_ref, ln2g_ref, ln2b_ref, w1_ref, b1_ref, w2_ref, b2_ref,
                ln3g_ref, ln3b_ref, o_ref, *, eps):
    x = x_ref[0].astype(jnp.float32)                               # (tq, D)
    x2 = _ln(x, ln2g_ref[...], ln2b_ref[...], eps)                 # LN2
    h = jnp.maximum(_mm(x2, w1_ref[...]) + b1_ref[...], 0.0)       # Linear1+ReLU
    y = _mm(h, w2_ref[...]) + b2_ref[...]                          # Linear2
    o_ref[0] = _ln(x2 + y, ln3g_ref[...], ln3b_ref[...], eps).astype(o_ref.dtype)


def ffn_block(x, p):
    """Fused LN2 + Linear1 + ReLU + Linear2 + residual + LN3."""
    N, L, D = x.shape
    dff = p["w1"].shape[1]
    tq = _row_tile(L)
    rep = lambda b, i: (0, 0)
    return pl.pallas_call(
        functools.partial(_ffn_kernel, eps=1e-5),
        out_shape=jax.ShapeDtypeStruct((N, L, D), x.dtype),
        grid=(N, L // tq),
        in_specs=[
            pl.BlockSpec((1, tq, D), lambda b, i: (b, i, 0)),   # x
            pl.BlockSpec((1, D), rep),        # LN2 gamma
            pl.BlockSpec((1, D), rep),        # LN2 beta
            pl.BlockSpec((D, dff), rep),      # W1 (bf16)
            pl.BlockSpec((1, dff), rep),      # b1
            pl.BlockSpec((dff, D), rep),      # W2 (bf16)
            pl.BlockSpec((1, D), rep),        # b2
            pl.BlockSpec((1, D), rep),        # LN3 gamma
            pl.BlockSpec((1, D), rep),        # LN3 beta
        ],
        out_specs=pl.BlockSpec((1, tq, D), lambda b, i: (b, i, 0)),
        compiler_params=pltpu.CompilerParams(
            dimension_semantics=("parallel", "parallel")),
    )(x, p["ln2_g"], p["ln2_b"], p["w1"], p["b1"], p["w2"], p["b2"],
      p["ln3_g"], p["ln3_b"])


# ----------------------------- final LayerNorm -----------------------------

def _final_ln_kernel(x_ref, g_ref, b_ref, o_ref, *, eps):
    o_ref[0] = _ln(x_ref[0].astype(jnp.float32),
                   g_ref[...], b_ref[...], eps).astype(o_ref.dtype)


def final_layernorm(x, g, b):
    N, L, D = x.shape
    tq = _row_tile(L)
    rep = lambda b_, i: (0, 0)
    return pl.pallas_call(
        functools.partial(_final_ln_kernel, eps=1e-5),
        out_shape=jax.ShapeDtypeStruct((N, L, D), x.dtype),
        grid=(N, L // tq),
        in_specs=[
            pl.BlockSpec((1, tq, D), lambda b_, i: (b_, i, 0)),
            pl.BlockSpec((1, D), rep),
            pl.BlockSpec((1, D), rep),
        ],
        out_specs=pl.BlockSpec((1, tq, D), lambda b_, i: (b_, i, 0)),
        compiler_params=pltpu.CompilerParams(
            dimension_semantics=("parallel", "parallel")),
    )(x, g, b)


# ----------------------------- model glue -----------------------------

def decoder_layer(x, memory, p, n_heads):
    # Self attention + residual (no LN on query)
    x = attention_block(x, x, p["self_attn"], n_heads,
                        ln_query=False, ln_g=p["ln1_g"], ln_b=p["ln1_b"])
    # Cross attention + residual; LN1 applied to the query source inside the kernel
    x = attention_block(x, memory, p["cross_attn"], n_heads,
                        ln_query=True, ln_g=p["ln1_g"], ln_b=p["ln1_b"])
    # LN2 + FFN + residual + LN3, fused
    return ffn_block(x, p)


def transformer_decoder(x, memory, params, n_heads):
    """TransformerDecoder.forward with default (full) masks."""
    for layer_params in params["layers"]:
        x = decoder_layer(x, memory, layer_params, n_heads)
    if params.get("final_norm") is not None:
        g, b = params["final_norm"]
        x = final_layernorm(x, g, b)
    return x


# ----------------------------- parameter init -----------------------------

def _init_attn(key, d_model):
    ks = jax.random.split(key, 4)
    s = 1.0 / sqrt(d_model)
    wq = jax.random.normal(ks[0], (d_model, d_model), jnp.float32) * s
    wk = jax.random.normal(ks[1], (d_model, d_model), jnp.float32) * s
    wv = jax.random.normal(ks[2], (d_model, d_model), jnp.float32) * s
    wo = jax.random.normal(ks[3], (d_model, d_model), jnp.float32) * s
    return {
        "wq": wq.astype(jnp.bfloat16),
        "bq": jnp.zeros((1, d_model), jnp.float32),
        "wkv": jnp.concatenate([wk, wv], axis=1).astype(jnp.bfloat16),
        "bkv": jnp.zeros((1, 2 * d_model), jnp.float32),
        "wo": wo.astype(jnp.bfloat16),
        "bo": jnp.zeros((1, d_model), jnp.float32),
    }


def init_params(key, n_layers, d_model, d_ff):
    layers = []
    keys = jax.random.split(key, n_layers + 1)
    for lk in keys[:n_layers]:
        k1, k2, k3, k4 = jax.random.split(lk, 4)
        layers.append({
            "self_attn": _init_attn(k1, d_model),
            "cross_attn": _init_attn(k2, d_model),
            "w1": (jax.random.normal(k3, (d_model, d_ff), jnp.float32)
                   / sqrt(d_model)).astype(jnp.bfloat16),
            "b1": jnp.zeros((1, d_ff), jnp.float32),
            "w2": (jax.random.normal(k4, (d_ff, d_model), jnp.float32)
                   / sqrt(d_ff)).astype(jnp.bfloat16),
            "b2": jnp.zeros((1, d_model), jnp.float32),
            "ln1_g": jnp.ones((1, d_model), jnp.float32),
            "ln1_b": jnp.zeros((1, d_model), jnp.float32),
            "ln2_g": jnp.ones((1, d_model), jnp.float32),
            "ln2_b": jnp.zeros((1, d_model), jnp.float32),
            "ln3_g": jnp.ones((1, d_model), jnp.float32),
            "ln3_b": jnp.zeros((1, d_model), jnp.float32),
        })
    final_norm = (jnp.ones((1, d_model), jnp.float32),
                  jnp.zeros((1, d_model), jnp.float32))
    return {"layers": layers, "final_norm": final_norm}


# ----------------------------- main -----------------------------

if __name__ == "__main__":
    N, L, L_PRIME, D, H, D_FF, N_LAYERS = 2, 8, 8, 32, 4, 64, 2

    key = jax.random.PRNGKey(0)
    kx, km, kp = jax.random.split(key, 3)
    x = jax.random.normal(kx, (N, L, D), jnp.float32)
    memory = jax.random.normal(km, (N, L_PRIME, D), jnp.float32)
    params = init_params(kp, N_LAYERS, D, D_FF)

    fwd = jax.jit(functools.partial(transformer_decoder, n_heads=H))
    out = fwd(x, memory, params)
    out = jax.block_until_ready(out)
    assert out.shape == (N, L, D)
    assert bool(jnp.all(jnp.isfinite(out)))
    print("KERNEL_OK")
</pallas_src>

<mosaic_0001>
module attributes {stable_mosaic.version = 11 : i64} {
  func.func @_attn_block_kernel(%arg0: i32, %arg1: i32, %arg2: memref<1x8x32xf32, #tpu.memory_space<vmem>>, %arg3: memref<1x8x32xf32, #tpu.memory_space<vmem>>, %arg4: memref<32x32xbf16, #tpu.memory_space<vmem>>, %arg5: memref<1x32xf32, #tpu.memory_space<vmem>>, %arg6: memref<32x64xbf16, #tpu.memory_space<vmem>>, %arg7: memref<1x64xf32, #tpu.memory_space<vmem>>, %arg8: memref<32x32xbf16, #tpu.memory_space<vmem>>, %arg9: memref<1x32xf32, #tpu.memory_space<vmem>>, %arg10: memref<1x32xf32, #tpu.memory_space<vmem>>, %arg11: memref<1x32xf32, #tpu.memory_space<vmem>>, %arg12: memref<1x8x32xf32, #tpu.memory_space<vmem>>) attributes {dimension_semantics = [#tpu.dimension_semantics<parallel>, #tpu.dimension_semantics<parallel>], iteration_bounds = array<i64: 2, 1>, scalar_prefetch = 0 : i64, scratch_operands = 0 : i64, tpu.core_type = #tpu.core_type<tc>, window_params = [{transform_indices = @transform_0, window_bounds = array<i64: 1, 8, 32>}, {transform_indices = @transform_1, window_bounds = array<i64: 1, 8, 32>}, {pipeline_mode = #tpu.pipeline_mode<synchronous>, transform_indices = @transform_2, window_bounds = array<i64: 32, 32>}, {pipeline_mode = #tpu.pipeline_mode<synchronous>, transform_indices = @transform_3, window_bounds = array<i64: 1, 32>}, {pipeline_mode = #tpu.pipeline_mode<synchronous>, transform_indices = @transform_4, window_bounds = array<i64: 32, 64>}, {pipeline_mode = #tpu.pipeline_mode<synchronous>, transform_indices = @transform_5, window_bounds = array<i64: 1, 64>}, {pipeline_mode = #tpu.pipeline_mode<synchronous>, transform_indices = @transform_6, window_bounds = array<i64: 32, 32>}, {pipeline_mode = #tpu.pipeline_mode<synchronous>, transform_indices = @transform_7, window_bounds = array<i64: 1, 32>}, {pipeline_mode = #tpu.pipeline_mode<synchronous>, transform_indices = @transform_8, window_bounds = array<i64: 1, 32>}, {pipeline_mode = #tpu.pipeline_mode<synchronous>, transform_indices = @transform_9, window_bounds = array<i64: 1, 32>}, {transform_indices = @transform_10, window_bounds = array<i64: 1, 8, 32>}]} {
    %c0 = arith.constant 0 : index
    %c0_0 = arith.constant 0 : index
    %c0_1 = arith.constant 0 : index
    %0 = vector.load %arg2[%c0, %c0_0, %c0_1] : memref<1x8x32xf32, #tpu.memory_space<vmem>>, vector<1x8x32xf32>
    %1 = vector.shape_cast %0 : vector<1x8x32xf32> to vector<8x32xf32>
    %c0_2 = arith.constant 0 : index
    %c0_3 = arith.constant 0 : index
    %c0_4 = arith.constant 0 : index
    %2 = vector.load %arg3[%c0_2, %c0_3, %c0_4] : memref<1x8x32xf32, #tpu.memory_space<vmem>>, vector<1x8x32xf32>
    %3 = vector.shape_cast %2 : vector<1x8x32xf32> to vector<8x32xf32>
    %c0_5 = arith.constant 0 : index
    %c0_6 = arith.constant 0 : index
    %4 = vector.load %arg10[%c0_5, %c0_6] : memref<1x32xf32, #tpu.memory_space<vmem>>, vector<1x32xf32>
    %c0_7 = arith.constant 0 : index
    %c0_8 = arith.constant 0 : index
    %5 = vector.load %arg11[%c0_7, %c0_8] : memref<1x32xf32, #tpu.memory_space<vmem>>, vector<1x32xf32>
    %cst = arith.constant dense<0.000000e+00> : vector<8xf32>
    %6 = vector.multi_reduction <add>, %1, %cst [1] : vector<8x32xf32> to vector<8xf32>
    %7 = vector.shape_cast %6 : vector<8xf32> to vector<8x1xf32>
    %cst_9 = arith.constant 3.200000e+01 : f32
    %8 = vector.broadcast %cst_9 : f32 to vector<8x1xf32>
    %9 = arith.divf %7, %8 : vector<8x1xf32>
    %10 = vector.broadcast %9 : vector<8x1xf32> to vector<8x32xf32>
    %11 = arith.subf %1, %10 : vector<8x32xf32>
    %12 = arith.mulf %11, %11 : vector<8x32xf32>
    %cst_10 = arith.constant dense<0.000000e+00> : vector<8xf32>
    %13 = vector.multi_reduction <add>, %12, %cst_10 [1] : vector<8x32xf32> to vector<8xf32>
    %14 = vector.shape_cast %13 : vector<8xf32> to vector<8x1xf32>
    %cst_11 = arith.constant 3.200000e+01 : f32
    %15 = vector.broadcast %cst_11 : f32 to vector<8x1xf32>
    %16 = arith.divf %14, %15 : vector<8x1xf32>
    %17 = vector.broadcast %9 : vector<8x1xf32> to vector<8x32xf32>
    %18 = arith.subf %1, %17 : vector<8x32xf32>
    %cst_12 = arith.constant 9.99999974E-6 : f32
    %19 = vector.broadcast %cst_12 : f32 to vector<8x1xf32>
    %20 = arith.addf %16, %19 : vector<8x1xf32>
    %21 = math.rsqrt %20 : vector<8x1xf32>
    %22 = vector.broadcast %21 : vector<8x1xf32> to vector<8x32xf32>
    %23 = arith.mulf %18, %22 : vector<8x32xf32>
    %24 = vector.broadcast %4 : vector<1x32xf32> to vector<8x32xf32>
    %25 = arith.mulf %23, %24 : vector<8x32xf32>
    %26 = vector.broadcast %5 : vector<1x32xf32> to vector<8x32xf32>
    %27 = arith.addf %25, %26 : vector<8x32xf32>
    %c0_13 = arith.constant 0 : index
    %c0_14 = arith.constant 0 : index
    %28 = vector.load %arg4[%c0_13, %c0_14] : memref<32x32xbf16, #tpu.memory_space<vmem>>, vector<32x32xbf16>
    %29 = arith.truncf %27 : vector<8x32xf32> to vector<8x32xbf16>
    %cst_15 = arith.constant dense<0.000000e+00> : vector<8x32xf32>
    %30 = tpu.matmul %29, %28, %cst_15 {dimension_numbers = #tpu.dot_dimension_numbers<[1], [0], [0], [1], [0, 0, 1, 1], [], []>} : vector<8x32xbf16>, vector<32x32xbf16>, vector<8x32xf32> -> vector<8x32xf32>
    %c0_16 = arith.constant 0 : index
    %c0_17 = arith.constant 0 : index
    %31 = vector.load %arg5[%c0_16, %c0_17] : memref<1x32xf32, #tpu.memory_space<vmem>>, vector<1x32xf32>
    %32 = vector.broadcast %31 : vector<1x32xf32> to vector<8x32xf32>
    %33 = arith.addf %30, %32 : vector<8x32xf32>
    %c0_18 = arith.constant 0 : index
    %c0_19 = arith.constant 0 : index
    %34 = vector.load %arg6[%c0_18, %c0_19] : memref<32x64xbf16, #tpu.memory_space<vmem>>, vector<32x64xbf16>
    %35 = arith.truncf %3 : vector<8x32xf32> to vector<8x32xbf16>
    %cst_20 = arith.constant dense<0.000000e+00> : vector<8x64xf32>
    %36 = tpu.matmul %35, %34, %cst_20 {dimension_numbers = #tpu.dot_dimension_numbers<[1], [0], [0], [1], [0, 0, 1, 1], [], []>} : vector<8x32xbf16>, vector<32x64xbf16>, vector<8x64xf32> -> vector<8x64xf32>
    %c0_21 = arith.constant 0 : index
    %c0_22 = arith.constant 0 : index
    %37 = vector.load %arg7[%c0_21, %c0_22] : memref<1x64xf32, #tpu.memory_space<vmem>>, vector<1x64xf32>
    %38 = vector.broadcast %37 : vector<1x64xf32> to vector<8x64xf32>
    %39 = arith.addf %36, %38 : vector<8x64xf32>
    %c0_23 = arith.constant 0 : index
    %c0_24 = arith.constant 0 : index
    %40 = vector.load %arg8[%c0_23, %c0_24] : memref<32x32xbf16, #tpu.memory_space<vmem>>, vector<32x32xbf16>
    %c0_25 = arith.constant 0 : index
    %c0_26 = arith.constant 0 : index
    %41 = vector.load %arg9[%c0_25, %c0_26] : memref<1x32xf32, #tpu.memory_space<vmem>>, vector<1x32xf32>
    %42 = vector.extract_strided_slice %33 {offsets = [0, 0], sizes = [8, 8], strides = [1, 1]} : vector<8x32xf32> to vector<8x8xf32>
    %43 = vector.extract_strided_slice %39 {offsets = [0, 0], sizes = [8, 8], strides = [1, 1]} : vector<8x64xf32> to vector<8x8xf32>
    %44 = vector.extract_strided_slice %39 {offsets = [0, 32], sizes = [8, 8], strides = [1, 1]} : vector<8x64xf32> to vector<8x8xf32>
    %45 = arith.truncf %42 : vector<8x8xf32> to vector<8x8xbf16>
    %46 = arith.truncf %43 : vector<8x8xf32> to vector<8x8xbf16>
    %cst_27 = arith.constant dense<0.000000e+00> : vector<8x8xf32>
    %47 = tpu.matmul %45, %46, %cst_27 {dimension_numbers = #tpu.dot_dimension_numbers<[1], [1], [0], [0], [0, 0, 1, 0], [], []>} : vector<8x8xbf16>, vector<8x8xbf16>, vector<8x8xf32> -> vector<8x8xf32>
    %cst_28 = arith.constant 0.353553385 : f32
    %48 = vector.broadcast %cst_28 : f32 to vector<8x8xf32>
    %49 = arith.mulf %47, %48 : vector<8x8xf32>
    %cst_29 = arith.constant dense<0xFF800000> : vector<8xf32>
    %50 = vector.multi_reduction <maximumf>, %49, %cst_29 [1] : vector<8x8xf32> to vector<8xf32>
    %51 = vector.shape_cast %50 : vector<8xf32> to vector<8x1xf32>
    %52 = vector.broadcast %51 : vector<8x1xf32> to vector<8x8xf32>
    %53 = arith.subf %49, %52 : vector<8x8xf32>
    %54 = math.exp %53 : vector<8x8xf32>
    %cst_30 = arith.constant dense<0.000000e+00> : vector<8xf32>
    %55 = vector.multi_reduction <add>, %54, %cst_30 [1] : vector<8x8xf32> to vector<8xf32>
    %56 = vector.shape_cast %55 : vector<8xf32> to vector<8x1xf32>
    %57 = tpu.reciprocal %56 {approx = true} : vector<8x1xf32> -> vector<8x1xf32>
    %58 = vector.broadcast %57 : vector<8x1xf32> to vector<8x8xf32>
    %59 = arith.mulf %54, %58 : vector<8x8xf32>
    %60 = arith.truncf %44 : vector<8x8xf32> to vector<8x8xbf16>
    %61 = arith.truncf %59 : vector<8x8xf32> to vector<8x8xbf16>
    %cst_31 = arith.constant dense<0.000000e+00> : vector<8x8xf32>
    %62 = tpu.matmul %61, %60, %cst_31 {dimension_numbers = #tpu.dot_dimension_numbers<[1], [0], [0], [1], [0, 0, 1, 1], [], []>} : vector<8x8xbf16>, vector<8x8xbf16>, vector<8x8xf32> -> vector<8x8xf32>
    %63 = vector.extract_strided_slice %40 {offsets = [0, 0], sizes = [8, 32], strides = [1, 1]} : vector<32x32xbf16> to vector<8x32xbf16>
    %64 = arith.truncf %62 : vector<8x8xf32> to vector<8x8xbf16>
    %cst_32 = arith.constant dense<0.000000e+00> : vector<8x32xf32>
    %65 = tpu.matmul %64, %63, %cst_32 {dimension_numbers = #tpu.dot_dimension_numbers<[1], [0], [0], [1], [0, 0, 1, 1], [], []>} : vector<8x8xbf16>, vector<8x32xbf16>, vector<8x32xf32> -> vector<8x32xf32>
    %66 = vector.broadcast %41 : vector<1x32xf32> to vector<8x32xf32>
    %67 = arith.addf %66, %65 : vector<8x32xf32>
    %68 = vector.extract_strided_slice %33 {offsets = [0, 8], sizes = [8, 8], strides = [1, 1]} : vector<8x32xf32> to vector<8x8xf32>
    %69 = vector.extract_strided_slice %39 {offsets = [0, 8], sizes = [8, 8], strides = [1, 1]} : vector<8x64xf32> to vector<8x8xf32>
    %70 = vector.extract_strided_slice %39 {offsets = [0, 40], sizes = [8, 8], strides = [1, 1]} : vector<8x64xf32> to vector<8x8xf32>
    %71 = arith.truncf %68 : vector<8x8xf32> to vector<8x8xbf16>
    %72 = arith.truncf %69 : vector<8x8xf32> to vector<8x8xbf16>
    %cst_33 = arith.constant dense<0.000000e+00> : vector<8x8xf32>
    %73 = tpu.matmul %71, %72, %cst_33 {dimension_numbers = #tpu.dot_dimension_numbers<[1], [1], [0], [0], [0, 0, 1, 0], [], []>} : vector<8x8xbf16>, vector<8x8xbf16>, vector<8x8xf32> -> vector<8x8xf32>
    %cst_34 = arith.constant 0.353553385 : f32
    %74 = vector.broadcast %cst_34 : f32 to vector<8x8xf32>
    %75 = arith.mulf %73, %74 : vector<8x8xf32>
    %cst_35 = arith.constant dense<0xFF800000> : vector<8xf32>
    %76 = vector.multi_reduction <maximumf>, %75, %cst_35 [1] : vector<8x8xf32> to vector<8xf32>
    %77 = vector.shape_cast %76 : vector<8xf32> to vector<8x1xf32>
    %78 = vector.broadcast %77 : vector<8x1xf32> to vector<8x8xf32>
    %79 = arith.subf %75, %78 : vector<8x8xf32>
    %80 = math.exp %79 : vector<8x8xf32>
    %cst_36 = arith.constant dense<0.000000e+00> : vector<8xf32>
    %81 = vector.multi_reduction <add>, %80, %cst_36 [1] : vector<8x8xf32> to vector<8xf32>
    %82 = vector.shape_cast %81 : vector<8xf32> to vector<8x1xf32>
    %83 = tpu.reciprocal %82 {approx = true} : vector<8x1xf32> -> vector<8x1xf32>
    %84 = vector.broadcast %83 : vector<8x1xf32> to vector<8x8xf32>
    %85 = arith.mulf %80, %84 : vector<8x8xf32>
    %86 = arith.truncf %70 : vector<8x8xf32> to vector<8x8xbf16>
    %87 = arith.truncf %85 : vector<8x8xf32> to vector<8x8xbf16>
    %cst_37 = arith.constant dense<0.000000e+00> : vector<8x8xf32>
    %88 = tpu.matmul %87, %86, %cst_37 {dimension_numbers = #tpu.dot_dimension_numbers<[1], [0], [0], [1], [0, 0, 1, 1], [], []>} : vector<8x8xbf16>, vector<8x8xbf16>, vector<8x8xf32> -> vector<8x8xf32>
    %89 = vector.extract_strided_slice %40 {offsets = [8, 0], sizes = [8, 32], strides = [1, 1]} : vector<32x32xbf16> to vector<8x32xbf16>
    %90 = arith.truncf %88 : vector<8x8xf32> to vector<8x8xbf16>
    %cst_38 = arith.constant dense<0.000000e+00> : vector<8x32xf32>
    %91 = tpu.matmul %90, %89, %cst_38 {dimension_numbers = #tpu.dot_dimension_numbers<[1], [0], [0], [1], [0, 0, 1, 1], [], []>} : vector<8x8xbf16>, vector<8x32xbf16>, vector<8x32xf32> -> vector<8x32xf32>
    %92 = arith.addf %67, %91 : vector<8x32xf32>
    %93 = vector.extract_strided_slice %33 {offsets = [0, 16], sizes = [8, 8], strides = [1, 1]} : vector<8x32xf32> to vector<8x8xf32>
    %94 = vector.extract_strided_slice %39 {offsets = [0, 16], sizes = [8, 8], strides = [1, 1]} : vector<8x64xf32> to vector<8x8xf32>
    %95 = vector.extract_strided_slice %39 {offsets = [0, 48], sizes = [8, 8], strides = [1, 1]} : vector<8x64xf32> to vector<8x8xf32>
    %96 = arith.truncf %93 : vector<8x8xf32> to vector<8x8xbf16>
    %97 = arith.truncf %94 : vector<8x8xf32> to vector<8x8xbf16>
    %cst_39 = arith.constant dense<0.000000e+00> : vector<8x8xf32>
    %98 = tpu.matmul %96, %97, %cst_39 {dimension_numbers = #tpu.dot_dimension_numbers<[1], [1], [0], [0], [0, 0, 1, 0], [], []>} : vector<8x8xbf16>, vector<8x8xbf16>, vector<8x8xf32> -> vector<8x8xf32>
    %cst_40 = arith.constant 0.353553385 : f32
    %99 = vector.broadcast %cst_40 : f32 to vector<8x8xf32>
    %100 = arith.mulf %98, %99 : vector<8x8xf32>
    %cst_41 = arith.constant dense<0xFF800000> : vector<8xf32>
    %101 = vector.multi_reduction <maximumf>, %100, %cst_41 [1] : vector<8x8xf32> to vector<8xf32>
    %102 = vector.shape_cast %101 : vector<8xf32> to vector<8x1xf32>
    %103 = vector.broadcast %102 : vector<8x1xf32> to vector<8x8xf32>
    %104 = arith.subf %100, %103 : vector<8x8xf32>
    %105 = math.exp %104 : vector<8x8xf32>
    %cst_42 = arith.constant dense<0.000000e+00> : vector<8xf32>
    %106 = vector.multi_reduction <add>, %105, %cst_42 [1] : vector<8x8xf32> to vector<8xf32>
    %107 = vector.shape_cast %106 : vector<8xf32> to vector<8x1xf32>
    %108 = tpu.reciprocal %107 {approx = true} : vector<8x1xf32> -> vector<8x1xf32>
    %109 = vector.broadcast %108 : vector<8x1xf32> to vector<8x8xf32>
    %110 = arith.mulf %105, %109 : vector<8x8xf32>
    %111 = arith.truncf %95 : vector<8x8xf32> to vector<8x8xbf16>
    %112 = arith.truncf %110 : vector<8x8xf32> to vector<8x8xbf16>
    %cst_43 = arith.constant dense<0.000000e+00> : vector<8x8xf32>
    %113 = tpu.matmul %112, %111, %cst_43 {dimension_numbers = #tpu.dot_dimension_numbers<[1], [0], [0], [1], [0, 0, 1, 1], [], []>} : vector<8x8xbf16>, vector<8x8xbf16>, vector<8x8xf32> -> vector<8x8xf32>
    %114 = vector.extract_strided_slice %40 {offsets = [16, 0], sizes = [8, 32], strides = [1, 1]} : vector<32x32xbf16> to vector<8x32xbf16>
    %115 = arith.truncf %113 : vector<8x8xf32> to vector<8x8xbf16>
    %cst_44 = arith.constant dense<0.000000e+00> : vector<8x32xf32>
    %116 = tpu.matmul %115, %114, %cst_44 {dimension_numbers = #tpu.dot_dimension_numbers<[1], [0], [0], [1], [0, 0, 1, 1], [], []>} : vector<8x8xbf16>, vector<8x32xbf16>, vector<8x32xf32> -> vector<8x32xf32>
    %117 = arith.addf %92, %116 : vector<8x32xf32>
    %118 = vector.extract_strided_slice %33 {offsets = [0, 24], sizes = [8, 8], strides = [1, 1]} : vector<8x32xf32> to vector<8x8xf32>
    %119 = vector.extract_strided_slice %39 {offsets = [0, 24], sizes = [8, 8], strides = [1, 1]} : vector<8x64xf32> to vector<8x8xf32>
    %120 = vector.extract_strided_slice %39 {offsets = [0, 56], sizes = [8, 8], strides = [1, 1]} : vector<8x64xf32> to vector<8x8xf32>
    %121 = arith.truncf %118 : vector<8x8xf32> to vector<8x8xbf16>
    %122 = arith.truncf %119 : vector<8x8xf32> to vector<8x8xbf16>
    %cst_45 = arith.constant dense<0.000000e+00> : vector<8x8xf32>
    %123 = tpu.matmul %121, %122, %cst_45 {dimension_numbers = #tpu.dot_dimension_numbers<[1], [1], [0], [0], [0, 0, 1, 0], [], []>} : vector<8x8xbf16>, vector<8x8xbf16>, vector<8x8xf32> -> vector<8x8xf32>
    %cst_46 = arith.constant 0.353553385 : f32
    %124 = vector.broadcast %cst_46 : f32 to vector<8x8xf32>
    %125 = arith.mulf %123, %124 : vector<8x8xf32>
    %cst_47 = arith.constant dense<0xFF800000> : vector<8xf32>
    %126 = vector.multi_reduction <maximumf>, %125, %cst_47 [1] : vector<8x8xf32> to vector<8xf32>
    %127 = vector.shape_cast %126 : vector<8xf32> to vector<8x1xf32>
    %128 = vector.broadcast %127 : vector<8x1xf32> to vector<8x8xf32>
    %129 = arith.subf %125, %128 : vector<8x8xf32>
    %130 = math.exp %129 : vector<8x8xf32>
    %cst_48 = arith.constant dense<0.000000e+00> : vector<8xf32>
    %131 = vector.multi_reduction <add>, %130, %cst_48 [1] : vector<8x8xf32> to vector<8xf32>
    %132 = vector.shape_cast %131 : vector<8xf32> to vector<8x1xf32>
    %133 = tpu.reciprocal %132 {approx = true} : vector<8x1xf32> -> vector<8x1xf32>
    %134 = vector.broadcast %133 : vector<8x1xf32> to vector<8x8xf32>
    %135 = arith.mulf %130, %134 : vector<8x8xf32>
    %136 = arith.truncf %120 : vector<8x8xf32> to vector<8x8xbf16>
    %137 = arith.truncf %135 : vector<8x8xf32> to vector<8x8xbf16>
    %cst_49 = arith.constant dense<0.000000e+00> : vector<8x8xf32>
    %138 = tpu.matmul %137, %136, %cst_49 {dimension_numbers = #tpu.dot_dimension_numbers<[1], [0], [0], [1], [0, 0, 1, 1], [], []>} : vector<8x8xbf16>, vector<8x8xbf16>, vector<8x8xf32> -> vector<8x8xf32>
    %139 = vector.extract_strided_slice %40 {offsets = [24, 0], sizes = [8, 32], strides = [1, 1]} : vector<32x32xbf16> to vector<8x32xbf16>
    %140 = arith.truncf %138 : vector<8x8xf32> to vector<8x8xbf16>
    %cst_50 = arith.constant dense<0.000000e+00> : vector<8x32xf32>
    %141 = tpu.matmul %140, %139, %cst_50 {dimension_numbers = #tpu.dot_dimension_numbers<[1], [0], [0], [1], [0, 0, 1, 1], [], []>} : vector<8x8xbf16>, vector<8x32xbf16>, vector<8x32xf32> -> vector<8x32xf32>
    %142 = arith.addf %117, %141 : vector<8x32xf32>
    %143 = arith.addf %1, %142 : vector<8x32xf32>
    %c0_51 = arith.constant 0 : index
    %c0_52 = arith.constant 0 : index
    %c0_53 = arith.constant 0 : index
    %144 = vector.load %arg12[%c0_51, %c0_52, %c0_53] : memref<1x8x32xf32, #tpu.memory_space<vmem>>, vector<1x8x32xf32>
    %145 = vector.shape_cast %144 : vector<1x8x32xf32> to vector<8x32xf32>
    %146 = vector.shape_cast %143 : vector<8x32xf32> to vector<1x8x32xf32>
    tpu.vector_store %arg12[%c0_51, %c0_52, %c0_53], %146 {strides = array<i32>} : memref<1x8x32xf32, #tpu.memory_space<vmem>>, vector<1x8x32xf32>,
    return
  }
  func.func @transform_0(%arg0: i32, %arg1: i32) -> (i32, i32, i32) {
    %c0_i32 = arith.constant 0 : i32
    %c0_i32_0 = arith.constant 0 : i32
    return %arg0, %arg1, %c0_i32 : i32, i32, i32
  }
  func.func @transform_1(%arg0: i32, %arg1: i32) -> (i32, i32, i32) {
    %c0_i32 = arith.constant 0 : i32
    %c0_i32_0 = arith.constant 0 : i32
    %c0_i32_1 = arith.constant 0 : i32
    return %arg0, %c0_i32, %c0_i32_0 : i32, i32, i32
  }
  func.func @transform_2(%arg0: i32, %arg1: i32) -> (i32, i32) {
    %c0_i32 = arith.constant 0 : i32
    %c0_i32_0 = arith.constant 0 : i32
    %c0_i32_1 = arith.constant 0 : i32
    return %c0_i32, %c0_i32_0 : i32, i32
  }
  func.func @transform_3(%arg0: i32, %arg1: i32) -> (i32, i32) {
    %c0_i32 = arith.constant 0 : i32
    %c0_i32_0 = arith.constant 0 : i32
    %c0_i32_1 = arith.constant 0 : i32
    return %c0_i32, %c0_i32_0 : i32, i32
  }
  func.func @transform_4(%arg0: i32, %arg1: i32) -> (i32, i32) {
    %c0_i32 = arith.constant 0 : i32
    %c0_i32_0 = arith.constant 0 : i32
    %c0_i32_1 = arith.constant 0 : i32
    return %c0_i32, %c0_i32_0 : i32, i32
  }
  func.func @transform_5(%arg0: i32, %arg1: i32) -> (i32, i32) {
    %c0_i32 = arith.constant 0 : i32
    %c0_i32_0 = arith.constant 0 : i32
    %c0_i32_1 = arith.constant 0 : i32
    return %c0_i32, %c0_i32_0 : i32, i32
  }
  func.func @transform_6(%arg0: i32, %arg1: i32) -> (i32, i32) {
    %c0_i32 = arith.constant 0 : i32
    %c0_i32_0 = arith.constant 0 : i32
    %c0_i32_1 = arith.constant 0 : i32
    return %c0_i32, %c0_i32_0 : i32, i32
  }
  func.func @transform_7(%arg0: i32, %arg1: i32) -> (i32, i32) {
    %c0_i32 = arith.constant 0 : i32
    %c0_i32_0 = arith.constant 0 : i32
    %c0_i32_1 = arith.constant 0 : i32
    return %c0_i32, %c0_i32_0 : i32, i32
  }
  func.func @transform_8(%arg0: i32, %arg1: i32) -> (i32, i32) {
    %c0_i32 = arith.constant 0 : i32
    %c0_i32_0 = arith.constant 0 : i32
    %c0_i32_1 = arith.constant 0 : i32
    return %c0_i32, %c0_i32_0 : i32, i32
  }
  func.func @transform_9(%arg0: i32, %arg1: i32) -> (i32, i32) {
    %c0_i32 = arith.constant 0 : i32
    %c0_i32_0 = arith.constant 0 : i32
    %c0_i32_1 = arith.constant 0 : i32
    return %c0_i32, %c0_i32_0 : i32, i32
  }
  func.func @transform_10(%arg0: i32, %arg1: i32) -> (i32, i32, i32) {
    %c0_i32 = arith.constant 0 : i32
    %c0_i32_0 = arith.constant 0 : i32
    return %arg0, %arg1, %c0_i32 : i32, i32, i32
  }
}

module attributes {stable_mosaic.version = 11 : i64} {
  func.func @_attn_block_kernel(%arg0: i32, %arg1: i32, %arg2: memref<1x8x32xf32, #tpu.memory_space<vmem>>, %arg3: memref<1x8x32xf32, #tpu.memory_space<vmem>>, %arg4: memref<32x32xbf16, #tpu.memory_space<vmem>>, %arg5: memref<1x32xf32, #tpu.memory_space<vmem>>, %arg6: memref<32x64xbf16, #tpu.memory_space<vmem>>, %arg7: memref<1x64xf32, #tpu.memory_space<vmem>>, %arg8: memref<32x32xbf16, #tpu.memory_space<vmem>>, %arg9: memref<1x32xf32, #tpu.memory_space<vmem>>, %arg10: memref<1x32xf32, #tpu.memory_space<vmem>>, %arg11: memref<1x32xf32, #tpu.memory_space<vmem>>, %arg12: memref<1x8x32xf32, #tpu.memory_space<vmem>>) attributes {dimension_semantics = [#tpu.dimension_semantics<parallel>, #tpu.dimension_semantics<parallel>], iteration_bounds = array<i64: 2, 1>, scalar_prefetch = 0 : i64, scratch_operands = 0 : i64, tpu.core_type = #tpu.core_type<tc>, window_params = [{transform_indices = @transform_0, window_bounds = array<i64: 1, 8, 32>}, {transform_indices = @transform_1, window_bounds = array<i64: 1, 8, 32>}, {pipeline_mode = #tpu.pipeline_mode<synchronous>, transform_indices = @transform_2, window_bounds = array<i64: 32, 32>}, {pipeline_mode = #tpu.pipeline_mode<synchronous>, transform_indices = @transform_3, window_bounds = array<i64: 1, 32>}, {pipeline_mode = #tpu.pipeline_mode<synchronous>, transform_indices = @transform_4, window_bounds = array<i64: 32, 64>}, {pipeline_mode = #tpu.pipeline_mode<synchronous>, transform_indices = @transform_5, window_bounds = array<i64: 1, 64>}, {pipeline_mode = #tpu.pipeline_mode<synchronous>, transform_indices = @transform_6, window_bounds = array<i64: 32, 32>}, {pipeline_mode = #tpu.pipeline_mode<synchronous>, transform_indices = @transform_7, window_bounds = array<i64: 1, 32>}, {pipeline_mode = #tpu.pipeline_mode<synchronous>, transform_indices = @transform_8, window_bounds = array<i64: 1, 32>}, {pipeline_mode = #tpu.pipeline_mode<synchronous>, transform_indices = @transform_9, window_bounds = array<i64: 1, 32>}, {transform_indices = @transform_10, window_bounds = array<i64: 1, 8, 32>}]} {
    %c0 = arith.constant 0 : index
    %c0_0 = arith.constant 0 : index
    %c0_1 = arith.constant 0 : index
    %0 = vector.load %arg2[%c0, %c0_0, %c0_1] : memref<1x8x32xf32, #tpu.memory_space<vmem>>, vector<1x8x32xf32>
    %1 = vector.shape_cast %0 : vector<1x8x32xf32> to vector<8x32xf32>
    %c0_2 = arith.constant 0 : index
    %c0_3 = arith.constant 0 : index
    %c0_4 = arith.constant 0 : index
    %2 = vector.load %arg3[%c0_2, %c0_3, %c0_4] : memref<1x8x32xf32, #tpu.memory_space<vmem>>, vector<1x8x32xf32>
    %3 = vector.shape_cast %2 : vector<1x8x32xf32> to vector<8x32xf32>
    %c0_5 = arith.constant 0 : index
    %c0_6 = arith.constant 0 : index
    %4 = vector.load %arg4[%c0_5, %c0_6] : memref<32x32xbf16, #tpu.memory_space<vmem>>, vector<32x32xbf16>
    %5 = arith.truncf %1 : vector<8x32xf32> to vector<8x32xbf16>
    %cst = arith.constant dense<0.000000e+00> : vector<8x32xf32>
    %6 = tpu.matmul %5, %4, %cst {dimension_numbers = #tpu.dot_dimension_numbers<[1], [0], [0], [1], [0, 0, 1, 1], [], []>} : vector<8x32xbf16>, vector<32x32xbf16>, vector<8x32xf32> -> vector<8x32xf32>
    %c0_7 = arith.constant 0 : index
    %c0_8 = arith.constant 0 : index
    %7 = vector.load %arg5[%c0_7, %c0_8] : memref<1x32xf32, #tpu.memory_space<vmem>>, vector<1x32xf32>
    %8 = vector.broadcast %7 : vector<1x32xf32> to vector<8x32xf32>
    %9 = arith.addf %6, %8 : vector<8x32xf32>
    %c0_9 = arith.constant 0 : index
    %c0_10 = arith.constant 0 : index
    %10 = vector.load %arg6[%c0_9, %c0_10] : memref<32x64xbf16, #tpu.memory_space<vmem>>, vector<32x64xbf16>
    %11 = arith.truncf %3 : vector<8x32xf32> to vector<8x32xbf16>
    %cst_11 = arith.constant dense<0.000000e+00> : vector<8x64xf32>
    %12 = tpu.matmul %11, %10, %cst_11 {dimension_numbers = #tpu.dot_dimension_numbers<[1], [0], [0], [1], [0, 0, 1, 1], [], []>} : vector<8x32xbf16>, vector<32x64xbf16>, vector<8x64xf32> -> vector<8x64xf32>
    %c0_12 = arith.constant 0 : index
    %c0_13 = arith.constant 0 : index
    %13 = vector.load %arg7[%c0_12, %c0_13] : memref<1x64xf32, #tpu.memory_space<vmem>>, vector<1x64xf32>
    %14 = vector.broadcast %13 : vector<1x64xf32> to vector<8x64xf32>
    %15 = arith.addf %12, %14 : vector<8x64xf32>
    %c0_14 = arith.constant 0 : index
    %c0_15 = arith.constant 0 : index
    %16 = vector.load %arg8[%c0_14, %c0_15] : memref<32x32xbf16, #tpu.memory_space<vmem>>, vector<32x32xbf16>
    %c0_16 = arith.constant 0 : index
    %c0_17 = arith.constant 0 : index
    %17 = vector.load %arg9[%c0_16, %c0_17] : memref<1x32xf32, #tpu.memory_space<vmem>>, vector<1x32xf32>
    %18 = vector.extract_strided_slice %9 {offsets = [0, 0], sizes = [8, 8], strides = [1, 1]} : vector<8x32xf32> to vector<8x8xf32>
    %19 = vector.extract_strided_slice %15 {offsets = [0, 0], sizes = [8, 8], strides = [1, 1]} : vector<8x64xf32> to vector<8x8xf32>
    %20 = vector.extract_strided_slice %15 {offsets = [0, 32], sizes = [8, 8], strides = [1, 1]} : vector<8x64xf32> to vector<8x8xf32>
    %21 = arith.truncf %18 : vector<8x8xf32> to vector<8x8xbf16>
    %22 = arith.truncf %19 : vector<8x8xf32> to vector<8x8xbf16>
    %cst_18 = arith.constant dense<0.000000e+00> : vector<8x8xf32>
    %23 = tpu.matmul %21, %22, %cst_18 {dimension_numbers = #tpu.dot_dimension_numbers<[1], [1], [0], [0], [0, 0, 1, 0], [], []>} : vector<8x8xbf16>, vector<8x8xbf16>, vector<8x8xf32> -> vector<8x8xf32>
    %cst_19 = arith.constant 0.353553385 : f32
    %24 = vector.broadcast %cst_19 : f32 to vector<8x8xf32>
    %25 = arith.mulf %23, %24 : vector<8x8xf32>
    %cst_20 = arith.constant dense<0xFF800000> : vector<8xf32>
    %26 = vector.multi_reduction <maximumf>, %25, %cst_20 [1] : vector<8x8xf32> to vector<8xf32>
    %27 = vector.shape_cast %26 : vector<8xf32> to vector<8x1xf32>
    %28 = vector.broadcast %27 : vector<8x1xf32> to vector<8x8xf32>
    %29 = arith.subf %25, %28 : vector<8x8xf32>
    %30 = math.exp %29 : vector<8x8xf32>
    %cst_21 = arith.constant dense<0.000000e+00> : vector<8xf32>
    %31 = vector.multi_reduction <add>, %30, %cst_21 [1] : vector<8x8xf32> to vector<8xf32>
    %32 = vector.shape_cast %31 : vector<8xf32> to vector<8x1xf32>
    %33 = tpu.reciprocal %32 {approx = true} : vector<8x1xf32> -> vector<8x1xf32>
    %34 = vector.broadcast %33 : vector<8x1xf32> to vector<8x8xf32>
    %35 = arith.mulf %30, %34 : vector<8x8xf32>
    %36 = arith.truncf %20 : vector<8x8xf32> to vector<8x8xbf16>
    %37 = arith.truncf %35 : vector<8x8xf32> to vector<8x8xbf16>
    %cst_22 = arith.constant dense<0.000000e+00> : vector<8x8xf32>
    %38 = tpu.matmul %37, %36, %cst_22 {dimension_numbers = #tpu.dot_dimension_numbers<[1], [0], [0], [1], [0, 0, 1, 1], [], []>} : vector<8x8xbf16>, vector<8x8xbf16>, vector<8x8xf32> -> vector<8x8xf32>
    %39 = vector.extract_strided_slice %16 {offsets = [0, 0], sizes = [8, 32], strides = [1, 1]} : vector<32x32xbf16> to vector<8x32xbf16>
    %40 = arith.truncf %38 : vector<8x8xf32> to vector<8x8xbf16>
    %cst_23 = arith.constant dense<0.000000e+00> : vector<8x32xf32>
    %41 = tpu.matmul %40, %39, %cst_23 {dimension_numbers = #tpu.dot_dimension_numbers<[1], [0], [0], [1], [0, 0, 1, 1], [], []>} : vector<8x8xbf16>, vector<8x32xbf16>, vector<8x32xf32> -> vector<8x32xf32>
    %42 = vector.broadcast %17 : vector<1x32xf32> to vector<8x32xf32>
    %43 = arith.addf %42, %41 : vector<8x32xf32>
    %44 = vector.extract_strided_slice %9 {offsets = [0, 8], sizes = [8, 8], strides = [1, 1]} : vector<8x32xf32> to vector<8x8xf32>
    %45 = vector.extract_strided_slice %15 {offsets = [0, 8], sizes = [8, 8], strides = [1, 1]} : vector<8x64xf32> to vector<8x8xf32>
    %46 = vector.extract_strided_slice %15 {offsets = [0, 40], sizes = [8, 8], strides = [1, 1]} : vector<8x64xf32> to vector<8x8xf32>
    %47 = arith.truncf %44 : vector<8x8xf32> to vector<8x8xbf16>
    %48 = arith.truncf %45 : vector<8x8xf32> to vector<8x8xbf16>
    %cst_24 = arith.constant dense<0.000000e+00> : vector<8x8xf32>
    %49 = tpu.matmul %47, %48, %cst_24 {dimension_numbers = #tpu.dot_dimension_numbers<[1], [1], [0], [0], [0, 0, 1, 0], [], []>} : vector<8x8xbf16>, vector<8x8xbf16>, vector<8x8xf32> -> vector<8x8xf32>
    %cst_25 = arith.constant 0.353553385 : f32
    %50 = vector.broadcast %cst_25 : f32 to vector<8x8xf32>
    %51 = arith.mulf %49, %50 : vector<8x8xf32>
    %cst_26 = arith.constant dense<0xFF800000> : vector<8xf32>
    %52 = vector.multi_reduction <maximumf>, %51, %cst_26 [1] : vector<8x8xf32> to vector<8xf32>
    %53 = vector.shape_cast %52 : vector<8xf32> to vector<8x1xf32>
    %54 = vector.broadcast %53 : vector<8x1xf32> to vector<8x8xf32>
    %55 = arith.subf %51, %54 : vector<8x8xf32>
    %56 = math.exp %55 : vector<8x8xf32>
    %cst_27 = arith.constant dense<0.000000e+00> : vector<8xf32>
    %57 = vector.multi_reduction <add>, %56, %cst_27 [1] : vector<8x8xf32> to vector<8xf32>
    %58 = vector.shape_cast %57 : vector<8xf32> to vector<8x1xf32>
    %59 = tpu.reciprocal %58 {approx = true} : vector<8x1xf32> -> vector<8x1xf32>
    %60 = vector.broadcast %59 : vector<8x1xf32> to vector<8x8xf32>
    %61 = arith.mulf %56, %60 : vector<8x8xf32>
    %62 = arith.truncf %46 : vector<8x8xf32> to vector<8x8xbf16>
    %63 = arith.truncf %61 : vector<8x8xf32> to vector<8x8xbf16>
    %cst_28 = arith.constant dense<0.000000e+00> : vector<8x8xf32>
    %64 = tpu.matmul %63, %62, %cst_28 {dimension_numbers = #tpu.dot_dimension_numbers<[1], [0], [0], [1], [0, 0, 1, 1], [], []>} : vector<8x8xbf16>, vector<8x8xbf16>, vector<8x8xf32> -> vector<8x8xf32>
    %65 = vector.extract_strided_slice %16 {offsets = [8, 0], sizes = [8, 32], strides = [1, 1]} : vector<32x32xbf16> to vector<8x32xbf16>
    %66 = arith.truncf %64 : vector<8x8xf32> to vector<8x8xbf16>
    %cst_29 = arith.constant dense<0.000000e+00> : vector<8x32xf32>
    %67 = tpu.matmul %66, %65, %cst_29 {dimension_numbers = #tpu.dot_dimension_numbers<[1], [0], [0], [1], [0, 0, 1, 1], [], []>} : vector<8x8xbf16>, vector<8x32xbf16>, vector<8x32xf32> -> vector<8x32xf32>
    %68 = arith.addf %43, %67 : vector<8x32xf32>
    %69 = vector.extract_strided_slice %9 {offsets = [0, 16], sizes = [8, 8], strides = [1, 1]} : vector<8x32xf32> to vector<8x8xf32>
    %70 = vector.extract_strided_slice %15 {offsets = [0, 16], sizes = [8, 8], strides = [1, 1]} : vector<8x64xf32> to vector<8x8xf32>
    %71 = vector.extract_strided_slice %15 {offsets = [0, 48], sizes = [8, 8], strides = [1, 1]} : vector<8x64xf32> to vector<8x8xf32>
    %72 = arith.truncf %69 : vector<8x8xf32> to vector<8x8xbf16>
    %73 = arith.truncf %70 : vector<8x8xf32> to vector<8x8xbf16>
    %cst_30 = arith.constant dense<0.000000e+00> : vector<8x8xf32>
    %74 = tpu.matmul %72, %73, %cst_30 {dimension_numbers = #tpu.dot_dimension_numbers<[1], [1], [0], [0], [0, 0, 1, 0], [], []>} : vector<8x8xbf16>, vector<8x8xbf16>, vector<8x8xf32> -> vector<8x8xf32>
    %cst_31 = arith.constant 0.353553385 : f32
    %75 = vector.broadcast %cst_31 : f32 to vector<8x8xf32>
    %76 = arith.mulf %74, %75 : vector<8x8xf32>
    %cst_32 = arith.constant dense<0xFF800000> : vector<8xf32>
    %77 = vector.multi_reduction <maximumf>, %76, %cst_32 [1] : vector<8x8xf32> to vector<8xf32>
    %78 = vector.shape_cast %77 : vector<8xf32> to vector<8x1xf32>
    %79 = vector.broadcast %78 : vector<8x1xf32> to vector<8x8xf32>
    %80 = arith.subf %76, %79 : vector<8x8xf32>
    %81 = math.exp %80 : vector<8x8xf32>
    %cst_33 = arith.constant dense<0.000000e+00> : vector<8xf32>
    %82 = vector.multi_reduction <add>, %81, %cst_33 [1] : vector<8x8xf32> to vector<8xf32>
    %83 = vector.shape_cast %82 : vector<8xf32> to vector<8x1xf32>
    %84 = tpu.reciprocal %83 {approx = true} : vector<8x1xf32> -> vector<8x1xf32>
    %85 = vector.broadcast %84 : vector<8x1xf32> to vector<8x8xf32>
    %86 = arith.mulf %81, %85 : vector<8x8xf32>
    %87 = arith.truncf %71 : vector<8x8xf32> to vector<8x8xbf16>
    %88 = arith.truncf %86 : vector<8x8xf32> to vector<8x8xbf16>
    %cst_34 = arith.constant dense<0.000000e+00> : vector<8x8xf32>
    %89 = tpu.matmul %88, %87, %cst_34 {dimension_numbers = #tpu.dot_dimension_numbers<[1], [0], [0], [1], [0, 0, 1, 1], [], []>} : vector<8x8xbf16>, vector<8x8xbf16>, vector<8x8xf32> -> vector<8x8xf32>
    %90 = vector.extract_strided_slice %16 {offsets = [16, 0], sizes = [8, 32], strides = [1, 1]} : vector<32x32xbf16> to vector<8x32xbf16>
    %91 = arith.truncf %89 : vector<8x8xf32> to vector<8x8xbf16>
    %cst_35 = arith.constant dense<0.000000e+00> : vector<8x32xf32>
    %92 = tpu.matmul %91, %90, %cst_35 {dimension_numbers = #tpu.dot_dimension_numbers<[1], [0], [0], [1], [0, 0, 1, 1], [], []>} : vector<8x8xbf16>, vector<8x32xbf16>, vector<8x32xf32> -> vector<8x32xf32>
    %93 = arith.addf %68, %92 : vector<8x32xf32>
    %94 = vector.extract_strided_slice %9 {offsets = [0, 24], sizes = [8, 8], strides = [1, 1]} : vector<8x32xf32> to vector<8x8xf32>
    %95 = vector.extract_strided_slice %15 {offsets = [0, 24], sizes = [8, 8], strides = [1, 1]} : vector<8x64xf32> to vector<8x8xf32>
    %96 = vector.extract_strided_slice %15 {offsets = [0, 56], sizes = [8, 8], strides = [1, 1]} : vector<8x64xf32> to vector<8x8xf32>
    %97 = arith.truncf %94 : vector<8x8xf32> to vector<8x8xbf16>
    %98 = arith.truncf %95 : vector<8x8xf32> to vector<8x8xbf16>
    %cst_36 = arith.constant dense<0.000000e+00> : vector<8x8xf32>
    %99 = tpu.matmul %97, %98, %cst_36 {dimension_numbers = #tpu.dot_dimension_numbers<[1], [1], [0], [0], [0, 0, 1, 0], [], []>} : vector<8x8xbf16>, vector<8x8xbf16>, vector<8x8xf32> -> vector<8x8xf32>
    %cst_37 = arith.constant 0.353553385 : f32
    %100 = vector.broadcast %cst_37 : f32 to vector<8x8xf32>
    %101 = arith.mulf %99, %100 : vector<8x8xf32>
    %cst_38 = arith.constant dense<0xFF800000> : vector<8xf32>
    %102 = vector.multi_reduction <maximumf>, %101, %cst_38 [1] : vector<8x8xf32> to vector<8xf32>
    %103 = vector.shape_cast %102 : vector<8xf32> to vector<8x1xf32>
    %104 = vector.broadcast %103 : vector<8x1xf32> to vector<8x8xf32>
    %105 = arith.subf %101, %104 : vector<8x8xf32>
    %106 = math.exp %105 : vector<8x8xf32>
    %cst_39 = arith.constant dense<0.000000e+00> : vector<8xf32>
    %107 = vector.multi_reduction <add>, %106, %cst_39 [1] : vector<8x8xf32> to vector<8xf32>
    %108 = vector.shape_cast %107 : vector<8xf32> to vector<8x1xf32>
    %109 = tpu.reciprocal %108 {approx = true} : vector<8x1xf32> -> vector<8x1xf32>
    %110 = vector.broadcast %109 : vector<8x1xf32> to vector<8x8xf32>
    %111 = arith.mulf %106, %110 : vector<8x8xf32>
    %112 = arith.truncf %96 : vector<8x8xf32> to vector<8x8xbf16>
    %113 = arith.truncf %111 : vector<8x8xf32> to vector<8x8xbf16>
    %cst_40 = arith.constant dense<0.000000e+00> : vector<8x8xf32>
    %114 = tpu.matmul %113, %112, %cst_40 {dimension_numbers = #tpu.dot_dimension_numbers<[1], [0], [0], [1], [0, 0, 1, 1], [], []>} : vector<8x8xbf16>, vector<8x8xbf16>, vector<8x8xf32> -> vector<8x8xf32>
    %115 = vector.extract_strided_slice %16 {offsets = [24, 0], sizes = [8, 32], strides = [1, 1]} : vector<32x32xbf16> to vector<8x32xbf16>
    %116 = arith.truncf %114 : vector<8x8xf32> to vector<8x8xbf16>
    %cst_41 = arith.constant dense<0.000000e+00> : vector<8x32xf32>
    %117 = tpu.matmul %116, %115, %cst_41 {dimension_numbers = #tpu.dot_dimension_numbers<[1], [0], [0], [1], [0, 0, 1, 1], [], []>} : vector<8x8xbf16>, vector<8x32xbf16>, vector<8x32xf32> -> vector<8x32xf32>
    %118 = arith.addf %93, %117 : vector<8x32xf32>
    %119 = arith.addf %1, %118 : vector<8x32xf32>
    %c0_42 = arith.constant 0 : index
    %c0_43 = arith.constant 0 : index
    %c0_44 = arith.constant 0 : index
    %120 = vector.load %arg12[%c0_42, %c0_43, %c0_44] : memref<1x8x32xf32, #tpu.memory_space<vmem>>, vector<1x8x32xf32>
    %121 = vector.shape_cast %120 : vector<1x8x32xf32> to vector<8x32xf32>
    %122 = vector.shape_cast %119 : vector<8x32xf32> to vector<1x8x32xf32>
    tpu.vector_store %arg12[%c0_42, %c0_43, %c0_44], %122 {strides = array<i32>} : memref<1x8x32xf32, #tpu.memory_space<vmem>>, vector<1x8x32xf32>,
    return
  }
  func.func @transform_0(%arg0: i32, %arg1: i32) -> (i32, i32, i32) {
    %c0_i32 = arith.constant 0 : i32
    %c0_i32_0 = arith.constant 0 : i32
    return %arg0, %arg1, %c0_i32 : i32, i32, i32
  }
  func.func @transform_1(%arg0: i32, %arg1: i32) -> (i32, i32, i32) {
    %c0_i32 = arith.constant 0 : i32
    %c0_i32_0 = arith.constant 0 : i32
    %c0_i32_1 = arith.constant 0 : i32
    return %arg0, %c0_i32, %c0_i32_0 : i32, i32, i32
  }
  func.func @transform_2(%arg0: i32, %arg1: i32) -> (i32, i32) {
    %c0_i32 = arith.constant 0 : i32
    %c0_i32_0 = arith.constant 0 : i32
    %c0_i32_1 = arith.constant 0 : i32
    return %c0_i32, %c0_i32_0 : i32, i32
  }
  func.func @transform_3(%arg0: i32, %arg1: i32) -> (i32, i32) {
    %c0_i32 = arith.constant 0 : i32
    %c0_i32_0 = arith.constant 0 : i32
    %c0_i32_1 = arith.constant 0 : i32
    return %c0_i32, %c0_i32_0 : i32, i32
  }
  func.func @transform_4(%arg0: i32, %arg1: i32) -> (i32, i32) {
    %c0_i32 = arith.constant 0 : i32
    %c0_i32_0 = arith.constant 0 : i32
    %c0_i32_1 = arith.constant 0 : i32
    return %c0_i32, %c0_i32_0 : i32, i32
  }
  func.func @transform_5(%arg0: i32, %arg1: i32) -> (i32, i32) {
    %c0_i32 = arith.constant 0 : i32
    %c0_i32_0 = arith.constant 0 : i32
    %c0_i32_1 = arith.constant 0 : i32
    return %c0_i32, %c0_i32_0 : i32, i32
  }
  func.func @transform_6(%arg0: i32, %arg1: i32) -> (i32, i32) {
    %c0_i32 = arith.constant 0 : i32
    %c0_i32_0 = arith.constant 0 : i32
    %c0_i32_1 = arith.constant 0 : i32
    return %c0_i32, %c0_i32_0 : i32, i32
  }
  func.func @transform_7(%arg0: i32, %arg1: i32) -> (i32, i32) {
    %c0_i32 = arith.constant 0 : i32
    %c0_i32_0 = arith.constant 0 : i32
    %c0_i32_1 = arith.constant 0 : i32
    return %c0_i32, %c0_i32_0 : i32, i32
  }
  func.func @transform_8(%arg0: i32, %arg1: i32) -> (i32, i32) {
    %c0_i32 = arith.constant 0 : i32
    %c0_i32_0 = arith.constant 0 : i32
    %c0_i32_1 = arith.constant 0 : i32
    return %c0_i32, %c0_i32_0 : i32, i32
  }
  func.func @transform_9(%arg0: i32, %arg1: i32) -> (i32, i32) {
    %c0_i32 = arith.constant 0 : i32
    %c0_i32_0 = arith.constant 0 : i32
    %c0_i32_1 = arith.constant 0 : i32
    return %c0_i32, %c0_i32_0 : i32, i32
  }
  func.func @transform_10(%arg0: i32, %arg1: i32) -> (i32, i32, i32) {
    %c0_i32 = arith.constant 0 : i32
    %c0_i32_0 = arith.constant 0 : i32
    return %arg0, %arg1, %c0_i32 : i32, i32, i32
  }
}

module attributes {stable_mosaic.version = 11 : i64} {
  func.func @_ffn_kernel(%arg0: i32, %arg1: i32, %arg2: memref<1x8x32xf32, #tpu.memory_space<vmem>>, %arg3: memref<1x32xf32, #tpu.memory_space<vmem>>, %arg4: memref<1x32xf32, #tpu.memory_space<vmem>>, %arg5: memref<32x64xbf16, #tpu.memory_space<vmem>>, %arg6: memref<1x64xf32, #tpu.memory_space<vmem>>, %arg7: memref<64x32xbf16, #tpu.memory_space<vmem>>, %arg8: memref<1x32xf32, #tpu.memory_space<vmem>>, %arg9: memref<1x32xf32, #tpu.memory_space<vmem>>, %arg10: memref<1x32xf32, #tpu.memory_space<vmem>>, %arg11: memref<1x8x32xf32, #tpu.memory_space<vmem>>) attributes {dimension_semantics = [#tpu.dimension_semantics<parallel>, #tpu.dimension_semantics<parallel>], iteration_bounds = array<i64: 2, 1>, scalar_prefetch = 0 : i64, scratch_operands = 0 : i64, tpu.core_type = #tpu.core_type<tc>, window_params = [{transform_indices = @transform_0, window_bounds = array<i64: 1, 8, 32>}, {pipeline_mode = #tpu.pipeline_mode<synchronous>, transform_indices = @transform_1, window_bounds = array<i64: 1, 32>}, {pipeline_mode = #tpu.pipeline_mode<synchronous>, transform_indices = @transform_2, window_bounds = array<i64: 1, 32>}, {pipeline_mode = #tpu.pipeline_mode<synchronous>, transform_indices = @transform_3, window_bounds = array<i64: 32, 64>}, {pipeline_mode = #tpu.pipeline_mode<synchronous>, transform_indices = @transform_4, window_bounds = array<i64: 1, 64>}, {pipeline_mode = #tpu.pipeline_mode<synchronous>, transform_indices = @transform_5, window_bounds = array<i64: 64, 32>}, {pipeline_mode = #tpu.pipeline_mode<synchronous>, transform_indices = @transform_6, window_bounds = array<i64: 1, 32>}, {pipeline_mode = #tpu.pipeline_mode<synchronous>, transform_indices = @transform_7, window_bounds = array<i64: 1, 32>}, {pipeline_mode = #tpu.pipeline_mode<synchronous>, transform_indices = @transform_8, window_bounds = array<i64: 1, 32>}, {transform_indices = @transform_9, window_bounds = array<i64: 1, 8, 32>}]} {
    %c0 = arith.constant 0 : index
    %c0_0 = arith.constant 0 : index
    %c0_1 = arith.constant 0 : index
    %0 = vector.load %arg2[%c0, %c0_0, %c0_1] : memref<1x8x32xf32, #tpu.memory_space<vmem>>, vector<1x8x32xf32>
    %1 = vector.shape_cast %0 : vector<1x8x32xf32> to vector<8x32xf32>
    %c0_2 = arith.constant 0 : index
    %c0_3 = arith.constant 0 : index
    %2 = vector.load %arg3[%c0_2, %c0_3] : memref<1x32xf32, #tpu.memory_space<vmem>>, vector<1x32xf32>
    %c0_4 = arith.constant 0 : index
    %c0_5 = arith.constant 0 : index
    %3 = vector.load %arg4[%c0_4, %c0_5] : memref<1x32xf32, #tpu.memory_space<vmem>>, vector<1x32xf32>
    %cst = arith.constant dense<0.000000e+00> : vector<8xf32>
    %4 = vector.multi_reduction <add>, %1, %cst [1] : vector<8x32xf32> to vector<8xf32>
    %5 = vector.shape_cast %4 : vector<8xf32> to vector<8x1xf32>
    %cst_6 = arith.constant 3.200000e+01 : f32
    %6 = vector.broadcast %cst_6 : f32 to vector<8x1xf32>
    %7 = arith.divf %5, %6 : vector<8x1xf32>
    %8 = vector.broadcast %7 : vector<8x1xf32> to vector<8x32xf32>
    %9 = arith.subf %1, %8 : vector<8x32xf32>
    %10 = arith.mulf %9, %9 : vector<8x32xf32>
    %cst_7 = arith.constant dense<0.000000e+00> : vector<8xf32>
    %11 = vector.multi_reduction <add>, %10, %cst_7 [1] : vector<8x32xf32> to vector<8xf32>
    %12 = vector.shape_cast %11 : vector<8xf32> to vector<8x1xf32>
    %cst_8 = arith.constant 3.200000e+01 : f32
    %13 = vector.broadcast %cst_8 : f32 to vector<8x1xf32>
    %14 = arith.divf %12, %13 : vector<8x1xf32>
    %15 = vector.broadcast %7 : vector<8x1xf32> to vector<8x32xf32>
    %16 = arith.subf %1, %15 : vector<8x32xf32>
    %cst_9 = arith.constant 9.99999974E-6 : f32
    %17 = vector.broadcast %cst_9 : f32 to vector<8x1xf32>
    %18 = arith.addf %14, %17 : vector<8x1xf32>
    %19 = math.rsqrt %18 : vector<8x1xf32>
    %20 = vector.broadcast %19 : vector<8x1xf32> to vector<8x32xf32>
    %21 = arith.mulf %16, %20 : vector<8x32xf32>
    %22 = vector.broadcast %2 : vector<1x32xf32> to vector<8x32xf32>
    %23 = arith.mulf %21, %22 : vector<8x32xf32>
    %24 = vector.broadcast %3 : vector<1x32xf32> to vector<8x32xf32>
    %25 = arith.addf %23, %24 : vector<8x32xf32>
    %c0_10 = arith.constant 0 : index
    %c0_11 = arith.constant 0 : index
    %26 = vector.load %arg5[%c0_10, %c0_11] : memref<32x64xbf16, #tpu.memory_space<vmem>>, vector<32x64xbf16>
    %27 = arith.truncf %25 : vector<8x32xf32> to vector<8x32xbf16>
    %cst_12 = arith.constant dense<0.000000e+00> : vector<8x64xf32>
    %28 = tpu.matmul %27, %26, %cst_12 {dimension_numbers = #tpu.dot_dimension_numbers<[1], [0], [0], [1], [0, 0, 1, 1], [], []>} : vector<8x32xbf16>, vector<32x64xbf16>, vector<8x64xf32> -> vector<8x64xf32>
    %c0_13 = arith.constant 0 : index
    %c0_14 = arith.constant 0 : index
    %29 = vector.load %arg6[%c0_13, %c0_14] : memref<1x64xf32, #tpu.memory_space<vmem>>, vector<1x64xf32>
    %30 = vector.broadcast %29 : vector<1x64xf32> to vector<8x64xf32>
    %31 = arith.addf %28, %30 : vector<8x64xf32>
    %cst_15 = arith.constant 0.000000e+00 : f32
    %32 = vector.broadcast %cst_15 : f32 to vector<8x64xf32>
    %33 = arith.maximumf %31, %32 : vector<8x64xf32>
    %c0_16 = arith.constant 0 : index
    %c0_17 = arith.constant 0 : index
    %34 = vector.load %arg7[%c0_16, %c0_17] : memref<64x32xbf16, #tpu.memory_space<vmem>>, vector<64x32xbf16>
    %35 = arith.truncf %33 : vector<8x64xf32> to vector<8x64xbf16>
    %cst_18 = arith.constant dense<0.000000e+00> : vector<8x32xf32>
    %36 = tpu.matmul %35, %34, %cst_18 {dimension_numbers = #tpu.dot_dimension_numbers<[1], [0], [0], [1], [0, 0, 1, 1], [], []>} : vector<8x64xbf16>, vector<64x32xbf16>, vector<8x32xf32> -> vector<8x32xf32>
    %c0_19 = arith.constant 0 : index
    %c0_20 = arith.constant 0 : index
    %37 = vector.load %arg8[%c0_19, %c0_20] : memref<1x32xf32, #tpu.memory_space<vmem>>, vector<1x32xf32>
    %38 = vector.broadcast %37 : vector<1x32xf32> to vector<8x32xf32>
    %39 = arith.addf %36, %38 : vector<8x32xf32>
    %40 = arith.addf %25, %39 : vector<8x32xf32>
    %c0_21 = arith.constant 0 : index
    %c0_22 = arith.constant 0 : index
    %41 = vector.load %arg9[%c0_21, %c0_22] : memref<1x32xf32, #tpu.memory_space<vmem>>, vector<1x32xf32>
    %c0_23 = arith.constant 0 : index
    %c0_24 = arith.constant 0 : index
    %42 = vector.load %arg10[%c0_23, %c0_24] : memref<1x32xf32, #tpu.memory_space<vmem>>, vector<1x32xf32>
    %cst_25 = arith.constant dense<0.000000e+00> : vector<8xf32>
    %43 = vector.multi_reduction <add>, %40, %cst_25 [1] : vector<8x32xf32> to vector<8xf32>
    %44 = vector.shape_cast %43 : vector<8xf32> to vector<8x1xf32>
    %cst_26 = arith.constant 3.200000e+01 : f32
    %45 = vector.broadcast %cst_26 : f32 to vector<8x1xf32>
    %46 = arith.divf %44, %45 : vector<8x1xf32>
    %47 = vector.broadcast %46 : vector<8x1xf32> to vector<8x32xf32>
    %48 = arith.subf %40, %47 : vector<8x32xf32>
    %49 = arith.mulf %48, %48 : vector<8x32xf32>
    %cst_27 = arith.constant dense<0.000000e+00> : vector<8xf32>
    %50 = vector.multi_reduction <add>, %49, %cst_27 [1] : vector<8x32xf32> to vector<8xf32>
    %51 = vector.shape_cast %50 : vector<8xf32> to vector<8x1xf32>
    %cst_28 = arith.constant 3.200000e+01 : f32
    %52 = vector.broadcast %cst_28 : f32 to vector<8x1xf32>
    %53 = arith.divf %51, %52 : vector<8x1xf32>
    %54 = vector.broadcast %46 : vector<8x1xf32> to vector<8x32xf32>
    %55 = arith.subf %40, %54 : vector<8x32xf32>
    %cst_29 = arith.constant 9.99999974E-6 : f32
    %56 = vector.broadcast %cst_29 : f32 to vector<8x1xf32>
    %57 = arith.addf %53, %56 : vector<8x1xf32>
    %58 = math.rsqrt %57 : vector<8x1xf32>
    %59 = vector.broadcast %58 : vector<8x1xf32> to vector<8x32xf32>
    %60 = arith.mulf %55, %59 : vector<8x32xf32>
    %61 = vector.broadcast %41 : vector<1x32xf32> to vector<8x32xf32>
    %62 = arith.mulf %60, %61 : vector<8x32xf32>
    %63 = vector.broadcast %42 : vector<1x32xf32> to vector<8x32xf32>
    %64 = arith.addf %62, %63 : vector<8x32xf32>
    %c0_30 = arith.constant 0 : index
    %c0_31 = arith.constant 0 : index
    %c0_32 = arith.constant 0 : index
    %65 = vector.load %arg11[%c0_30, %c0_31, %c0_32] : memref<1x8x32xf32, #tpu.memory_space<vmem>>, vector<1x8x32xf32>
    %66 = vector.shape_cast %65 : vector<1x8x32xf32> to vector<8x32xf32>
    %67 = vector.shape_cast %64 : vector<8x32xf32> to vector<1x8x32xf32>
    tpu.vector_store %arg11[%c0_30, %c0_31, %c0_32], %67 {strides = array<i32>} : memref<1x8x32xf32, #tpu.memory_space<vmem>>, vector<1x8x32xf32>,
    return
  }
  func.func @transform_0(%arg0: i32, %arg1: i32) -> (i32, i32, i32) {
    %c0_i32 = arith.constant 0 : i32
    %c0_i32_0 = arith.constant 0 : i32
    return %arg0, %arg1, %c0_i32 : i32, i32, i32
  }
  func.func @transform_1(%arg0: i32, %arg1: i32) -> (i32, i32) {
    %c0_i32 = arith.constant 0 : i32
    %c0_i32_0 = arith.constant 0 : i32
    %c0_i32_1 = arith.constant 0 : i32
    return %c0_i32, %c0_i32_0 : i32, i32
  }
  func.func @transform_2(%arg0: i32, %arg1: i32) -> (i32, i32) {
    %c0_i32 = arith.constant 0 : i32
    %c0_i32_0 = arith.constant 0 : i32
    %c0_i32_1 = arith.constant 0 : i32
    return %c0_i32, %c0_i32_0 : i32, i32
  }
  func.func @transform_3(%arg0: i32, %arg1: i32) -> (i32, i32) {
    %c0_i32 = arith.constant 0 : i32
    %c0_i32_0 = arith.constant 0 : i32
    %c0_i32_1 = arith.constant 0 : i32
    return %c0_i32, %c0_i32_0 : i32, i32
  }
  func.func @transform_4(%arg0: i32, %arg1: i32) -> (i32, i32) {
    %c0_i32 = arith.constant 0 : i32
    %c0_i32_0 = arith.constant 0 : i32
    %c0_i32_1 = arith.constant 0 : i32
    return %c0_i32, %c0_i32_0 : i32, i32
  }
  func.func @transform_5(%arg0: i32, %arg1: i32) -> (i32, i32) {
    %c0_i32 = arith.constant 0 : i32
    %c0_i32_0 = arith.constant 0 : i32
    %c0_i32_1 = arith.constant 0 : i32
    return %c0_i32, %c0_i32_0 : i32, i32
  }
  func.func @transform_6(%arg0: i32, %arg1: i32) -> (i32, i32) {
    %c0_i32 = arith.constant 0 : i32
    %c0_i32_0 = arith.constant 0 : i32
    %c0_i32_1 = arith.constant 0 : i32
    return %c0_i32, %c0_i32_0 : i32, i32
  }
  func.func @transform_7(%arg0: i32, %arg1: i32) -> (i32, i32) {
    %c0_i32 = arith.constant 0 : i32
    %c0_i32_0 = arith.constant 0 : i32
    %c0_i32_1 = arith.constant 0 : i32
    return %c0_i32, %c0_i32_0 : i32, i32
  }
  func.func @transform_8(%arg0: i32, %arg1: i32) -> (i32, i32) {
    %c0_i32 = arith.constant 0 : i32
    %c0_i32_0 = arith.constant 0 : i32
    %c0_i32_1 = arith.constant 0 : i32
    return %c0_i32, %c0_i32_0 : i32, i32
  }
  func.func @transform_9(%arg0: i32, %arg1: i32) -> (i32, i32, i32) {
    %c0_i32 = arith.constant 0 : i32
    %c0_i32_0 = arith.constant 0 : i32
    return %arg0, %arg1, %c0_i32 : i32, i32, i32
  }
}

module attributes {stable_mosaic.version = 11 : i64} {
  func.func @_attn_block_kernel(%arg0: i32, %arg1: i32, %arg2: memref<1x8x32xf32, #tpu.memory_space<vmem>>, %arg3: memref<1x8x32xf32, #tpu.memory_space<vmem>>, %arg4: memref<32x32xbf16, #tpu.memory_space<vmem>>, %arg5: memref<1x32xf32, #tpu.memory_space<vmem>>, %arg6: memref<32x64xbf16, #tpu.memory_space<vmem>>, %arg7: memref<1x64xf32, #tpu.memory_space<vmem>>, %arg8: memref<32x32xbf16, #tpu.memory_space<vmem>>, %arg9: memref<1x32xf32, #tpu.memory_space<vmem>>, %arg10: memref<1x32xf32, #tpu.memory_space<vmem>>, %arg11: memref<1x32xf32, #tpu.memory_space<vmem>>, %arg12: memref<1x8x32xf32, #tpu.memory_space<vmem>>) attributes {dimension_semantics = [#tpu.dimension_semantics<parallel>, #tpu.dimension_semantics<parallel>], iteration_bounds = array<i64: 2, 1>, scalar_prefetch = 0 : i64, scratch_operands = 0 : i64, tpu.core_type = #tpu.core_type<tc>, window_params = [{transform_indices = @transform_0, window_bounds = array<i64: 1, 8, 32>}, {transform_indices = @transform_1, window_bounds = array<i64: 1, 8, 32>}, {pipeline_mode = #tpu.pipeline_mode<synchronous>, transform_indices = @transform_2, window_bounds = array<i64: 32, 32>}, {pipeline_mode = #tpu.pipeline_mode<synchronous>, transform_indices = @transform_3, window_bounds = array<i64: 1, 32>}, {pipeline_mode = #tpu.pipeline_mode<synchronous>, transform_indices = @transform_4, window_bounds = array<i64: 32, 64>}, {pipeline_mode = #tpu.pipeline_mode<synchronous>, transform_indices = @transform_5, window_bounds = array<i64: 1, 64>}, {pipeline_mode = #tpu.pipeline_mode<synchronous>, transform_indices = @transform_6, window_bounds = array<i64: 32, 32>}, {pipeline_mode = #tpu.pipeline_mode<synchronous>, transform_indices = @transform_7, window_bounds = array<i64: 1, 32>}, {pipeline_mode = #tpu.pipeline_mode<synchronous>, transform_indices = @transform_8, window_bounds = array<i64: 1, 32>}, {pipeline_mode = #tpu.pipeline_mode<synchronous>, transform_indices = @transform_9, window_bounds = array<i64: 1, 32>}, {transform_indices = @transform_10, window_bounds = array<i64: 1, 8, 32>}]} {
    %c0 = arith.constant 0 : index
    %c0_0 = arith.constant 0 : index
    %c0_1 = arith.constant 0 : index
    %0 = vector.load %arg2[%c0, %c0_0, %c0_1] : memref<1x8x32xf32, #tpu.memory_space<vmem>>, vector<1x8x32xf32>
    %1 = vector.shape_cast %0 : vector<1x8x32xf32> to vector<8x32xf32>
    %c0_2 = arith.constant 0 : index
    %c0_3 = arith.constant 0 : index
    %c0_4 = arith.constant 0 : index
    %2 = vector.load %arg3[%c0_2, %c0_3, %c0_4] : memref<1x8x32xf32, #tpu.memory_space<vmem>>, vector<1x8x32xf32>
    %3 = vector.shape_cast %2 : vector<1x8x32xf32> to vector<8x32xf32>
    %c0_5 = arith.constant 0 : index
    %c0_6 = arith.constant 0 : index
    %4 = vector.load %arg4[%c0_5, %c0_6] : memref<32x32xbf16, #tpu.memory_space<vmem>>, vector<32x32xbf16>
    %5 = arith.truncf %1 : vector<8x32xf32> to vector<8x32xbf16>
    %cst = arith.constant dense<0.000000e+00> : vector<8x32xf32>
    %6 = tpu.matmul %5, %4, %cst {dimension_numbers = #tpu.dot_dimension_numbers<[1], [0], [0], [1], [0, 0, 1, 1], [], []>} : vector<8x32xbf16>, vector<32x32xbf16>, vector<8x32xf32> -> vector<8x32xf32>
    %c0_7 = arith.constant 0 : index
    %c0_8 = arith.constant 0 : index
    %7 = vector.load %arg5[%c0_7, %c0_8] : memref<1x32xf32, #tpu.memory_space<vmem>>, vector<1x32xf32>
    %8 = vector.broadcast %7 : vector<1x32xf32> to vector<8x32xf32>
    %9 = arith.addf %6, %8 : vector<8x32xf32>
    %c0_9 = arith.constant 0 : index
    %c0_10 = arith.constant 0 : index
    %10 = vector.load %arg6[%c0_9, %c0_10] : memref<32x64xbf16, #tpu.memory_space<vmem>>, vector<32x64xbf16>
    %11 = arith.truncf %3 : vector<8x32xf32> to vector<8x32xbf16>
    %cst_11 = arith.constant dense<0.000000e+00> : vector<8x64xf32>
    %12 = tpu.matmul %11, %10, %cst_11 {dimension_numbers = #tpu.dot_dimension_numbers<[1], [0], [0], [1], [0, 0, 1, 1], [], []>} : vector<8x32xbf16>, vector<32x64xbf16>, vector<8x64xf32> -> vector<8x64xf32>
    %c0_12 = arith.constant 0 : index
    %c0_13 = arith.constant 0 : index
    %13 = vector.load %arg7[%c0_12, %c0_13] : memref<1x64xf32, #tpu.memory_space<vmem>>, vector<1x64xf32>
    %14 = vector.broadcast %13 : vector<1x64xf32> to vector<8x64xf32>
    %15 = arith.addf %12, %14 : vector<8x64xf32>
    %c0_14 = arith.constant 0 : index
    %c0_15 = arith.constant 0 : index
    %16 = vector.load %arg8[%c0_14, %c0_15] : memref<32x32xbf16, #tpu.memory_space<vmem>>, vector<32x32xbf16>
    %c0_16 = arith.constant 0 : index
    %c0_17 = arith.constant 0 : index
    %17 = vector.load %arg9[%c0_16, %c0_17] : memref<1x32xf32, #tpu.memory_space<vmem>>, vector<1x32xf32>
    %18 = vector.extract_strided_slice %9 {offsets = [0, 0], sizes = [8, 8], strides = [1, 1]} : vector<8x32xf32> to vector<8x8xf32>
    %19 = vector.extract_strided_slice %15 {offsets = [0, 0], sizes = [8, 8], strides = [1, 1]} : vector<8x64xf32> to vector<8x8xf32>
    %20 = vector.extract_strided_slice %15 {offsets = [0, 32], sizes = [8, 8], strides = [1, 1]} : vector<8x64xf32> to vector<8x8xf32>
    %21 = arith.truncf %18 : vector<8x8xf32> to vector<8x8xbf16>
    %22 = arith.truncf %19 : vector<8x8xf32> to vector<8x8xbf16>
    %cst_18 = arith.constant dense<0.000000e+00> : vector<8x8xf32>
    %23 = tpu.matmul %21, %22, %cst_18 {dimension_numbers = #tpu.dot_dimension_numbers<[1], [1], [0], [0], [0, 0, 1, 0], [], []>} : vector<8x8xbf16>, vector<8x8xbf16>, vector<8x8xf32> -> vector<8x8xf32>
    %cst_19 = arith.constant 0.353553385 : f32
    %24 = vector.broadcast %cst_19 : f32 to vector<8x8xf32>
    %25 = arith.mulf %23, %24 : vector<8x8xf32>
    %cst_20 = arith.constant dense<0xFF800000> : vector<8xf32>
    %26 = vector.multi_reduction <maximumf>, %25, %cst_20 [1] : vector<8x8xf32> to vector<8xf32>
    %27 = vector.shape_cast %26 : vector<8xf32> to vector<8x1xf32>
    %28 = vector.broadcast %27 : vector<8x1xf32> to vector<8x8xf32>
    %29 = arith.subf %25, %28 : vector<8x8xf32>
    %30 = math.exp %29 : vector<8x8xf32>
    %cst_21 = arith.constant dense<0.000000e+00> : vector<8xf32>
    %31 = vector.multi_reduction <add>, %30, %cst_21 [1] : vector<8x8xf32> to vector<8xf32>
    %32 = vector.shape_cast %31 : vector<8xf32> to vector<8x1xf32>
    %33 = tpu.reciprocal %32 {approx = true} : vector<8x1xf32> -> vector<8x1xf32>
    %34 = vector.broadcast %33 : vector<8x1xf32> to vector<8x8xf32>
    %35 = arith.mulf %30, %34 : vector<8x8xf32>
    %36 = arith.truncf %20 : vector<8x8xf32> to vector<8x8xbf16>
    %37 = arith.truncf %35 : vector<8x8xf32> to vector<8x8xbf16>
    %cst_22 = arith.constant dense<0.000000e+00> : vector<8x8xf32>
    %38 = tpu.matmul %37, %36, %cst_22 {dimension_numbers = #tpu.dot_dimension_numbers<[1], [0], [0], [1], [0, 0, 1, 1], [], []>} : vector<8x8xbf16>, vector<8x8xbf16>, vector<8x8xf32> -> vector<8x8xf32>
    %39 = vector.extract_strided_slice %16 {offsets = [0, 0], sizes = [8, 32], strides = [1, 1]} : vector<32x32xbf16> to vector<8x32xbf16>
    %40 = arith.truncf %38 : vector<8x8xf32> to vector<8x8xbf16>
    %cst_23 = arith.constant dense<0.000000e+00> : vector<8x32xf32>
    %41 = tpu.matmul %40, %39, %cst_23 {dimension_numbers = #tpu.dot_dimension_numbers<[1], [0], [0], [1], [0, 0, 1, 1], [], []>} : vector<8x8xbf16>, vector<8x32xbf16>, vector<8x32xf32> -> vector<8x32xf32>
    %42 = vector.broadcast %17 : vector<1x32xf32> to vector<8x32xf32>
    %43 = arith.addf %42, %41 : vector<8x32xf32>
    %44 = vector.extract_strided_slice %9 {offsets = [0, 8], sizes = [8, 8], strides = [1, 1]} : vector<8x32xf32> to vector<8x8xf32>
    %45 = vector.extract_strided_slice %15 {offsets = [0, 8], sizes = [8, 8], strides = [1, 1]} : vector<8x64xf32> to vector<8x8xf32>
    %46 = vector.extract_strided_slice %15 {offsets = [0, 40], sizes = [8, 8], strides = [1, 1]} : vector<8x64xf32> to vector<8x8xf32>
    %47 = arith.truncf %44 : vector<8x8xf32> to vector<8x8xbf16>
    %48 = arith.truncf %45 : vector<8x8xf32> to vector<8x8xbf16>
    %cst_24 = arith.constant dense<0.000000e+00> : vector<8x8xf32>
    %49 = tpu.matmul %47, %48, %cst_24 {dimension_numbers = #tpu.dot_dimension_numbers<[1], [1], [0], [0], [0, 0, 1, 0], [], []>} : vector<8x8xbf16>, vector<8x8xbf16>, vector<8x8xf32> -> vector<8x8xf32>
    %cst_25 = arith.constant 0.353553385 : f32
    %50 = vector.broadcast %cst_25 : f32 to vector<8x8xf32>
    %51 = arith.mulf %49, %50 : vector<8x8xf32>
    %cst_26 = arith.constant dense<0xFF800000> : vector<8xf32>
    %52 = vector.multi_reduction <maximumf>, %51, %cst_26 [1] : vector<8x8xf32> to vector<8xf32>
    %53 = vector.shape_cast %52 : vector<8xf32> to vector<8x1xf32>
    %54 = vector.broadcast %53 : vector<8x1xf32> to vector<8x8xf32>
    %55 = arith.subf %51, %54 : vector<8x8xf32>
    %56 = math.exp %55 : vector<8x8xf32>
    %cst_27 = arith.constant dense<0.000000e+00> : vector<8xf32>
    %57 = vector.multi_reduction <add>, %56, %cst_27 [1] : vector<8x8xf32> to vector<8xf32>
    %58 = vector.shape_cast %57 : vector<8xf32> to vector<8x1xf32>
    %59 = tpu.reciprocal %58 {approx = true} : vector<8x1xf32> -> vector<8x1xf32>
    %60 = vector.broadcast %59 : vector<8x1xf32> to vector<8x8xf32>
    %61 = arith.mulf %56, %60 : vector<8x8xf32>
    %62 = arith.truncf %46 : vector<8x8xf32> to vector<8x8xbf16>
    %63 = arith.truncf %61 : vector<8x8xf32> to vector<8x8xbf16>
    %cst_28 = arith.constant dense<0.000000e+00> : vector<8x8xf32>
    %64 = tpu.matmul %63, %62, %cst_28 {dimension_numbers = #tpu.dot_dimension_numbers<[1], [0], [0], [1], [0, 0, 1, 1], [], []>} : vector<8x8xbf16>, vector<8x8xbf16>, vector<8x8xf32> -> vector<8x8xf32>
    %65 = vector.extract_strided_slice %16 {offsets = [8, 0], sizes = [8, 32], strides = [1, 1]} : vector<32x32xbf16> to vector<8x32xbf16>
    %66 = arith.truncf %64 : vector<8x8xf32> to vector<8x8xbf16>
    %cst_29 = arith.constant dense<0.000000e+00> : vector<8x32xf32>
    %67 = tpu.matmul %66, %65, %cst_29 {dimension_numbers = #tpu.dot_dimension_numbers<[1], [0], [0], [1], [0, 0, 1, 1], [], []>} : vector<8x8xbf16>, vector<8x32xbf16>, vector<8x32xf32> -> vector<8x32xf32>
    %68 = arith.addf %43, %67 : vector<8x32xf32>
    %69 = vector.extract_strided_slice %9 {offsets = [0, 16], sizes = [8, 8], strides = [1, 1]} : vector<8x32xf32> to vector<8x8xf32>
    %70 = vector.extract_strided_slice %15 {offsets = [0, 16], sizes = [8, 8], strides = [1, 1]} : vector<8x64xf32> to vector<8x8xf32>
    %71 = vector.extract_strided_slice %15 {offsets = [0, 48], sizes = [8, 8], strides = [1, 1]} : vector<8x64xf32> to vector<8x8xf32>
    %72 = arith.truncf %69 : vector<8x8xf32> to vector<8x8xbf16>
    %73 = arith.truncf %70 : vector<8x8xf32> to vector<8x8xbf16>
    %cst_30 = arith.constant dense<0.000000e+00> : vector<8x8xf32>
    %74 = tpu.matmul %72, %73, %cst_30 {dimension_numbers = #tpu.dot_dimension_numbers<[1], [1], [0], [0], [0, 0, 1, 0], [], []>} : vector<8x8xbf16>, vector<8x8xbf16>, vector<8x8xf32> -> vector<8x8xf32>
    %cst_31 = arith.constant 0.353553385 : f32
    %75 = vector.broadcast %cst_31 : f32 to vector<8x8xf32>
    %76 = arith.mulf %74, %75 : vector<8x8xf32>
    %cst_32 = arith.constant dense<0xFF800000> : vector<8xf32>
    %77 = vector.multi_reduction <maximumf>, %76, %cst_32 [1] : vector<8x8xf32> to vector<8xf32>
    %78 = vector.shape_cast %77 : vector<8xf32> to vector<8x1xf32>
    %79 = vector.broadcast %78 : vector<8x1xf32> to vector<8x8xf32>
    %80 = arith.subf %76, %79 : vector<8x8xf32>
    %81 = math.exp %80 : vector<8x8xf32>
    %cst_33 = arith.constant dense<0.000000e+00> : vector<8xf32>
    %82 = vector.multi_reduction <add>, %81, %cst_33 [1] : vector<8x8xf32> to vector<8xf32>
    %83 = vector.shape_cast %82 : vector<8xf32> to vector<8x1xf32>
    %84 = tpu.reciprocal %83 {approx = true} : vector<8x1xf32> -> vector<8x1xf32>
    %85 = vector.broadcast %84 : vector<8x1xf32> to vector<8x8xf32>
    %86 = arith.mulf %81, %85 : vector<8x8xf32>
    %87 = arith.truncf %71 : vector<8x8xf32> to vector<8x8xbf16>
    %88 = arith.truncf %86 : vector<8x8xf32> to vector<8x8xbf16>
    %cst_34 = arith.constant dense<0.000000e+00> : vector<8x8xf32>
    %89 = tpu.matmul %88, %87, %cst_34 {dimension_numbers = #tpu.dot_dimension_numbers<[1], [0], [0], [1], [0, 0, 1, 1], [], []>} : vector<8x8xbf16>, vector<8x8xbf16>, vector<8x8xf32> -> vector<8x8xf32>
    %90 = vector.extract_strided_slice %16 {offsets = [16, 0], sizes = [8, 32], strides = [1, 1]} : vector<32x32xbf16> to vector<8x32xbf16>
    %91 = arith.truncf %89 : vector<8x8xf32> to vector<8x8xbf16>
    %cst_35 = arith.constant dense<0.000000e+00> : vector<8x32xf32>
    %92 = tpu.matmul %91, %90, %cst_35 {dimension_numbers = #tpu.dot_dimension_numbers<[1], [0], [0], [1], [0, 0, 1, 1], [], []>} : vector<8x8xbf16>, vector<8x32xbf16>, vector<8x32xf32> -> vector<8x32xf32>
    %93 = arith.addf %68, %92 : vector<8x32xf32>
    %94 = vector.extract_strided_slice %9 {offsets = [0, 24], sizes = [8, 8], strides = [1, 1]} : vector<8x32xf32> to vector<8x8xf32>
    %95 = vector.extract_strided_slice %15 {offsets = [0, 24], sizes = [8, 8], strides = [1, 1]} : vector<8x64xf32> to vector<8x8xf32>
    %96 = vector.extract_strided_slice %15 {offsets = [0, 56], sizes = [8, 8], strides = [1, 1]} : vector<8x64xf32> to vector<8x8xf32>
    %97 = arith.truncf %94 : vector<8x8xf32> to vector<8x8xbf16>
    %98 = arith.truncf %95 : vector<8x8xf32> to vector<8x8xbf16>
    %cst_36 = arith.constant dense<0.000000e+00> : vector<8x8xf32>
    %99 = tpu.matmul %97, %98, %cst_36 {dimension_numbers = #tpu.dot_dimension_numbers<[1], [1], [0], [0], [0, 0, 1, 0], [], []>} : vector<8x8xbf16>, vector<8x8xbf16>, vector<8x8xf32> -> vector<8x8xf32>
    %cst_37 = arith.constant 0.353553385 : f32
    %100 = vector.broadcast %cst_37 : f32 to vector<8x8xf32>
    %101 = arith.mulf %99, %100 : vector<8x8xf32>
    %cst_38 = arith.constant dense<0xFF800000> : vector<8xf32>
    %102 = vector.multi_reduction <maximumf>, %101, %cst_38 [1] : vector<8x8xf32> to vector<8xf32>
    %103 = vector.shape_cast %102 : vector<8xf32> to vector<8x1xf32>
    %104 = vector.broadcast %103 : vector<8x1xf32> to vector<8x8xf32>
    %105 = arith.subf %101, %104 : vector<8x8xf32>
    %106 = math.exp %105 : vector<8x8xf32>
    %cst_39 = arith.constant dense<0.000000e+00> : vector<8xf32>
    %107 = vector.multi_reduction <add>, %106, %cst_39 [1] : vector<8x8xf32> to vector<8xf32>
    %108 = vector.shape_cast %107 : vector<8xf32> to vector<8x1xf32>
    %109 = tpu.reciprocal %108 {approx = true} : vector<8x1xf32> -> vector<8x1xf32>
    %110 = vector.broadcast %109 : vector<8x1xf32> to vector<8x8xf32>
    %111 = arith.mulf %106, %110 : vector<8x8xf32>
    %112 = arith.truncf %96 : vector<8x8xf32> to vector<8x8xbf16>
    %113 = arith.truncf %111 : vector<8x8xf32> to vector<8x8xbf16>
    %cst_40 = arith.constant dense<0.000000e+00> : vector<8x8xf32>
    %114 = tpu.matmul %113, %112, %cst_40 {dimension_numbers = #tpu.dot_dimension_numbers<[1], [0], [0], [1], [0, 0, 1, 1], [], []>} : vector<8x8xbf16>, vector<8x8xbf16>, vector<8x8xf32> -> vector<8x8xf32>
    %115 = vector.extract_strided_slice %16 {offsets = [24, 0], sizes = [8, 32], strides = [1, 1]} : vector<32x32xbf16> to vector<8x32xbf16>
    %116 = arith.truncf %114 : vector<8x8xf32> to vector<8x8xbf16>
    %cst_41 = arith.constant dense<0.000000e+00> : vector<8x32xf32>
    %117 = tpu.matmul %116, %115, %cst_41 {dimension_numbers = #tpu.dot_dimension_numbers<[1], [0], [0], [1], [0, 0, 1, 1], [], []>} : vector<8x8xbf16>, vector<8x32xbf16>, vector<8x32xf32> -> vector<8x32xf32>
    %118 = arith.addf %93, %117 : vector<8x32xf32>
    %119 = arith.addf %1, %118 : vector<8x32xf32>
    %c0_42 = arith.constant 0 : index
    %c0_43 = arith.constant 0 : index
    %c0_44 = arith.constant 0 : index
    %120 = vector.load %arg12[%c0_42, %c0_43, %c0_44] : memref<1x8x32xf32, #tpu.memory_space<vmem>>, vector<1x8x32xf32>
    %121 = vector.shape_cast %120 : vector<1x8x32xf32> to vector<8x32xf32>
    %122 = vector.shape_cast %119 : vector<8x32xf32> to vector<1x8x32xf32>
    tpu.vector_store %arg12[%c0_42, %c0_43, %c0_44], %122 {strides = array<i32>} : memref<1x8x32xf32, #tpu.memory_space<vmem>>, vector<1x8x32xf32>,
    return
  }
  func.func @transform_0(%arg0: i32, %arg1: i32) -> (i32, i32, i32) {
    %c0_i32 = arith.constant 0 : i32
    %c0_i32_0 = arith.constant 0 : i32
    return %arg0, %arg1, %c0_i32 : i32, i32, i32
  }
  func.func @transform_1(%arg0: i32, %arg1: i32) -> (i32, i32, i32) {
    %c0_i32 = arith.constant 0 : i32
    %c0_i32_0 = arith.constant 0 : i32
    %c0_i32_1 = arith.constant 0 : i32
    return %arg0, %c0_i32, %c0_i32_0 : i32, i32, i32
  }
  func.func @transform_2(%arg0: i32, %arg1: i32) -> (i32, i32) {
    %c0_i32 = arith.constant 0 : i32
    %c0_i32_0 = arith.constant 0 : i32
    %c0_i32_1 = arith.constant 0 : i32
    return %c0_i32, %c0_i32_0 : i32, i32
  }
  func.func @transform_3(%arg0: i32, %arg1: i32) -> (i32, i32) {
    %c0_i32 = arith.constant 0 : i32
    %c0_i32_0 = arith.constant 0 : i32
    %c0_i32_1 = arith.constant 0 : i32
    return %c0_i32, %c0_i32_0 : i32, i32
  }
  func.func @transform_4(%arg0: i32, %arg1: i32) -> (i32, i32) {
    %c0_i32 = arith.constant 0 : i32
    %c0_i32_0 = arith.constant 0 : i32
    %c0_i32_1 = arith.constant 0 : i32
    return %c0_i32, %c0_i32_0 : i32, i32
  }
  func.func @transform_5(%arg0: i32, %arg1: i32) -> (i32, i32) {
    %c0_i32 = arith.constant 0 : i32
    %c0_i32_0 = arith.constant 0 : i32
    %c0_i32_1 = arith.constant 0 : i32
    return %c0_i32, %c0_i32_0 : i32, i32
  }
  func.func @transform_6(%arg0: i32, %arg1: i32) -> (i32, i32) {
    %c0_i32 = arith.constant 0 : i32
    %c0_i32_0 = arith.constant 0 : i32
    %c0_i32_1 = arith.constant 0 : i32
    return %c0_i32, %c0_i32_0 : i32, i32
  }
  func.func @transform_7(%arg0: i32, %arg1: i32) -> (i32, i32) {
    %c0_i32 = arith.constant 0 : i32
    %c0_i32_0 = arith.constant 0 : i32
    %c0_i32_1 = arith.constant 0 : i32
    return %c0_i32, %c0_i32_0 : i32, i32
  }
  func.func @transform_8(%arg0: i32, %arg1: i32) -> (i32, i32) {
    %c0_i32 = arith.constant 0 : i32
    %c0_i32_0 = arith.constant 0 : i32
    %c0_i32_1 = arith.constant 0 : i32
    return %c0_i32, %c0_i32_0 : i32, i32
  }
  func.func @transform_9(%arg0: i32, %arg1: i32) -> (i32, i32) {
    %c0_i32 = arith.constant 0 : i32
    %c0_i32_0 = arith.constant 0 : i32
    %c0_i32_1 = arith.constant 0 : i32
    return %c0_i32, %c0_i32_0 : i32, i32
  }
  func.func @transform_10(%arg0: i32, %arg1: i32) -> (i32, i32, i32) {
    %c0_i32 = arith.constant 0 : i32
    %c0_i32_0 = arith.constant 0 : i32
    return %arg0, %arg1, %c0_i32 : i32, i32, i32
  }
}

module attributes {stable_mosaic.version = 11 : i64} {
  func.func @_attn_block_kernel(%arg0: i32, %arg1: i32, %arg2: memref<1x8x32xf32, #tpu.memory_space<vmem>>, %arg3: memref<1x8x32xf32, #tpu.memory_space<vmem>>, %arg4: memref<32x32xbf16, #tpu.memory_space<vmem>>, %arg5: memref<1x32xf32, #tpu.memory_space<vmem>>, %arg6: memref<32x64xbf16, #tpu.memory_space<vmem>>, %arg7: memref<1x64xf32, #tpu.memory_space<vmem>>, %arg8: memref<32x32xbf16, #tpu.memory_space<vmem>>, %arg9: memref<1x32xf32, #tpu.memory_space<vmem>>, %arg10: memref<1x32xf32, #tpu.memory_space<vmem>>, %arg11: memref<1x32xf32, #tpu.memory_space<vmem>>, %arg12: memref<1x8x32xf32, #tpu.memory_space<vmem>>) attributes {dimension_semantics = [#tpu.dimension_semantics<parallel>, #tpu.dimension_semantics<parallel>], iteration_bounds = array<i64: 2, 1>, scalar_prefetch = 0 : i64, scratch_operands = 0 : i64, tpu.core_type = #tpu.core_type<tc>, window_params = [{transform_indices = @transform_0, window_bounds = array<i64: 1, 8, 32>}, {transform_indices = @transform_1, window_bounds = array<i64: 1, 8, 32>}, {pipeline_mode = #tpu.pipeline_mode<synchronous>, transform_indices = @transform_2, window_bounds = array<i64: 32, 32>}, {pipeline_mode = #tpu.pipeline_mode<synchronous>, transform_indices = @transform_3, window_bounds = array<i64: 1, 32>}, {pipeline_mode = #tpu.pipeline_mode<synchronous>, transform_indices = @transform_4, window_bounds = array<i64: 32, 64>}, {pipeline_mode = #tpu.pipeline_mode<synchronous>, transform_indices = @transform_5, window_bounds = array<i64: 1, 64>}, {pipeline_mode = #tpu.pipeline_mode<synchronous>, transform_indices = @transform_6, window_bounds = array<i64: 32, 32>}, {pipeline_mode = #tpu.pipeline_mode<synchronous>, transform_indices = @transform_7, window_bounds = array<i64: 1, 32>}, {pipeline_mode = #tpu.pipeline_mode<synchronous>, transform_indices = @transform_8, window_bounds = array<i64: 1, 32>}, {pipeline_mode = #tpu.pipeline_mode<synchronous>, transform_indices = @transform_9, window_bounds = array<i64: 1, 32>}, {transform_indices = @transform_10, window_bounds = array<i64: 1, 8, 32>}]} {
    %c0 = arith.constant 0 : index
    %c0_0 = arith.constant 0 : index
    %c0_1 = arith.constant 0 : index
    %0 = vector.load %arg2[%c0, %c0_0, %c0_1] : memref<1x8x32xf32, #tpu.memory_space<vmem>>, vector<1x8x32xf32>
    %1 = vector.shape_cast %0 : vector<1x8x32xf32> to vector<8x32xf32>
    %c0_2 = arith.constant 0 : index
    %c0_3 = arith.constant 0 : index
    %c0_4 = arith.constant 0 : index
    %2 = vector.load %arg3[%c0_2, %c0_3, %c0_4] : memref<1x8x32xf32, #tpu.memory_space<vmem>>, vector<1x8x32xf32>
    %3 = vector.shape_cast %2 : vector<1x8x32xf32> to vector<8x32xf32>
    %c0_5 = arith.constant 0 : index
    %c0_6 = arith.constant 0 : index
    %4 = vector.load %arg10[%c0_5, %c0_6] : memref<1x32xf32, #tpu.memory_space<vmem>>, vector<1x32xf32>
    %c0_7 = arith.constant 0 : index
    %c0_8 = arith.constant 0 : index
    %5 = vector.load %arg11[%c0_7, %c0_8] : memref<1x32xf32, #tpu.memory_space<vmem>>, vector<1x32xf32>
    %cst = arith.constant dense<0.000000e+00> : vector<8xf32>
    %6 = vector.multi_reduction <add>, %1, %cst [1] : vector<8x32xf32> to vector<8xf32>
    %7 = vector.shape_cast %6 : vector<8xf32> to vector<8x1xf32>
    %cst_9 = arith.constant 3.200000e+01 : f32
    %8 = vector.broadcast %cst_9 : f32 to vector<8x1xf32>
    %9 = arith.divf %7, %8 : vector<8x1xf32>
    %10 = vector.broadcast %9 : vector<8x1xf32> to vector<8x32xf32>
    %11 = arith.subf %1, %10 : vector<8x32xf32>
    %12 = arith.mulf %11, %11 : vector<8x32xf32>
    %cst_10 = arith.constant dense<0.000000e+00> : vector<8xf32>
    %13 = vector.multi_reduction <add>, %12, %cst_10 [1] : vector<8x32xf32> to vector<8xf32>
    %14 = vector.shape_cast %13 : vector<8xf32> to vector<8x1xf32>
    %cst_11 = arith.constant 3.200000e+01 : f32
    %15 = vector.broadcast %cst_11 : f32 to vector<8x1xf32>
    %16 = arith.divf %14, %15 : vector<8x1xf32>
    %17 = vector.broadcast %9 : vector<8x1xf32> to vector<8x32xf32>
    %18 = arith.subf %1, %17 : vector<8x32xf32>
    %cst_12 = arith.constant 9.99999974E-6 : f32
    %19 = vector.broadcast %cst_12 : f32 to vector<8x1xf32>
    %20 = arith.addf %16, %19 : vector<8x1xf32>
    %21 = math.rsqrt %20 : vector<8x1xf32>
    %22 = vector.broadcast %21 : vector<8x1xf32> to vector<8x32xf32>
    %23 = arith.mulf %18, %22 : vector<8x32xf32>
    %24 = vector.broadcast %4 : vector<1x32xf32> to vector<8x32xf32>
    %25 = arith.mulf %23, %24 : vector<8x32xf32>
    %26 = vector.broadcast %5 : vector<1x32xf32> to vector<8x32xf32>
    %27 = arith.addf %25, %26 : vector<8x32xf32>
    %c0_13 = arith.constant 0 : index
    %c0_14 = arith.constant 0 : index
    %28 = vector.load %arg4[%c0_13, %c0_14] : memref<32x32xbf16, #tpu.memory_space<vmem>>, vector<32x32xbf16>
    %29 = arith.truncf %27 : vector<8x32xf32> to vector<8x32xbf16>
    %cst_15 = arith.constant dense<0.000000e+00> : vector<8x32xf32>
    %30 = tpu.matmul %29, %28, %cst_15 {dimension_numbers = #tpu.dot_dimension_numbers<[1], [0], [0], [1], [0, 0, 1, 1], [], []>} : vector<8x32xbf16>, vector<32x32xbf16>, vector<8x32xf32> -> vector<8x32xf32>
    %c0_16 = arith.constant 0 : index
    %c0_17 = arith.constant 0 : index
    %31 = vector.load %arg5[%c0_16, %c0_17] : memref<1x32xf32, #tpu.memory_space<vmem>>, vector<1x32xf32>
    %32 = vector.broadcast %31 : vector<1x32xf32> to vector<8x32xf32>
    %33 = arith.addf %30, %32 : vector<8x32xf32>
    %c0_18 = arith.constant 0 : index
    %c0_19 = arith.constant 0 : index
    %34 = vector.load %arg6[%c0_18, %c0_19] : memref<32x64xbf16, #tpu.memory_space<vmem>>, vector<32x64xbf16>
    %35 = arith.truncf %3 : vector<8x32xf32> to vector<8x32xbf16>
    %cst_20 = arith.constant dense<0.000000e+00> : vector<8x64xf32>
    %36 = tpu.matmul %35, %34, %cst_20 {dimension_numbers = #tpu.dot_dimension_numbers<[1], [0], [0], [1], [0, 0, 1, 1], [], []>} : vector<8x32xbf16>, vector<32x64xbf16>, vector<8x64xf32> -> vector<8x64xf32>
    %c0_21 = arith.constant 0 : index
    %c0_22 = arith.constant 0 : index
    %37 = vector.load %arg7[%c0_21, %c0_22] : memref<1x64xf32, #tpu.memory_space<vmem>>, vector<1x64xf32>
    %38 = vector.broadcast %37 : vector<1x64xf32> to vector<8x64xf32>
    %39 = arith.addf %36, %38 : vector<8x64xf32>
    %c0_23 = arith.constant 0 : index
    %c0_24 = arith.constant 0 : index
    %40 = vector.load %arg8[%c0_23, %c0_24] : memref<32x32xbf16, #tpu.memory_space<vmem>>, vector<32x32xbf16>
    %c0_25 = arith.constant 0 : index
    %c0_26 = arith.constant 0 : index
    %41 = vector.load %arg9[%c0_25, %c0_26] : memref<1x32xf32, #tpu.memory_space<vmem>>, vector<1x32xf32>
    %42 = vector.extract_strided_slice %33 {offsets = [0, 0], sizes = [8, 8], strides = [1, 1]} : vector<8x32xf32> to vector<8x8xf32>
    %43 = vector.extract_strided_slice %39 {offsets = [0, 0], sizes = [8, 8], strides = [1, 1]} : vector<8x64xf32> to vector<8x8xf32>
    %44 = vector.extract_strided_slice %39 {offsets = [0, 32], sizes = [8, 8], strides = [1, 1]} : vector<8x64xf32> to vector<8x8xf32>
    %45 = arith.truncf %42 : vector<8x8xf32> to vector<8x8xbf16>
    %46 = arith.truncf %43 : vector<8x8xf32> to vector<8x8xbf16>
    %cst_27 = arith.constant dense<0.000000e+00> : vector<8x8xf32>
    %47 = tpu.matmul %45, %46, %cst_27 {dimension_numbers = #tpu.dot_dimension_numbers<[1], [1], [0], [0], [0, 0, 1, 0], [], []>} : vector<8x8xbf16>, vector<8x8xbf16>, vector<8x8xf32> -> vector<8x8xf32>
    %cst_28 = arith.constant 0.353553385 : f32
    %48 = vector.broadcast %cst_28 : f32 to vector<8x8xf32>
    %49 = arith.mulf %47, %48 : vector<8x8xf32>
    %cst_29 = arith.constant dense<0xFF800000> : vector<8xf32>
    %50 = vector.multi_reduction <maximumf>, %49, %cst_29 [1] : vector<8x8xf32> to vector<8xf32>
    %51 = vector.shape_cast %50 : vector<8xf32> to vector<8x1xf32>
    %52 = vector.broadcast %51 : vector<8x1xf32> to vector<8x8xf32>
    %53 = arith.subf %49, %52 : vector<8x8xf32>
    %54 = math.exp %53 : vector<8x8xf32>
    %cst_30 = arith.constant dense<0.000000e+00> : vector<8xf32>
    %55 = vector.multi_reduction <add>, %54, %cst_30 [1] : vector<8x8xf32> to vector<8xf32>
    %56 = vector.shape_cast %55 : vector<8xf32> to vector<8x1xf32>
    %57 = tpu.reciprocal %56 {approx = true} : vector<8x1xf32> -> vector<8x1xf32>
    %58 = vector.broadcast %57 : vector<8x1xf32> to vector<8x8xf32>
    %59 = arith.mulf %54, %58 : vector<8x8xf32>
    %60 = arith.truncf %44 : vector<8x8xf32> to vector<8x8xbf16>
    %61 = arith.truncf %59 : vector<8x8xf32> to vector<8x8xbf16>
    %cst_31 = arith.constant dense<0.000000e+00> : vector<8x8xf32>
    %62 = tpu.matmul %61, %60, %cst_31 {dimension_numbers = #tpu.dot_dimension_numbers<[1], [0], [0], [1], [0, 0, 1, 1], [], []>} : vector<8x8xbf16>, vector<8x8xbf16>, vector<8x8xf32> -> vector<8x8xf32>
    %63 = vector.extract_strided_slice %40 {offsets = [0, 0], sizes = [8, 32], strides = [1, 1]} : vector<32x32xbf16> to vector<8x32xbf16>
    %64 = arith.truncf %62 : vector<8x8xf32> to vector<8x8xbf16>
    %cst_32 = arith.constant dense<0.000000e+00> : vector<8x32xf32>
    %65 = tpu.matmul %64, %63, %cst_32 {dimension_numbers = #tpu.dot_dimension_numbers<[1], [0], [0], [1], [0, 0, 1, 1], [], []>} : vector<8x8xbf16>, vector<8x32xbf16>, vector<8x32xf32> -> vector<8x32xf32>
    %66 = vector.broadcast %41 : vector<1x32xf32> to vector<8x32xf32>
    %67 = arith.addf %66, %65 : vector<8x32xf32>
    %68 = vector.extract_strided_slice %33 {offsets = [0, 8], sizes = [8, 8], strides = [1, 1]} : vector<8x32xf32> to vector<8x8xf32>
    %69 = vector.extract_strided_slice %39 {offsets = [0, 8], sizes = [8, 8], strides = [1, 1]} : vector<8x64xf32> to vector<8x8xf32>
    %70 = vector.extract_strided_slice %39 {offsets = [0, 40], sizes = [8, 8], strides = [1, 1]} : vector<8x64xf32> to vector<8x8xf32>
    %71 = arith.truncf %68 : vector<8x8xf32> to vector<8x8xbf16>
    %72 = arith.truncf %69 : vector<8x8xf32> to vector<8x8xbf16>
    %cst_33 = arith.constant dense<0.000000e+00> : vector<8x8xf32>
    %73 = tpu.matmul %71, %72, %cst_33 {dimension_numbers = #tpu.dot_dimension_numbers<[1], [1], [0], [0], [0, 0, 1, 0], [], []>} : vector<8x8xbf16>, vector<8x8xbf16>, vector<8x8xf32> -> vector<8x8xf32>
    %cst_34 = arith.constant 0.353553385 : f32
    %74 = vector.broadcast %cst_34 : f32 to vector<8x8xf32>
    %75 = arith.mulf %73, %74 : vector<8x8xf32>
    %cst_35 = arith.constant dense<0xFF800000> : vector<8xf32>
    %76 = vector.multi_reduction <maximumf>, %75, %cst_35 [1] : vector<8x8xf32> to vector<8xf32>
    %77 = vector.shape_cast %76 : vector<8xf32> to vector<8x1xf32>
    %78 = vector.broadcast %77 : vector<8x1xf32> to vector<8x8xf32>
    %79 = arith.subf %75, %78 : vector<8x8xf32>
    %80 = math.exp %79 : vector<8x8xf32>
    %cst_36 = arith.constant dense<0.000000e+00> : vector<8xf32>
    %81 = vector.multi_reduction <add>, %80, %cst_36 [1] : vector<8x8xf32> to vector<8xf32>
    %82 = vector.shape_cast %81 : vector<8xf32> to vector<8x1xf32>
    %83 = tpu.reciprocal %82 {approx = true} : vector<8x1xf32> -> vector<8x1xf32>
    %84 = vector.broadcast %83 : vector<8x1xf32> to vector<8x8xf32>
    %85 = arith.mulf %80, %84 : vector<8x8xf32>
    %86 = arith.truncf %70 : vector<8x8xf32> to vector<8x8xbf16>
    %87 = arith.truncf %85 : vector<8x8xf32> to vector<8x8xbf16>
    %cst_37 = arith.constant dense<0.000000e+00> : vector<8x8xf32>
    %88 = tpu.matmul %87, %86, %cst_37 {dimension_numbers = #tpu.dot_dimension_numbers<[1], [0], [0], [1], [0, 0, 1, 1], [], []>} : vector<8x8xbf16>, vector<8x8xbf16>, vector<8x8xf32> -> vector<8x8xf32>
    %89 = vector.extract_strided_slice %40 {offsets = [8, 0], sizes = [8, 32], strides = [1, 1]} : vector<32x32xbf16> to vector<8x32xbf16>
    %90 = arith.truncf %88 : vector<8x8xf32> to vector<8x8xbf16>
    %cst_38 = arith.constant dense<0.000000e+00> : vector<8x32xf32>
    %91 = tpu.matmul %90, %89, %cst_38 {dimension_numbers = #tpu.dot_dimension_numbers<[1], [0], [0], [1], [0, 0, 1, 1], [], []>} : vector<8x8xbf16>, vector<8x32xbf16>, vector<8x32xf32> -> vector<8x32xf32>
    %92 = arith.addf %67, %91 : vector<8x32xf32>
    %93 = vector.extract_strided_slice %33 {offsets = [0, 16], sizes = [8, 8], strides = [1, 1]} : vector<8x32xf32> to vector<8x8xf32>
    %94 = vector.extract_strided_slice %39 {offsets = [0, 16], sizes = [8, 8], strides = [1, 1]} : vector<8x64xf32> to vector<8x8xf32>
    %95 = vector.extract_strided_slice %39 {offsets = [0, 48], sizes = [8, 8], strides = [1, 1]} : vector<8x64xf32> to vector<8x8xf32>
    %96 = arith.truncf %93 : vector<8x8xf32> to vector<8x8xbf16>
    %97 = arith.truncf %94 : vector<8x8xf32> to vector<8x8xbf16>
    %cst_39 = arith.constant dense<0.000000e+00> : vector<8x8xf32>
    %98 = tpu.matmul %96, %97, %cst_39 {dimension_numbers = #tpu.dot_dimension_numbers<[1], [1], [0], [0], [0, 0, 1, 0], [], []>} : vector<8x8xbf16>, vector<8x8xbf16>, vector<8x8xf32> -> vector<8x8xf32>
    %cst_40 = arith.constant 0.353553385 : f32
    %99 = vector.broadcast %cst_40 : f32 to vector<8x8xf32>
    %100 = arith.mulf %98, %99 : vector<8x8xf32>
    %cst_41 = arith.constant dense<0xFF800000> : vector<8xf32>
    %101 = vector.multi_reduction <maximumf>, %100, %cst_41 [1] : vector<8x8xf32> to vector<8xf32>
    %102 = vector.shape_cast %101 : vector<8xf32> to vector<8x1xf32>
    %103 = vector.broadcast %102 : vector<8x1xf32> to vector<8x8xf32>
    %104 = arith.subf %100, %103 : vector<8x8xf32>
    %105 = math.exp %104 : vector<8x8xf32>
    %cst_42 = arith.constant dense<0.000000e+00> : vector<8xf32>
    %106 = vector.multi_reduction <add>, %105, %cst_42 [1] : vector<8x8xf32> to vector<8xf32>
    %107 = vector.shape_cast %106 : vector<8xf32> to vector<8x1xf32>
    %108 = tpu.reciprocal %107 {approx = true} : vector<8x1xf32> -> vector<8x1xf32>
    %109 = vector.broadcast %108 : vector<8x1xf32> to vector<8x8xf32>
    %110 = arith.mulf %105, %109 : vector<8x8xf32>
    %111 = arith.truncf %95 : vector<8x8xf32> to vector<8x8xbf16>
    %112 = arith.truncf %110 : vector<8x8xf32> to vector<8x8xbf16>
    %cst_43 = arith.constant dense<0.000000e+00> : vector<8x8xf32>
    %113 = tpu.matmul %112, %111, %cst_43 {dimension_numbers = #tpu.dot_dimension_numbers<[1], [0], [0], [1], [0, 0, 1, 1], [], []>} : vector<8x8xbf16>, vector<8x8xbf16>, vector<8x8xf32> -> vector<8x8xf32>
    %114 = vector.extract_strided_slice %40 {offsets = [16, 0], sizes = [8, 32], strides = [1, 1]} : vector<32x32xbf16> to vector<8x32xbf16>
    %115 = arith.truncf %113 : vector<8x8xf32> to vector<8x8xbf16>
    %cst_44 = arith.constant dense<0.000000e+00> : vector<8x32xf32>
    %116 = tpu.matmul %115, %114, %cst_44 {dimension_numbers = #tpu.dot_dimension_numbers<[1], [0], [0], [1], [0, 0, 1, 1], [], []>} : vector<8x8xbf16>, vector<8x32xbf16>, vector<8x32xf32> -> vector<8x32xf32>
    %117 = arith.addf %92, %116 : vector<8x32xf32>
    %118 = vector.extract_strided_slice %33 {offsets = [0, 24], sizes = [8, 8], strides = [1, 1]} : vector<8x32xf32> to vector<8x8xf32>
    %119 = vector.extract_strided_slice %39 {offsets = [0, 24], sizes = [8, 8], strides = [1, 1]} : vector<8x64xf32> to vector<8x8xf32>
    %120 = vector.extract_strided_slice %39 {offsets = [0, 56], sizes = [8, 8], strides = [1, 1]} : vector<8x64xf32> to vector<8x8xf32>
    %121 = arith.truncf %118 : vector<8x8xf32> to vector<8x8xbf16>
    %122 = arith.truncf %119 : vector<8x8xf32> to vector<8x8xbf16>
    %cst_45 = arith.constant dense<0.000000e+00> : vector<8x8xf32>
    %123 = tpu.matmul %121, %122, %cst_45 {dimension_numbers = #tpu.dot_dimension_numbers<[1], [1], [0], [0], [0, 0, 1, 0], [], []>} : vector<8x8xbf16>, vector<8x8xbf16>, vector<8x8xf32> -> vector<8x8xf32>
    %cst_46 = arith.constant 0.353553385 : f32
    %124 = vector.broadcast %cst_46 : f32 to vector<8x8xf32>
    %125 = arith.mulf %123, %124 : vector<8x8xf32>
    %cst_47 = arith.constant dense<0xFF800000> : vector<8xf32>
    %126 = vector.multi_reduction <maximumf>, %125, %cst_47 [1] : vector<8x8xf32> to vector<8xf32>
    %127 = vector.shape_cast %126 : vector<8xf32> to vector<8x1xf32>
    %128 = vector.broadcast %127 : vector<8x1xf32> to vector<8x8xf32>
    %129 = arith.subf %125, %128 : vector<8x8xf32>
    %130 = math.exp %129 : vector<8x8xf32>
    %cst_48 = arith.constant dense<0.000000e+00> : vector<8xf32>
    %131 = vector.multi_reduction <add>, %130, %cst_48 [1] : vector<8x8xf32> to vector<8xf32>
    %132 = vector.shape_cast %131 : vector<8xf32> to vector<8x1xf32>
    %133 = tpu.reciprocal %132 {approx = true} : vector<8x1xf32> -> vector<8x1xf32>
    %134 = vector.broadcast %133 : vector<8x1xf32> to vector<8x8xf32>
    %135 = arith.mulf %130, %134 : vector<8x8xf32>
    %136 = arith.truncf %120 : vector<8x8xf32> to vector<8x8xbf16>
    %137 = arith.truncf %135 : vector<8x8xf32> to vector<8x8xbf16>
    %cst_49 = arith.constant dense<0.000000e+00> : vector<8x8xf32>
    %138 = tpu.matmul %137, %136, %cst_49 {dimension_numbers = #tpu.dot_dimension_numbers<[1], [0], [0], [1], [0, 0, 1, 1], [], []>} : vector<8x8xbf16>, vector<8x8xbf16>, vector<8x8xf32> -> vector<8x8xf32>
    %139 = vector.extract_strided_slice %40 {offsets = [24, 0], sizes = [8, 32], strides = [1, 1]} : vector<32x32xbf16> to vector<8x32xbf16>
    %140 = arith.truncf %138 : vector<8x8xf32> to vector<8x8xbf16>
    %cst_50 = arith.constant dense<0.000000e+00> : vector<8x32xf32>
    %141 = tpu.matmul %140, %139, %cst_50 {dimension_numbers = #tpu.dot_dimension_numbers<[1], [0], [0], [1], [0, 0, 1, 1], [], []>} : vector<8x8xbf16>, vector<8x32xbf16>, vector<8x32xf32> -> vector<8x32xf32>
    %142 = arith.addf %117, %141 : vector<8x32xf32>
    %143 = arith.addf %1, %142 : vector<8x32xf32>
    %c0_51 = arith.constant 0 : index
    %c0_52 = arith.constant 0 : index
    %c0_53 = arith.constant 0 : index
    %144 = vector.load %arg12[%c0_51, %c0_52, %c0_53] : memref<1x8x32xf32, #tpu.memory_space<vmem>>, vector<1x8x32xf32>
    %145 = vector.shape_cast %144 : vector<1x8x32xf32> to vector<8x32xf32>
    %146 = vector.shape_cast %143 : vector<8x32xf32> to vector<1x8x32xf32>
    tpu.vector_store %arg12[%c0_51, %c0_52, %c0_53], %146 {strides = array<i32>} : memref<1x8x32xf32, #tpu.memory_space<vmem>>, vector<1x8x32xf32>,
    return
  }
  func.func @transform_0(%arg0: i32, %arg1: i32) -> (i32, i32, i32) {
    %c0_i32 = arith.constant 0 : i32
    %c0_i32_0 = arith.constant 0 : i32
    return %arg0, %arg1, %c0_i32 : i32, i32, i32
  }
  func.func @transform_1(%arg0: i32, %arg1: i32) -> (i32, i32, i32) {
    %c0_i32 = arith.constant 0 : i32
    %c0_i32_0 = arith.constant 0 : i32
    %c0_i32_1 = arith.constant 0 : i32
    return %arg0, %c0_i32, %c0_i32_0 : i32, i32, i32
  }
  func.func @transform_2(%arg0: i32, %arg1: i32) -> (i32, i32) {
    %c0_i32 = arith.constant 0 : i32
    %c0_i32_0 = arith.constant 0 : i32
    %c0_i32_1 = arith.constant 0 : i32
    return %c0_i32, %c0_i32_0 : i32, i32
  }
  func.func @transform_3(%arg0: i32, %arg1: i32) -> (i32, i32) {
    %c0_i32 = arith.constant 0 : i32
    %c0_i32_0 = arith.constant 0 : i32
    %c0_i32_1 = arith.constant 0 : i32
    return %c0_i32, %c0_i32_0 : i32, i32
  }
  func.func @transform_4(%arg0: i32, %arg1: i32) -> (i32, i32) {
    %c0_i32 = arith.constant 0 : i32
    %c0_i32_0 = arith.constant 0 : i32
    %c0_i32_1 = arith.constant 0 : i32
    return %c0_i32, %c0_i32_0 : i32, i32
  }
  func.func @transform_5(%arg0: i32, %arg1: i32) -> (i32, i32) {
    %c0_i32 = arith.constant 0 : i32
    %c0_i32_0 = arith.constant 0 : i32
    %c0_i32_1 = arith.constant 0 : i32
    return %c0_i32, %c0_i32_0 : i32, i32
  }
  func.func @transform_6(%arg0: i32, %arg1: i32) -> (i32, i32) {
    %c0_i32 = arith.constant 0 : i32
    %c0_i32_0 = arith.constant 0 : i32
    %c0_i32_1 = arith.constant 0 : i32
    return %c0_i32, %c0_i32_0 : i32, i32
  }
  func.func @transform_7(%arg0: i32, %arg1: i32) -> (i32, i32) {
    %c0_i32 = arith.constant 0 : i32
    %c0_i32_0 = arith.constant 0 : i32
    %c0_i32_1 = arith.constant 0 : i32
    return %c0_i32, %c0_i32_0 : i32, i32
  }
  func.func @transform_8(%arg0: i32, %arg1: i32) -> (i32, i32) {
    %c0_i32 = arith.constant 0 : i32
    %c0_i32_0 = arith.constant 0 : i32
    %c0_i32_1 = arith.constant 0 : i32
    return %c0_i32, %c0_i32_0 : i32, i32
  }
  func.func @transform_9(%arg0: i32, %arg1: i32) -> (i32, i32) {
    %c0_i32 = arith.constant 0 : i32
    %c0_i32_0 = arith.constant 0 : i32
    %c0_i32_1 = arith.constant 0 : i32
    return %c0_i32, %c0_i32_0 : i32, i32
  }
  func.func @transform_10(%arg0: i32, %arg1: i32) -> (i32, i32, i32) {
    %c0_i32 = arith.constant 0 : i32
    %c0_i32_0 = arith.constant 0 : i32
    return %arg0, %arg1, %c0_i32 : i32, i32, i32
  }
}

module attributes {stable_mosaic.version = 11 : i64} {
  func.func @_final_ln_kernel(%arg0: i32, %arg1: i32, %arg2: memref<1x8x32xf32, #tpu.memory_space<vmem>>, %arg3: memref<1x32xf32, #tpu.memory_space<vmem>>, %arg4: memref<1x32xf32, #tpu.memory_space<vmem>>, %arg5: memref<1x8x32xf32, #tpu.memory_space<vmem>>) attributes {dimension_semantics = [#tpu.dimension_semantics<parallel>, #tpu.dimension_semantics<parallel>], iteration_bounds = array<i64: 2, 1>, scalar_prefetch = 0 : i64, scratch_operands = 0 : i64, tpu.core_type = #tpu.core_type<tc>, window_params = [{transform_indices = @transform_0, window_bounds = array<i64: 1, 8, 32>}, {pipeline_mode = #tpu.pipeline_mode<synchronous>, transform_indices = @transform_1, window_bounds = array<i64: 1, 32>}, {pipeline_mode = #tpu.pipeline_mode<synchronous>, transform_indices = @transform_2, window_bounds = array<i64: 1, 32>}, {transform_indices = @transform_3, window_bounds = array<i64: 1, 8, 32>}]} {
    %c0 = arith.constant 0 : index
    %c0_0 = arith.constant 0 : index
    %c0_1 = arith.constant 0 : index
    %0 = vector.load %arg2[%c0, %c0_0, %c0_1] : memref<1x8x32xf32, #tpu.memory_space<vmem>>, vector<1x8x32xf32>
    %1 = vector.shape_cast %0 : vector<1x8x32xf32> to vector<8x32xf32>
    %c0_2 = arith.constant 0 : index
    %c0_3 = arith.constant 0 : index
    %2 = vector.load %arg3[%c0_2, %c0_3] : memref<1x32xf32, #tpu.memory_space<vmem>>, vector<1x32xf32>
    %c0_4 = arith.constant 0 : index
    %c0_5 = arith.constant 0 : index
    %3 = vector.load %arg4[%c0_4, %c0_5] : memref<1x32xf32, #tpu.memory_space<vmem>>, vector<1x32xf32>
    %cst = arith.constant dense<0.000000e+00> : vector<8xf32>
    %4 = vector.multi_reduction <add>, %1, %cst [1] : vector<8x32xf32> to vector<8xf32>
    %5 = vector.shape_cast %4 : vector<8xf32> to vector<8x1xf32>
    %cst_6 = arith.constant 3.200000e+01 : f32
    %6 = vector.broadcast %cst_6 : f32 to vector<8x1xf32>
    %7 = arith.divf %5, %6 : vector<8x1xf32>
    %8 = vector.broadcast %7 : vector<8x1xf32> to vector<8x32xf32>
    %9 = arith.subf %1, %8 : vector<8x32xf32>
    %10 = arith.mulf %9, %9 : vector<8x32xf32>
    %cst_7 = arith.constant dense<0.000000e+00> : vector<8xf32>
    %11 = vector.multi_reduction <add>, %10, %cst_7 [1] : vector<8x32xf32> to vector<8xf32>
    %12 = vector.shape_cast %11 : vector<8xf32> to vector<8x1xf32>
    %cst_8 = arith.constant 3.200000e+01 : f32
    %13 = vector.broadcast %cst_8 : f32 to vector<8x1xf32>
    %14 = arith.divf %12, %13 : vector<8x1xf32>
    %15 = vector.broadcast %7 : vector<8x1xf32> to vector<8x32xf32>
    %16 = arith.subf %1, %15 : vector<8x32xf32>
    %cst_9 = arith.constant 9.99999974E-6 : f32
    %17 = vector.broadcast %cst_9 : f32 to vector<8x1xf32>
    %18 = arith.addf %14, %17 : vector<8x1xf32>
    %19 = math.rsqrt %18 : vector<8x1xf32>
    %20 = vector.broadcast %19 : vector<8x1xf32> to vector<8x32xf32>
    %21 = arith.mulf %16, %20 : vector<8x32xf32>
    %22 = vector.broadcast %2 : vector<1x32xf32> to vector<8x32xf32>
    %23 = arith.mulf %21, %22 : vector<8x32xf32>
    %24 = vector.broadcast %3 : vector<1x32xf32> to vector<8x32xf32>
    %25 = arith.addf %23, %24 : vector<8x32xf32>
    %c0_10 = arith.constant 0 : index
    %c0_11 = arith.constant 0 : index
    %c0_12 = arith.constant 0 : index
    %26 = vector.load %arg5[%c0_10, %c0_11, %c0_12] : memref<1x8x32xf32, #tpu.memory_space<vmem>>, vector<1x8x32xf32>
    %27 = vector.shape_cast %26 : vector<1x8x32xf32> to vector<8x32xf32>
    %28 = vector.shape_cast %25 : vector<8x32xf32> to vector<1x8x32xf32>
    tpu.vector_store %arg5[%c0_10, %c0_11, %c0_12], %28 {strides = array<i32>} : memref<1x8x32xf32, #tpu.memory_space<vmem>>, vector<1x8x32xf32>,
    return
  }
  func.func @transform_0(%arg0: i32, %arg1: i32) -> (i32, i32, i32) {
    %c0_i32 = arith.constant 0 : i32
    %c0_i32_0 = arith.constant 0 : i32
    return %arg0, %arg1, %c0_i32 : i32, i32, i32
  }
  func.func @transform_1(%arg0: i32, %arg1: i32) -> (i32, i32) {
    %c0_i32 = arith.constant 0 : i32
    %c0_i32_0 = arith.constant 0 : i32
    %c0_i32_1 = arith.constant 0 : i32
    return %c0_i32, %c0_i32_0 : i32, i32
  }
  func.func @transform_2(%arg0: i32, %arg1: i32) -> (i32, i32) {
    %c0_i32 = arith.constant 0 : i32
    %c0_i32_0 = arith.constant 0 : i32
    %c0_i32_1 = arith.constant 0 : i32
    return %c0_i32, %c0_i32_0 : i32, i32
  }
  func.func @transform_3(%arg0: i32, %arg1: i32) -> (i32, i32, i32) {
    %c0_i32 = arith.constant 0 : i32
    %c0_i32_0 = arith.constant 0 : i32
    return %arg0, %arg1, %c0_i32 : i32, i32, i32
  }
}

module attributes {stable_mosaic.version = 11 : i64} {
  func.func @_ffn_kernel(%arg0: i32, %arg1: i32, %arg2: memref<1x8x32xf32, #tpu.memory_space<vmem>>, %arg3: memref<1x32xf32, #tpu.memory_space<vmem>>, %arg4: memref<1x32xf32, #tpu.memory_space<vmem>>, %arg5: memref<32x64xbf16, #tpu.memory_space<vmem>>, %arg6: memref<1x64xf32, #tpu.memory_space<vmem>>, %arg7: memref<64x32xbf16, #tpu.memory_space<vmem>>, %arg8: memref<1x32xf32, #tpu.memory_space<vmem>>, %arg9: memref<1x32xf32, #tpu.memory_space<vmem>>, %arg10: memref<1x32xf32, #tpu.memory_space<vmem>>, %arg11: memref<1x8x32xf32, #tpu.memory_space<vmem>>) attributes {dimension_semantics = [#tpu.dimension_semantics<parallel>, #tpu.dimension_semantics<parallel>], iteration_bounds = array<i64: 2, 1>, scalar_prefetch = 0 : i64, scratch_operands = 0 : i64, tpu.core_type = #tpu.core_type<tc>, window_params = [{transform_indices = @transform_0, window_bounds = array<i64: 1, 8, 32>}, {pipeline_mode = #tpu.pipeline_mode<synchronous>, transform_indices = @transform_1, window_bounds = array<i64: 1, 32>}, {pipeline_mode = #tpu.pipeline_mode<synchronous>, transform_indices = @transform_2, window_bounds = array<i64: 1, 32>}, {pipeline_mode = #tpu.pipeline_mode<synchronous>, transform_indices = @transform_3, window_bounds = array<i64: 32, 64>}, {pipeline_mode = #tpu.pipeline_mode<synchronous>, transform_indices = @transform_4, window_bounds = array<i64: 1, 64>}, {pipeline_mode = #tpu.pipeline_mode<synchronous>, transform_indices = @transform_5, window_bounds = array<i64: 64, 32>}, {pipeline_mode = #tpu.pipeline_mode<synchronous>, transform_indices = @transform_6, window_bounds = array<i64: 1, 32>}, {pipeline_mode = #tpu.pipeline_mode<synchronous>, transform_indices = @transform_7, window_bounds = array<i64: 1, 32>}, {pipeline_mode = #tpu.pipeline_mode<synchronous>, transform_indices = @transform_8, window_bounds = array<i64: 1, 32>}, {transform_indices = @transform_9, window_bounds = array<i64: 1, 8, 32>}]} {
    %c0 = arith.constant 0 : index
    %c0_0 = arith.constant 0 : index
    %c0_1 = arith.constant 0 : index
    %0 = vector.load %arg2[%c0, %c0_0, %c0_1] : memref<1x8x32xf32, #tpu.memory_space<vmem>>, vector<1x8x32xf32>
    %1 = vector.shape_cast %0 : vector<1x8x32xf32> to vector<8x32xf32>
    %c0_2 = arith.constant 0 : index
    %c0_3 = arith.constant 0 : index
    %2 = vector.load %arg3[%c0_2, %c0_3] : memref<1x32xf32, #tpu.memory_space<vmem>>, vector<1x32xf32>
    %c0_4 = arith.constant 0 : index
    %c0_5 = arith.constant 0 : index
    %3 = vector.load %arg4[%c0_4, %c0_5] : memref<1x32xf32, #tpu.memory_space<vmem>>, vector<1x32xf32>
    %cst = arith.constant dense<0.000000e+00> : vector<8xf32>
    %4 = vector.multi_reduction <add>, %1, %cst [1] : vector<8x32xf32> to vector<8xf32>
    %5 = vector.shape_cast %4 : vector<8xf32> to vector<8x1xf32>
    %cst_6 = arith.constant 3.200000e+01 : f32
    %6 = vector.broadcast %cst_6 : f32 to vector<8x1xf32>
    %7 = arith.divf %5, %6 : vector<8x1xf32>
    %8 = vector.broadcast %7 : vector<8x1xf32> to vector<8x32xf32>
    %9 = arith.subf %1, %8 : vector<8x32xf32>
    %10 = arith.mulf %9, %9 : vector<8x32xf32>
    %cst_7 = arith.constant dense<0.000000e+00> : vector<8xf32>
    %11 = vector.multi_reduction <add>, %10, %cst_7 [1] : vector<8x32xf32> to vector<8xf32>
    %12 = vector.shape_cast %11 : vector<8xf32> to vector<8x1xf32>
    %cst_8 = arith.constant 3.200000e+01 : f32
    %13 = vector.broadcast %cst_8 : f32 to vector<8x1xf32>
    %14 = arith.divf %12, %13 : vector<8x1xf32>
    %15 = vector.broadcast %7 : vector<8x1xf32> to vector<8x32xf32>
    %16 = arith.subf %1, %15 : vector<8x32xf32>
    %cst_9 = arith.constant 9.99999974E-6 : f32
    %17 = vector.broadcast %cst_9 : f32 to vector<8x1xf32>
    %18 = arith.addf %14, %17 : vector<8x1xf32>
    %19 = math.rsqrt %18 : vector<8x1xf32>
    %20 = vector.broadcast %19 : vector<8x1xf32> to vector<8x32xf32>
    %21 = arith.mulf %16, %20 : vector<8x32xf32>
    %22 = vector.broadcast %2 : vector<1x32xf32> to vector<8x32xf32>
    %23 = arith.mulf %21, %22 : vector<8x32xf32>
    %24 = vector.broadcast %3 : vector<1x32xf32> to vector<8x32xf32>
    %25 = arith.addf %23, %24 : vector<8x32xf32>
    %c0_10 = arith.constant 0 : index
    %c0_11 = arith.constant 0 : index
    %26 = vector.load %arg5[%c0_10, %c0_11] : memref<32x64xbf16, #tpu.memory_space<vmem>>, vector<32x64xbf16>
    %27 = arith.truncf %25 : vector<8x32xf32> to vector<8x32xbf16>
    %cst_12 = arith.constant dense<0.000000e+00> : vector<8x64xf32>
    %28 = tpu.matmul %27, %26, %cst_12 {dimension_numbers = #tpu.dot_dimension_numbers<[1], [0], [0], [1], [0, 0, 1, 1], [], []>} : vector<8x32xbf16>, vector<32x64xbf16>, vector<8x64xf32> -> vector<8x64xf32>
    %c0_13 = arith.constant 0 : index
    %c0_14 = arith.constant 0 : index
    %29 = vector.load %arg6[%c0_13, %c0_14] : memref<1x64xf32, #tpu.memory_space<vmem>>, vector<1x64xf32>
    %30 = vector.broadcast %29 : vector<1x64xf32> to vector<8x64xf32>
    %31 = arith.addf %28, %30 : vector<8x64xf32>
    %cst_15 = arith.constant 0.000000e+00 : f32
    %32 = vector.broadcast %cst_15 : f32 to vector<8x64xf32>
    %33 = arith.maximumf %31, %32 : vector<8x64xf32>
    %c0_16 = arith.constant 0 : index
    %c0_17 = arith.constant 0 : index
    %34 = vector.load %arg7[%c0_16, %c0_17] : memref<64x32xbf16, #tpu.memory_space<vmem>>, vector<64x32xbf16>
    %35 = arith.truncf %33 : vector<8x64xf32> to vector<8x64xbf16>
    %cst_18 = arith.constant dense<0.000000e+00> : vector<8x32xf32>
    %36 = tpu.matmul %35, %34, %cst_18 {dimension_numbers = #tpu.dot_dimension_numbers<[1], [0], [0], [1], [0, 0, 1, 1], [], []>} : vector<8x64xbf16>, vector<64x32xbf16>, vector<8x32xf32> -> vector<8x32xf32>
    %c0_19 = arith.constant 0 : index
    %c0_20 = arith.constant 0 : index
    %37 = vector.load %arg8[%c0_19, %c0_20] : memref<1x32xf32, #tpu.memory_space<vmem>>, vector<1x32xf32>
    %38 = vector.broadcast %37 : vector<1x32xf32> to vector<8x32xf32>
    %39 = arith.addf %36, %38 : vector<8x32xf32>
    %40 = arith.addf %25, %39 : vector<8x32xf32>
    %c0_21 = arith.constant 0 : index
    %c0_22 = arith.constant 0 : index
    %41 = vector.load %arg9[%c0_21, %c0_22] : memref<1x32xf32, #tpu.memory_space<vmem>>, vector<1x32xf32>
    %c0_23 = arith.constant 0 : index
    %c0_24 = arith.constant 0 : index
    %42 = vector.load %arg10[%c0_23, %c0_24] : memref<1x32xf32, #tpu.memory_space<vmem>>, vector<1x32xf32>
    %cst_25 = arith.constant dense<0.000000e+00> : vector<8xf32>
    %43 = vector.multi_reduction <add>, %40, %cst_25 [1] : vector<8x32xf32> to vector<8xf32>
    %44 = vector.shape_cast %43 : vector<8xf32> to vector<8x1xf32>
    %cst_26 = arith.constant 3.200000e+01 : f32
    %45 = vector.broadcast %cst_26 : f32 to vector<8x1xf32>
    %46 = arith.divf %44, %45 : vector<8x1xf32>
    %47 = vector.broadcast %46 : vector<8x1xf32> to vector<8x32xf32>
    %48 = arith.subf %40, %47 : vector<8x32xf32>
    %49 = arith.mulf %48, %48 : vector<8x32xf32>
    %cst_27 = arith.constant dense<0.000000e+00> : vector<8xf32>
    %50 = vector.multi_reduction <add>, %49, %cst_27 [1] : vector<8x32xf32> to vector<8xf32>
    %51 = vector.shape_cast %50 : vector<8xf32> to vector<8x1xf32>
    %cst_28 = arith.constant 3.200000e+01 : f32
    %52 = vector.broadcast %cst_28 : f32 to vector<8x1xf32>
    %53 = arith.divf %51, %52 : vector<8x1xf32>
    %54 = vector.broadcast %46 : vector<8x1xf32> to vector<8x32xf32>
    %55 = arith.subf %40, %54 : vector<8x32xf32>
    %cst_29 = arith.constant 9.99999974E-6 : f32
    %56 = vector.broadcast %cst_29 : f32 to vector<8x1xf32>
    %57 = arith.addf %53, %56 : vector<8x1xf32>
    %58 = math.rsqrt %57 : vector<8x1xf32>
    %59 = vector.broadcast %58 : vector<8x1xf32> to vector<8x32xf32>
    %60 = arith.mulf %55, %59 : vector<8x32xf32>
    %61 = vector.broadcast %41 : vector<1x32xf32> to vector<8x32xf32>
    %62 = arith.mulf %60, %61 : vector<8x32xf32>
    %63 = vector.broadcast %42 : vector<1x32xf32> to vector<8x32xf32>
    %64 = arith.addf %62, %63 : vector<8x32xf32>
    %c0_30 = arith.constant 0 : index
    %c0_31 = arith.constant 0 : index
    %c0_32 = arith.constant 0 : index
    %65 = vector.load %arg11[%c0_30, %c0_31, %c0_32] : memref<1x8x32xf32, #tpu.memory_space<vmem>>, vector<1x8x32xf32>
    %66 = vector.shape_cast %65 : vector<1x8x32xf32> to vector<8x32xf32>
    %67 = vector.shape_cast %64 : vector<8x32xf32> to vector<1x8x32xf32>
    tpu.vector_store %arg11[%c0_30, %c0_31, %c0_32], %67 {strides = array<i32>} : memref<1x8x32xf32, #tpu.memory_space<vmem>>, vector<1x8x32xf32>,
    return
  }
  func.func @transform_0(%arg0: i32, %arg1: i32) -> (i32, i32, i32) {
    %c0_i32 = arith.constant 0 : i32
    %c0_i32_0 = arith.constant 0 : i32
    return %arg0, %arg1, %c0_i32 : i32, i32, i32
  }
  func.func @transform_1(%arg0: i32, %arg1: i32) -> (i32, i32) {
    %c0_i32 = arith.constant 0 : i32
    %c0_i32_0 = arith.constant 0 : i32
    %c0_i32_1 = arith.constant 0 : i32
    return %c0_i32, %c0_i32_0 : i32, i32
  }
  func.func @transform_2(%arg0: i32, %arg1: i32) -> (i32, i32) {
    %c0_i32 = arith.constant 0 : i32
    %c0_i32_0 = arith.constant 0 : i32
    %c0_i32_1 = arith.constant 0 : i32
    return %c0_i32, %c0_i32_0 : i32, i32
  }
  func.func @transform_3(%arg0: i32, %arg1: i32) -> (i32, i32) {
    %c0_i32 = arith.constant 0 : i32
    %c0_i32_0 = arith.constant 0 : i32
    %c0_i32_1 = arith.constant 0 : i32
    return %c0_i32, %c0_i32_0 : i32, i32
  }
  func.func @transform_4(%arg0: i32, %arg1: i32) -> (i32, i32) {
    %c0_i32 = arith.constant 0 : i32
    %c0_i32_0 = arith.constant 0 : i32
    %c0_i32_1 = arith.constant 0 : i32
    return %c0_i32, %c0_i32_0 : i32, i32
  }
  func.func @transform_5(%arg0: i32, %arg1: i32) -> (i32, i32) {
    %c0_i32 = arith.constant 0 : i32
    %c0_i32_0 = arith.constant 0 : i32
    %c0_i32_1 = arith.constant 0 : i32
    return %c0_i32, %c0_i32_0 : i32, i32
  }
  func.func @transform_6(%arg0: i32, %arg1: i32) -> (i32, i32) {
    %c0_i32 = arith.constant 0 : i32
    %c0_i32_0 = arith.constant 0 : i32
    %c0_i32_1 = arith.constant 0 : i32
    return %c0_i32, %c0_i32_0 : i32, i32
  }
  func.func @transform_7(%arg0: i32, %arg1: i32) -> (i32, i32) {
    %c0_i32 = arith.constant 0 : i32
    %c0_i32_0 = arith.constant 0 : i32
    %c0_i32_1 = arith.constant 0 : i32
    return %c0_i32, %c0_i32_0 : i32, i32
  }
  func.func @transform_8(%arg0: i32, %arg1: i32) -> (i32, i32) {
    %c0_i32 = arith.constant 0 : i32
    %c0_i32_0 = arith.constant 0 : i32
    %c0_i32_1 = arith.constant 0 : i32
    return %c0_i32, %c0_i32_0 : i32, i32
  }
  func.func @transform_9(%arg0: i32, %arg1: i32) -> (i32, i32, i32) {
    %c0_i32 = arith.constant 0 : i32
    %c0_i32_0 = arith.constant 0 : i32
    return %arg0, %arg1, %c0_i32 : i32, i32, i32
  }
}

</mosaic_0001>

<bundles_post_ra>
// kernel: transformer_decoder.8
= control target key start
LH: loop header
LB: loop body
LE: loop exit
PB: predicated region body
PF: predicated region fallthrough
CT: control target
= control target key end

     0   :  { %s1894_s0 = inlined_call_operand.vmem [shape: f32[2,8,32], index: 0, kind: input, shape index: {}]   ;;  %s1895_s1 = inlined_call_operand.hbm [shape: f32[2,8,32], index: 1, kind: input, shape index: {}]   ;;  %s1896_s2 = inlined_call_operand.hbm [shape: bf16[32,32], index: 2, kind: input, shape index: {}]   ;;  %s1897_s3 = inlined_call_operand.hbm [shape: f32[1,32], index: 3, kind: input, shape index: {}]   ;;  %s1898_s4 = inlined_call_operand.hbm [shape: bf16[32,64], index: 4, kind: input, shape index: {}]   ;;  %s1899_s5 = inlined_call_operand.hbm [shape: f32[1,64], index: 5, kind: input, shape index: {}]   ;;  %s1900_s6 = inlined_call_operand.hbm [shape: bf16[32,32], index: 6, kind: input, shape index: {}]   ;;  %s1901_s7 = inlined_call_operand.hbm [shape: f32[1,32], index: 7, kind: input, shape index: {}]   ;;  %s1902_s8 = inlined_call_operand.vmem [shape: f32[1,32], index: 8, kind: input, shape index: {}]   ;;  %s1903_s9 = inlined_call_operand.vmem [shape: f32[1,32], index: 9, kind: input, shape index: {}]   ;;  %s1904_s10 = inlined_call_operand.vmem [shape: f32[2,8,32], index: 10, kind: output, shape index: {}]  }
   0x1   :  { %1905 = sst [smem:[#allocation17_spill]] %s1896_s2 }
   0x2   :  { %1906 = sst [smem:[#allocation18_spill]] %s1898_s4 }
   0x3   :  { %1907 = sst [smem:[#allocation19_spill]] %s1903_s9 }
   0x4   :  { %1908 = sst [smem:[#allocation20_spill]] %s1904_s10 }
   0x5   :  { %15 = vsyncpa [#allocation3], 0 }
   0x6   :  { %17 = vsyncpa [#allocation3 + $0x1], 0 }
   0x7   :  { %18 = vsyncpa [#allocation5], 0 }
   0x8   :  { %19 = vsyncpa [#allocation8], 0 }
   0x9   :  { %20 = vsyncpa [#allocation11], 0  ;;  %s1668_s13 = smov 0   ;;  %s1670_s14 = smov 0  }
   0xa   :  { %s1672_s15 = smov 0   ;;  %s1674_s16 = smov 0  }
   0xb   :  { %s1676_s17 = smov 0   ;;  %s1678_s18 = smov 0  }
   0xc LB: > { %s1114_s19 = sadd.s32 4294967295, %s1595_s18   ;;  %p1116_p0 = scmp.ge.s32.totalorder %s1595_s18, 1  ;;  %s1595_s18 = sphi %s1678_s18, %s26_s18   ;;  %s1591_s17 = sphi %s1676_s17, %s1922_s17   ;;  %s1587_s16 = sphi %s1674_s16, %s1921_s16   ;;  %s1583_s15 = sphi %s1672_s15, %s1920_s15   ;;  %s1579_s14 = sphi %s1670_s14, %s1919_s14   ;;  %s1575_s13 = sphi %s1668_s13, %s1918_s13  }
   0xd   : > { %p1700_p1 = scmp.eq.s32.totalorder %s1114_s19, 0  ;;  %p293_p2 = scmp.lt.s32.totalorder %s1595_s18, 3 }
   0xe   : > { %s1910_s2 = sld [smem:[#allocation17_spill]]  ;;  %s1597_s25 = smov [#allocation4]  }
   0xf   : > { %p1708_p3 = pnand %p1116_p0, %p293_p2  ;;  %s306_s26 = sshll.u32 %s1597_s25, 4  ;;  %s307_s26 = int_to_ptr.vmem [resolvable:$true] %s306_s26 }
  0x10   : > { %s1913_s4 = sld [smem:[#allocation18_spill]]  ;;  %s1598_s11 = smov 64  }
  0x11   : > { %p1198_p4 = pneg %p1708_p3  ;;  %s1599_s12 = smov 4  }
  0x12   : > { %s1600_s19 = smov [#allocation7]   ;;  %s1601_s10 = smov [#allocation10]  }
  0x13   : > { %p1716_p5 = pnand %p1198_p4, %p1700_p1  ;;  %s332_s21 = sshll.u32 %s1600_s19, 4  ;;  %s333_s21 = int_to_ptr.vmem [resolvable:$true] %s332_s21 }
  0x14   : > { %s304_s23 = sshll.u32 %s1910_s2, 4  ;;  %s356_s2 = sshll.u32 %s1900_s6, 4  ;;  %s305_s23 = int_to_ptr.hbm [resolvable:$true] %s304_s23  ;;  %s357_s2 = int_to_ptr.hbm [resolvable:$true] %s356_s2 }
  0x15   : > { %1201 = dma.hbm_to_vmem [thread:$0]  (!%p1716_p5), %s305_s23, 256, %s307_s26, [#allocation5], %s1598_s11, %s1598_s11, %s1599_s12  }
  0x16   : > { %s330_s30 = sshll.u32 %s1913_s4, 4  ;;  %s319_s4 = sshll.u32 %s1897_s3, 4  ;;  %s331_s30 = int_to_ptr.hbm [resolvable:$true] %s330_s30  ;;  %s320_s4 = int_to_ptr.hbm [resolvable:$true] %s319_s4 }
  0x17   : > { %1207 = dma.hbm_to_vmem [thread:$0]  (!%p1716_p5), %s331_s30, 256, %s333_s21, [#allocation8], %s1598_s11, %s1598_s11, %s1599_s12  }
  0x18   : > { %s358_s9 = sshll.u32 %s1601_s10, 4  ;;  %s1602_s23 = smov [#allocation6]   ;;  %s359_s9 = int_to_ptr.vmem [resolvable:$true] %s358_s9 }
  0x19   : > { %1213 = dma.hbm_to_vmem [thread:$0]  (!%p1716_p5), %s357_s2, 256, %s359_s9, [#allocation11], %s1598_s11, %s1598_s11, %s1599_s12  }
  0x1a   : > { %s321_s26 = sshll.u32 %s1602_s23, 4  ;;  %s345_s30 = sshll.u32 %s1899_s5, 4  ;;  %s322_s26 = int_to_ptr.vmem [resolvable:$true] %s321_s26  ;;  %s346_s30 = int_to_ptr.hbm [resolvable:$true] %s345_s30 }
  0x1b   : > { %1204 = dma.hbm_to_vmem [thread:$0]  (!%p1716_p5), %s320_s4, 16, %s322_s26, [#allocation5]  }
  0x1c   : > { %s371_s2 = sshll.u32 %s1901_s7, 4  ;;  %s1603_s9 = smov [#allocation9]   ;;  %s372_s2 = int_to_ptr.hbm [resolvable:$true] %s371_s2 }
  0x1d   : > { %s347_s11 = sshll.u32 %s1603_s9, 4  ;;  %s1604_s12 = smov [#allocation12]   ;;  %s348_s11 = int_to_ptr.vmem [resolvable:$true] %s347_s11 }
  0x1e   : > { %1210 = dma.hbm_to_vmem [thread:$0]  (!%p1716_p5), %s346_s30, 16, %s348_s11, [#allocation8]  }
  0x1f   : > { %s373_s25 = sshll.u32 %s1604_s12, 4  ;;  %s38_s4 = sadd.s32 1, %s1591_s17  ;;  %s374_s25 = int_to_ptr.vmem [resolvable:$true] %s373_s25 }
  0x20   : > { %1216 = dma.hbm_to_vmem [thread:$0]  (!%p1716_p5), %s372_s2, 16, %s374_s25, [#allocation11]  }
  0x21   : > { %s73_s28 = sadd.s32 1, %s1583_s15  ;;  %p40_p6 = scmp.ge.s32.totalorder %s38_s4, 2 }
  0x22   : > { %p80_p7 = scmp.ne.s32.totalorder %s1583_s15, %s1579_s14  ;;  %p81_p8 = scmp.eq.s32.totalorder %s1595_s18, 0 }
  0x23   : > { %p86_p9 = scmp.ne.s32.totalorder %s1579_s14, %s1575_s13  ;;  %s1924_s4 = smov (%p40_p6, %s38_s4), 0 }
  0x24   : > { %p1756_p10 = por %p81_p8, %p80_p7  ;;  %s70_s23 = ssub.s32 %s1591_s17, %s1924_s4 }
  0x25   : > { %p1762_p11 = por %p1700_p1, %p86_p9  ;;  %p1227_p12 = scmp.lt.s32.totalorder %s1595_s18, 2 }
  0x26   : > { %p71_p13 = scmp.eq.s32.totalorder %s70_s23, 0  ;;  %s400_s26 = sand.u32 1, %s1583_s15  }
  0x27   : > { %s1124_s19 = sshll.u32 %s400_s26, 3  ;;  %s1125_s13 = sshll.u32 %s1591_s17, 3 }
  0x28   : > { %s1771_s22 = scalar_select %p71_p13, %s1583_s15, %s73_s28  }
  0x29   : > { %s408_s21 = scalar_lea.hbm %s1895_s1, %s1125_s13  ;;  %s404_s2 = scalar_lea.vmem [#allocation2], %s1124_s19 }
  0x2a   : > { %s412_s9 = sshll.u32 %s404_s2, 4  ;;  %s410_s11 = sshll.u32 %s408_s21, 4  ;;  %s413_s9 = int_to_ptr.vmem [resolvable:$true] %s412_s9  ;;  %s411_s11 = int_to_ptr.hbm [resolvable:$true] %s410_s11 }
  0x2b   : > { %p1218_p0 = pnand %p1227_p12, %p1756_p10  ;;  %s401_s12 = scalar_lea.sflag [#allocation3], %s400_s26 }
  0x2c   : > { %421 = sbr.rel (%p1708_p3) target bundleno = 1763 (0x6e3), region = 60  ;;  %s423_s25 = sand.u32 (!%p1708_p3), 1, %s1579_s14  }
  0x2d   : > { %1220 = dma.hbm_to_vmem [thread:$0]  (!%p1218_p0), %s411_s11, 128, %s413_s9, %s401_s12  }
  0x2e   : > { %s1782_s28 = sshll.u32 (!%p1708_p3), %s423_s25, 3  ;;  %s424_s23 = scalar_lea.sflag (!%p1708_p3), [#allocation3], %s423_s25 }
  0x2f   : > { %s427_s13 = scalar_lea.vmem (!%p1708_p3), [#allocation2], %s1782_s28 }
  0x31   : > { %1558 = dma.done.wait (%p1762_p11), %s424_s23, 128  }
  0x32   : > { %1560 = vsyncadd (%p1762_p11), %s424_s23, 4294967168 }
  0x33   : > { %1562 = dma.done.wait (%p1700_p1), [#allocation5], 272  }
  0x34   : > { %1564 = vsyncadd (%p1700_p1), [#allocation5], 4294967024 }
  0x35   : > { %1566 = dma.done.wait (%p1700_p1), [#allocation8], 272  }
  0x36   : > { %1568 = vsyncadd (%p1700_p1), [#allocation8], 4294967024 }
  0x37   : > { %1570 = dma.done.wait (%p1700_p1), [#allocation11], 272  }
  0x38   : > { %1572 = vsyncadd (%p1700_p1), [#allocation11], 4294967024  ;;  %p504_p2 = scmp.lt.s32.totalorder %s1587_s16, 1  ;;  %vm523_vm0 = vcmask 261120   ;;  %v1605_v2 = vmov 32.0   ;;  %v1171_v3 = vld [vmem:[#allocation7 + $0x8] sm:$0xff] }
  0x39   : > { %1303 = vrcp.f32 %v1605_v2  ;;  %628 = vmatpush.bf16.msra.mxu1 %v1171_v3  ;;  %v1170_v15 = vld [vmem:[#allocation7] sm:$0xff]  ;;  %v1169_v18 = vld [vmem:[#allocation4 + $0x8] sm:$0xff]  ;;  %v1168_v19 = vld [vmem:[#allocation4] sm:$0xff]  ;;  %s1916_s21 = sld [smem:[#allocation19_spill]]  ;;  %vm642_vm5 = vcmask 64512   ;;  %s1606_s2 = smov 120  }
  0x3a   : > { %s1926_s16 = smov (!%p504_p2, %s1587_s16), 1  ;;  %v520_v16 = vld [vmem:[%s427_s13] sm:$0xff]  ;;  %591 = vmatpush.bf16.msra.mxu0 %v1169_v18  ;;  %v1300_v36 = vld [vmem:[#allocation9] ss:$0 sm:$0xff]  ;;  %s1607_s9 = smov 96   ;;  %vm681_vm6 = vcmask 1043456  }
  0x3b   : > { %s1134_s24 = sshll.u32 %s1926_s16, 3  ;;  %v602_v17 = vpack.c.bf16 %v520_v16, %v520_v16  ;;  %v1298_v29 = vld [vmem:[%s1902_s8] ss:$0 sm:$0xff]  ;;  %s1608_s11 = smov 104   ;;  %v636_v63 = vld [vmem:[#allocation10 + $0x4] sm:$0xf] }
  0x3c   : > { %s510_s26 = scalar_lea.vmem %s1894_s0, %s1134_s24  ;;  %v1301_v42 = vld [vmem:[#allocation6] ss:$0 sm:$0xff]  ;;  %s1609_s12 = smov 88  }
  0x3d   : > { %v1811_v0 = vld [vmem:[%s510_s26] sm:$0xff]  ;;  %629 = vmatpush.bf16.msra.mxu1 %v1170_v15  ;;  %s1610_s25 = smov 112   ;;  %s1611_s28 = smov 80  }
  0x3e   : > { %v524_v1 = vsel %vm523_vm0, %v1811_v0, 0.0  ;;  %592 = vmatpush.bf16.msra.mxu0 %v1168_v19  ;;  %s1612_s23 = smov 72   ;;  %s1917_s27 = sld [smem:[#allocation20_spill]] }
  0x3f   : > { %525 = vadd.xlane.f32.xlu0 %v524_v1  ;;  %v1304_v4 = vpop.eup %1303  ;;  %v1299_v32 = vld [vmem:[%s1916_s21] ss:$0 sm:$0xff]  ;;  %v785_v1 = vsel %vm681_vm6, %v636_v63, 0 }
  0x40   : > { %v528_v5 = vmul.f32 32.0, %v1304_v4  ;;  %vm532_vm1 = vweird.f32 %v1304_v4  ;;  %1153 = vmatmul.msk.bf16.vlgmr.msra.gmra.mxu1 %vm523_vm0, %v602_v17 }
  0x42   : > { %v529_v6 = vsub.f32 1.0, %v528_v5 }
  0x44   : > { %v530_v7 = vmul.f32 %v1304_v4, %v529_v6  ;;  %s517_s26 = scalar_lea.vmem %s1917_s27, %s1134_s24 }
  0x46   : > { %v531_v8 = vadd.f32 %v1304_v4, %v530_v7 }
  0x48   : > { %v533_v9 = vsel %vm532_vm1, %v1304_v4, %v531_v8 }
  0xb2   : > { %v526_v10 = vpop.xlane.xlu0 %525 }
  0xb3   : > { %v534_v11 = vmul.f32 %v533_v9, %v526_v10 }
  0xb5   : > { %v535_v12 = vsub.f32 %v1811_v0, %v534_v11 }
  0xb7   : > { %v536_v13 = vmul.f32 %v535_v12, %v535_v12 }
  0xb9   : > { %v537_v14 = vsel %vm523_vm0, %v536_v13, 0.0 }
  0xba   : > { %538 = vadd.xlane.f32.xlu0 %v537_v14 }
  0xbd   : > { %v631_v37 = vpop.f32.mrf.mxu1 }
  0xbe   : > { %v632_v38 = vadd.f32 %v1300_v36, %v631_v37 }
  0xc0   : > { %v1827_v39 = vpack.c.bf16 %v632_v38, %v632_v38 }
  0xc2   : > { %725 = vrot.lane.b32.xlu1 %v1827_v39, %s1606_s2  ;;  %v647_v40 = vsel %vm642_vm5, %v1827_v39, 0 }
  0xc3   : > { %656 = vmatpush.bf16.xpose.msra.mxu2 %v647_v40  ;;  %v1302_v40 = vld [vmem:[#allocation12] ss:$0 sm:$0xff] }
  0xc5   : > { %v633_v41 = vpop.f32.mrf.mxu1 }
  0xcb   : > { %794 = vmatpush.bf16.msrb.mxu2 %v785_v1 }
 0x12d   : > { %v539_v20 = vpop.xlane.xlu0 %538 }
 0x12e   : > { %v540_v21 = vmul.f32 %v539_v20, %v533_v9  ;;  %v635_v9 = vld [vmem:[#allocation10] sm:$0xf] }
 0x12f   : > { %v703_v10 = vsel %vm681_vm6, %v635_v9, 0  ;;  %v638_v9 = vld [vmem:[#allocation10 + $0xc] sm:$0xf] }
 0x130   : > { %v541_v22 = vadd.f32 1e-05, %v540_v21 }
 0x132   : > { %1305 = vrsqrt.f32 %v541_v22  ;;  %vm548_vm3 = vweird.f32 %v541_v22 }
 0x134   : > { %v726_v47 = vpop.permute.xlu1 %725 }
 0x135   : > { %v731_v48 = vsel %vm642_vm5, %v726_v47, 0 }
 0x136   : > { %740 = vmatpush.bf16.xpose.msrb.mxu0 %v731_v48 }
 0x138   : > { %v1306_v23 = vpop.eup %1305 }
 0x139   : > { %v543_v24 = vmul.f32 %v1306_v23, %v541_v22  ;;  %vm549_vm2 = vweird.f32 %v1306_v23 }
 0x13a   : > { %vm550_vm4 = vmor %vm548_vm3, %vm549_vm2 }
 0x13b   : > { %v544_v25 = vmul.f32 %v1306_v23, %v543_v24 }
 0x13d   : > { %v545_v26 = vmul.f32 0.5, %v544_v25 }
 0x13f   : > { %v546_v27 = vsub.f32 1.5, %v545_v26 }
 0x141   : > { %v547_v28 = vmul.f32 %v1306_v23, %v546_v27 }
 0x143   : > { %v551_v30 = vsel %vm550_vm4, %v1306_v23, %v547_v28 }
 0x144   : > { %v552_v31 = vmul.f32 %v551_v30, %v535_v12 }
 0x146   : > { %v556_v33 = vmul.f32 %v1298_v29, %v552_v31 }
 0x148   : > { %v560_v34 = vadd.f32 %v1299_v32, %v556_v33 }
 0x14a   : > { %v565_v35 = vpack.c.bf16 %v560_v34, %v560_v34 }
 0x14c   : > { %1144 = vmatmul.msk.bf16.vlgmr.msra.gmra.mxu0 %vm523_vm0, %v565_v35 }
 0x1c9   : > { %v594_v43 = vpop.f32.mrf.mxu0 }
 0x1ca   : > { %v595_v44 = vadd.f32 %v1301_v42, %v594_v43 }
 0x1cc   : > { %v640_v45 = vpack.c.bf16 %v595_v44, %v595_v44 }
 0x1ce   : > { %723 = vrot.lane.b32.xlu1 %v640_v45, %s1606_s2  ;;  %1154 = vmatmul.msk.bf16.vlgmr.msra.gmra.mxu2 %vm642_vm5, %v640_v45 }
 0x1d1   : > { %v596_v46 = vpop.f32.mrf.mxu0 }
 0x240   : > { %v724_v49 = vpop.permute.xlu1 %723 }
 0x241   : > { %1157 = vmatmul.msk.bf16.vlgmr.msrb.gmra.mxu0 %vm642_vm5, %v724_v49 }
 0x251   : > { %v658_v50 = vpop.f32.mrf.mxu2 }
 0x252   : > { %v662_v51 = vmul.f32 0.35355338, %v658_v50 }
 0x254   : > { %v663_v52 = vsel %vm642_vm5, %v662_v51, -inf }
 0x255   : > { %664 = vmax.xlane.f32.xlu2 %v663_v52 }
 0x259   : > { %v660_v53 = vpop.f32.mrf.mxu2 }
 0x2be   : > { %v742_v54 = vpop.f32.mrf.mxu0 }
 0x2bf   : > { %v746_v55 = vmul.f32 0.35355338, %v742_v54 }
 0x2c1   : > { %v747_v56 = vsel %vm642_vm5, %v746_v55, -inf }
 0x2c2   : > { %748 = vmax.xlane.f32.xlu2 %v747_v56 }
 0x2c6   : > { %v744_v57 = vpop.f32.mrf.mxu0 }
 0x2c8   : > { %v665_v58 = vpop.xlane.xlu2 %664 }
 0x2c9   : > { %v666_v59 = vsub.f32 %v662_v51, %v665_v58 }
 0x2cb   : > { %v667_v60 = vmul.f32 1.442695, %v666_v59 }
 0x2cd   : > { %1307 = vpow2.f32 %v667_v60 }
 0x2d3   : > { %v1308_v61 = vpop.eup %1307 }
 0x2d4   : > { %v669_v62 = vsel %vm642_vm5, %v1308_v61, 0.0 }
 0x2d5   : > { %670 = vadd.xlane.f32.xlu0 %v669_v62 }
 0x2da   : > { %676 = vrot.lane.b32.xlu2 %v1827_v39, %s1607_s9 }
 0x2e2   : > { %881 = vrot.lane.b32.xlu2 %v1827_v39, %s1608_s11 }
 0x2e9   : > { %759 = vrot.lane.b32.xlu0 %v1827_v39, %s1609_s12 }
 0x2ea   : > { %879 = vrot.lane.b32.xlu2 %v640_v45, %s1608_s11 }
 0x2f1   : > { %803 = vrot.lane.b32.xlu0 %v1827_v39, %s1610_s25 }
 0x2f9   : > { %801 = vrot.lane.b32.xlu0 %v640_v45, %s1610_s25 }
 0x335   : > { %v749_v2 = vpop.xlane.xlu2 %748 }
 0x336   : > { %v750_v3 = vsub.f32 %v746_v55, %v749_v2 }
 0x338   : > { %v751_v4 = vmul.f32 1.442695, %v750_v3 }
 0x33a   : > { %1309 = vpow2.f32 %v751_v4  ;;  %v637_v4 = vld [vmem:[#allocation10 + $0x8] sm:$0xf] }
 0x33d   : > { %v677_v5 = vpop.permute.xlu2 %676 }
 0x33e   : > { %v683_v6 = vsel %vm681_vm6, %v677_v5, 0  ;;  %v863_v5 = vsel %vm681_vm6, %v637_v4, 0 }
 0x33f   : > { %692 = vmatpush.bf16.msra.mxu3 %v683_v6 }
 0x340   : > { %v1310_v7 = vpop.eup %1309 }
 0x341   : > { %v753_v8 = vsel %vm642_vm5, %v1310_v7, 0.0 }
 0x342   : > { %754 = vadd.xlane.f32.xlu1 %v753_v8 }
 0x343   : > { %712 = vmatpush.bf16.msrb.mxu3 %v703_v10  ;;  %v941_v10 = vsel %vm681_vm6, %v638_v9, 0 }
 0x345   : > { %v882_v11 = vpop.permute.xlu2 %881 }
 0x346   : > { %v887_v12 = vsel %vm642_vm5, %v882_v11, 0 }
 0x347   : > { %896 = vmatpush.bf16.xpose.msra.mxu2 %v887_v12 }
 0x348   : > { %v671_v13 = vpop.xlane.xlu0 %670 }
 0x349   : > { %1311 = vrcp.f32 %v671_v13 }
 0x34d   : > { %v880_v32 = vpop.permute.xlu2 %879 }
 0x34f   : > { %v1312_v14 = vpop.eup %1311 }
 0x350   : > { %v673_v15 = vmul.f32 %v1312_v14, %v1308_v61 }
 0x352   : > { %v674_v16 = vpack.c.bf16 %v673_v15, %v673_v15 }
 0x354   : > { %1155 = vmatmul.msk.bf16.vlgmr.msra.gmra.mxu3 %vm642_vm5, %v674_v16 }
 0x35b   : > { %v760_v17 = vpop.permute.xlu0 %759 }
 0x35c   : > { %v765_v18 = vsel %vm681_vm6, %v760_v17, 0 }
 0x35d   : > { %774 = vmatpush.bf16.msrb.mxu1 %v765_v18 }
 0x361   : > { %872 = vmatpush.bf16.msra.mxu1 %v863_v5 }
 0x363   : > { %v804_v19 = vpop.permute.xlu0 %803 }
 0x364   : > { %v809_v20 = vsel %vm642_vm5, %v804_v19, 0 }
 0x365   : > { %818 = vmatpush.bf16.xpose.msra.mxu3 %v809_v20 }
 0x36b   : > { %v802_v28 = vpop.permute.xlu0 %801 }
 0x3b5   : > { %v755_v21 = vpop.xlane.xlu1 %754 }
 0x3b6   : > { %1313 = vrcp.f32 %v755_v21 }
 0x3bc   : > { %v1314_v22 = vpop.eup %1313 }
 0x3bd   : > { %v757_v23 = vmul.f32 %v1314_v22, %v1310_v7 }
 0x3bf   : > { %v758_v24 = vpack.c.bf16 %v757_v23, %v757_v23 }
 0x3c1   : > { %1158 = vmatmul.msk.bf16.vlgmr.msrb.gmra.mxu1 %vm642_vm5, %v758_v24 }
 0x3d7   : > { %v694_v25 = vpop.f32.mrf.mxu3 }
 0x3d8   : > { %v698_v26 = vpack.c.bf16 %v694_v25, %v694_v25 }
 0x3da   : > { %1156 = vmatmul.msk.bf16.vlgmr.msrb.gmra.mxu3 %vm642_vm5, %v698_v26 }
 0x3df   : > { %v696_v27 = vpop.f32.mrf.mxu3 }
 0x3ea   : > { %1160 = vmatmul.msk.bf16.vlgmr.msra.gmra.mxu3 %vm642_vm5, %v802_v28 }
 0x43e   : > { %v776_v29 = vpop.f32.mrf.mxu1 }
 0x43f   : > { %v780_v30 = vpack.c.bf16 %v776_v29, %v776_v29 }
 0x441   : > { %1159 = vmatmul.msk.bf16.vlgmr.msrb.gmra.mxu2 %vm642_vm5, %v780_v30 }
 0x446   : > { %v778_v31 = vpop.f32.mrf.mxu1 }
 0x451   : > { %1163 = vmatmul.msk.bf16.vlgmr.msra.gmra.mxu2 %vm642_vm5, %v880_v32 }
 0x45d   : > { %v714_v33 = vpop.f32.mrf.mxu3 }
 0x45e   : > { %v721_v41 = vadd.f32 %v1302_v40, %v714_v33 }
 0x465   : > { %v716_v34 = vpop.f32.mrf.mxu3 }
 0x46d   : > { %v820_v35 = vpop.f32.mrf.mxu3 }
 0x46e   : > { %v824_v36 = vmul.f32 0.35355338, %v820_v35 }
 0x470   : > { %v825_v37 = vsel %vm642_vm5, %v824_v36, -inf }
 0x471   : > { %826 = vmax.xlane.f32.xlu1 %v825_v37 }
 0x475   : > { %v822_v38 = vpop.f32.mrf.mxu3 }
 0x4c4   : > { %v796_v42 = vpop.f32.mrf.mxu2 }
 0x4c5   : > { %v800_v43 = vadd.f32 %v796_v42, %v721_v41 }
 0x4cc   : > { %v798_v44 = vpop.f32.mrf.mxu2 }
 0x4d4   : > { %v898_v45 = vpop.f32.mrf.mxu2 }
 0x4d5   : > { %v902_v46 = vmul.f32 0.35355338, %v898_v45 }
 0x4d7   : > { %v903_v47 = vsel %vm642_vm5, %v902_v46, -inf }
 0x4d8   : > { %904 = vmax.xlane.f32.xlu2 %v903_v47 }
 0x4dc   : > { %v900_v48 = vpop.f32.mrf.mxu2 }
 0x4e4   : > { %v827_v49 = vpop.xlane.xlu1 %826 }
 0x4e5   : > { %v828_v50 = vsub.f32 %v824_v36, %v827_v49 }
 0x4e7   : > { %v829_v51 = vmul.f32 1.442695, %v828_v50 }
 0x4e9   : > { %1315 = vpow2.f32 %v829_v51 }
 0x4ef   : > { %v1316_v52 = vpop.eup %1315 }
 0x4f0   : > { %837 = vrot.lane.b32.xlu2 %v1827_v39, %s1611_s28  ;;  %v831_v53 = vsel %vm642_vm5, %v1316_v52, 0.0 }
 0x4f1   : > { %832 = vadd.xlane.f32.xlu1 %v831_v53 }
 0x50a   : > { %915 = vrot.lane.b32.xlu1 %v1827_v39, %s1612_s23 }
 0x54b   : > { %v905_v54 = vpop.xlane.xlu2 %904 }
 0x54c   : > { %v906_v55 = vsub.f32 %v902_v46, %v905_v54 }
 0x54e   : > { %v907_v56 = vmul.f32 1.442695, %v906_v55 }
 0x550   : > { %1317 = vpow2.f32 %v907_v56 }
 0x553   : > { %v838_v57 = vpop.permute.xlu2 %837 }
 0x554   : > { %v843_v58 = vsel %vm681_vm6, %v838_v57, 0 }
 0x555   : > { %852 = vmatpush.bf16.msra.mxu0 %v843_v58 }
 0x556   : > { %v1318_v59 = vpop.eup %1317 }
 0x557   : > { %v909_v60 = vsel %vm642_vm5, %v1318_v59, 0.0 }
 0x558   : > { %910 = vadd.xlane.f32.xlu0 %v909_v60 }
 0x559   : > { %950 = vmatpush.bf16.msrb.mxu0 %v941_v10 }
 0x564   : > { %v833_v61 = vpop.xlane.xlu1 %832 }
 0x565   : > { %1319 = vrcp.f32 %v833_v61 }
 0x56b   : > { %v1320_v62 = vpop.eup %1319 }
 0x56c   : > { %v835_v63 = vmul.f32 %v1320_v62, %v1316_v52 }
 0x56e   : > { %v836_v1 = vpack.c.bf16 %v835_v63, %v835_v63 }
 0x570   : > { %1161 = vmatmul.msk.bf16.vlgmr.msra.gmra.mxu0 %vm642_vm5, %v836_v1 }
 0x57c   : > { %v916_v39 = vpop.permute.xlu1 %915 }
 0x57d   : > { %v921_v2 = vsel %vm681_vm6, %v916_v39, 0 }
 0x57e   : > { %930 = vmatpush.bf16.msrb.mxu3 %v921_v2 }
 0x5cb   : > { %v911_v3 = vpop.xlane.xlu0 %910 }
 0x5cc   : > { %1321 = vrcp.f32 %v911_v3 }
 0x5d2   : > { %v1322_v6 = vpop.eup %1321 }
 0x5d3   : > { %v913_v7 = vmul.f32 %v1322_v6, %v1318_v59 }
 0x5d5   : > { %v914_v8 = vpack.c.bf16 %v913_v7, %v913_v7 }
 0x5d7   : > { %1164 = vmatmul.msk.bf16.vlgmr.msrb.gmra.mxu3 %vm642_vm5, %v914_v8 }
 0x5ed   : > { %v854_v11 = vpop.f32.mrf.mxu0 }
 0x5ee   : > { %v858_v12 = vpack.c.bf16 %v854_v11, %v854_v11 }
 0x5f0   : > { %1162 = vmatmul.msk.bf16.vlgmr.msra.gmra.mxu1 %vm642_vm5, %v858_v12 }
 0x5f5   : > { %v856_v13 = vpop.f32.mrf.mxu0 }
 0x65a   : > { %v932_v14 = vpop.f32.mrf.mxu3 }
 0x65b   : > { %v936_v15 = vpack.c.bf16 %v932_v14, %v932_v14 }
 0x65d   : > { %1165 = vmatmul.msk.bf16.vlgmr.msrb.gmra.mxu0 %vm642_vm5, %v936_v15 }
 0x662   : > { %v934_v16 = vpop.f32.mrf.mxu3 }
 0x66d   : > { %v874_v17 = vpop.f32.mrf.mxu1 }
 0x66e   : > { %v878_v18 = vadd.f32 %v874_v17, %v800_v43 }
 0x675   : > { %v876_v19 = vpop.f32.mrf.mxu1 }
 0x6da   : > { %v952_v20 = vpop.f32.mrf.mxu0 }
 0x6db   : > { %v956_v21 = vadd.f32 %v952_v20, %v878_v18 }
 0x6dd   : > { %v957_v22 = vadd.f32 %v956_v21, %v1811_v0 }
 0x6df   : > { %958 = vst.msk [vmem:[%s517_s26] sm:$0xff] %vm523_vm0, %v957_v22 }
 0x6e2   : > { %v954_v23 = vpop.f32.mrf.mxu0 }
 0x6e3 PF: > { %s26_s18 = sadd.s32 1, %s1595_s18   ;;  %s1918_s13 = smov %s1579_s14 }
 0x6e4   : > { %p23_p1 = scmp.ge.s32.totalorder %s26_s18, 4   ;;  %s1919_s14 = smov %s1583_s15 }
 0x6e5   : > { %s1920_s15 = smov %s1771_s22  ;;  %s1921_s16 = smov %s1591_s17 }
 0x6e6   : > { %s1922_s17 = smov %s1924_s4  ;;  %25 = sbr.rel (!%p23_p1) target bundleno = 12 (0xc), region = 127 }
 0x6eb   :  { %984 = vsyncpa [#allocation3], 1 }
 0x6ec   :  { %986 = vsyncpa [#allocation3 + $0x1], 1 }
 0x6ed   :  { %987 = vsyncpa [#allocation5], 1 }
 0x6ee   :  { %988 = vsyncpa [#allocation8], 1 }
 0x6ef   :  { %989 = vsyncpa [#allocation11], 1 }

// kernel: transformer_decoder.9
= control target key start
LH: loop header
LB: loop body
LE: loop exit
PB: predicated region body
PF: predicated region fallthrough
CT: control target
= control target key end

     0   :  { %14 = vsyncpa [#allocation3], 0  ;;  %s1233_s0 = inlined_call_operand.vmem [shape: f32[2,8,32], index: 0, kind: input, shape index: {}]   ;;  %s1234_s1 = inlined_call_operand.vmem [shape: f32[1,32], index: 1, kind: input, shape index: {}]   ;;  %s1235_s2 = inlined_call_operand.hbm [shape: f32[1,32], index: 2, kind: input, shape index: {}]   ;;  %s1236_s3 = inlined_call_operand.vmem [shape: bf16[32,64], index: 3, kind: input, shape index: {}]   ;;  %s1237_s4 = inlined_call_operand.hbm [shape: f32[1,64], index: 4, kind: input, shape index: {}]   ;;  %s1238_s5 = inlined_call_operand.vmem [shape: bf16[64,32], index: 5, kind: input, shape index: {}]   ;;  %s1239_s6 = inlined_call_operand.hbm [shape: f32[1,32], index: 6, kind: input, shape index: {}]   ;;  %s1240_s7 = inlined_call_operand.hbm [shape: f32[1,32], index: 7, kind: input, shape index: {}]   ;;  %s1241_s8 = inlined_call_operand.hbm [shape: f32[1,32], index: 8, kind: input, shape index: {}]   ;;  %s1242_s9 = inlined_call_operand.vmem [shape: f32[2,8,32], index: 9, kind: output, shape index: {}]  }
   0x1   :  { %15 = vsyncpa [#allocation5], 0 }
   0x2   :  { %16 = vsyncpa [#allocation8], 0  ;;  %s1106_s30 = smov 0   ;;  %s1108_s10 = smov 0  }
   0x3   :  { %s1110_s11 = smov 0  }
   0x4 LB: > { %s293_s14 = sshll.u32 %s1237_s4, 4  ;;  %s725_s15 = sadd.s32 4294967295, %s1048_s11   ;;  %s1048_s11 = sphi %s1110_s11, %s22_s11   ;;  %s1044_s10 = sphi %s1108_s10, %s1247_s10   ;;  %s1040_s30 = sphi %s1106_s30, %s1246_s30   ;;  %s294_s14 = int_to_ptr.hbm [resolvable:$true] %s293_s14 }
   0x5   : > { %p727_p0 = scmp.ge.s32.totalorder %s1048_s11, 1  ;;  %p263_p1 = scmp.lt.s32.totalorder %s1048_s11, 3 }
   0x6   : > { %p1127_p2 = scmp.eq.s32.totalorder %s725_s15, 0  ;;  %s1050_s18 = smov [#allocation4]  }
   0x7   : > { %p1131_p3 = pnand %p727_p0, %p263_p1  ;;  %s295_s19 = sshll.u32 %s1050_s18, 4  ;;  %s296_s19 = int_to_ptr.vmem [resolvable:$true] %s295_s19 }
   0x8   : > { %s320_s22 = sshll.u32 %s1240_s7, 4  ;;  %s1051_s24 = smov [#allocation7]   ;;  %s321_s22 = int_to_ptr.hbm [resolvable:$true] %s320_s22 }
   0x9   : > { %p796_p4 = pneg %p1131_p3  ;;  %s322_s25 = sshll.u32 %s1051_s24, 4  ;;  %s323_s25 = int_to_ptr.vmem [resolvable:$true] %s322_s25 }
   0xa   : > { %s34_s26 = sadd.s32 1, %s1044_s10  ;;  %s278_s29 = sshll.u32 %s1235_s2, 4  ;;  %s279_s29 = int_to_ptr.hbm [resolvable:$true] %s278_s29 }
   0xb   : > { %p1142_p5 = pnand %p1127_p2, %p796_p4  ;;  %p36_p6 = scmp.ge.s32.totalorder %s34_s26, 2 }
   0xc   : > { %s1052_s12 = smov [#allocation2]   ;;  %s308_s20 = sshll.u32 %s1239_s6, 4  ;;  %s309_s20 = int_to_ptr.hbm [resolvable:$true] %s308_s20 }
   0xd   : > { %802 = dma.hbm_to_vmem [thread:$0]  (!%p1142_p5), %s294_s14, 16, %s296_s19, [#allocation5]  }
   0xe   : > { %808 = dma.hbm_to_vmem [thread:$0]  (!%p1142_p5), %s321_s22, 16, %s323_s25, [#allocation8]  }
   0xf   : > { %s1249_s26 = smov (%p36_p6, %s34_s26), 0  ;;  %s280_s13 = sshll.u32 %s1052_s12, 4  ;;  %s281_s13 = int_to_ptr.vmem [resolvable:$true] %s280_s13 }
  0x10   : > { %799 = dma.hbm_to_vmem [thread:$0]  (!%p1142_p5), %s279_s29, 16, %s281_s13, [#allocation3]  }
  0x11   : > { %s332_s21 = sshll.u32 %s1241_s8, 4  ;;  %s1053_s22 = smov [#allocation6]   ;;  %s333_s21 = int_to_ptr.hbm [resolvable:$true] %s332_s21 }
  0x12   : > { %s310_s24 = sshll.u32 %s1053_s22, 4  ;;  %s1054_s25 = smov [#allocation9]   ;;  %s311_s24 = int_to_ptr.vmem [resolvable:$true] %s310_s24 }
  0x13   : > { %805 = dma.hbm_to_vmem [thread:$0]  (!%p1142_p5), %s309_s20, 16, %s311_s24, [#allocation5]  }
  0x14   : > { %s334_s27 = sshll.u32 %s1054_s25, 4  ;;  %357 = sbr.rel (%p1131_p3) target bundleno = 837 (0x345), region = 56  ;;  %s335_s27 = int_to_ptr.vmem [resolvable:$true] %s334_s27 }
  0x15   : > { %811 = dma.hbm_to_vmem [thread:$0]  (!%p1142_p5), %s333_s21, 16, %s335_s27, [#allocation8]  }
  0x19   : > { %1027 = dma.done.wait (%p1127_p2), [#allocation3], 16  }
  0x1a   : > { %1029 = vsyncadd (%p1127_p2), [#allocation3], 4294967280 }
  0x1b   : > { %1031 = dma.done.wait (%p1127_p2), [#allocation5], 32  }
  0x1c   : > { %1033 = vsyncadd (%p1127_p2), [#allocation5], 4294967264 }
  0x1d   : > { %1035 = dma.done.wait (%p1127_p2), [#allocation8], 32  }
  0x1e   : > { %1037 = vsyncadd (%p1127_p2), [#allocation8], 4294967264  ;;  %p418_p7 = scmp.lt.s32.totalorder %s1040_s30, 1  ;;  %vm436_vm0 = vcmask 261120   ;;  %v1055_v2 = vmov 32.0   ;;  %v771_v14 = vld [vmem:[%s1236_s3 + $0x8] sm:$0xff] }
  0x1f   : > { %858 = vrcp.f32 %v1055_v2  ;;  %504 = vmatpush.bf16.msra.mxu0 %v771_v14  ;;  %v770_v15 = vld [vmem:[%s1236_s3] sm:$0xff]  ;;  %v775_v16 = vld [vmem:[%s1238_s5 + $0x18] sm:$0xff]  ;;  %v774_v19 = vld [vmem:[%s1238_s5 + $0x10] sm:$0xff]  ;;  %vm549_vm5 = vcmask 523264  }
  0x20   : > { %s1251_s30 = smov (!%p418_p7, %s1040_s30), 1  ;;  %557 = vmatpush.bf16.msra.mxu1 %v775_v16  ;;  %v852_v27 = vld [vmem:[%s1234_s1] ss:$0 sm:$0xff]  ;;  %v773_v34 = vld [vmem:[%s1238_s5 + $0x8] sm:$0xff]  ;;  %v854_v36 = vld [vmem:[#allocation4] ss:$0 sm:$0xff] }
  0x21   : > { %s740_s17 = sshll.u32 %s1251_s30, 3  ;;  %v853_v30 = vld [vmem:[#allocation2] ss:$0 sm:$0xff]  ;;  %v855_v42 = vld [vmem:[#allocation6] ss:$0 sm:$0xff] }
  0x22   : > { %s424_s29 = scalar_lea.vmem %s1233_s0, %s740_s17  ;;  %v772_v35 = vld [vmem:[%s1238_s5] sm:$0xff]  ;;  %s431_s16 = scalar_lea.vmem %s1242_s9, %s740_s17 }
  0x23   : > { %v433_v0 = vld [vmem:[%s424_s29] sm:$0xff]  ;;  %505 = vmatpush.bf16.msra.mxu0 %v770_v15 }
  0x24   : > { %v437_v1 = vsel %vm436_vm0, %v433_v0, 0.0  ;;  %558 = vmatpush.bf16.msra.mxu1 %v774_v19  ;;  %v856_v62 = vld [vmem:[#allocation7] ss:$0 sm:$0xff] }
  0x25   : > { %438 = vadd.xlane.f32.xlu0 %v437_v1  ;;  %v859_v3 = vpop.eup %858 }
  0x26   : > { %v441_v4 = vmul.f32 32.0, %v859_v3  ;;  %vm445_vm1 = vweird.f32 %v859_v3 }
  0x28   : > { %v442_v5 = vsub.f32 1.0, %v441_v4  ;;  %559 = vmatpush.bf16.msra.mxu1 %v773_v34 }
  0x2a   : > { %v443_v6 = vmul.f32 %v859_v3, %v442_v5 }
  0x2c   : > { %v444_v7 = vadd.f32 %v859_v3, %v443_v6  ;;  %560 = vmatpush.bf16.msra.mxu1 %v772_v35 }
  0x2e   : > { %v446_v8 = vsel %vm445_vm1, %v859_v3, %v444_v7 }
  0x98   : > { %v439_v9 = vpop.xlane.xlu0 %438 }
  0x99   : > { %v447_v10 = vmul.f32 %v446_v8, %v439_v9 }
  0x9b   : > { %v448_v11 = vsub.f32 %v433_v0, %v447_v10  ;;  %v857_v0 = vld [vmem:[#allocation9] ss:$0 sm:$0xff] }
  0x9d   : > { %v449_v12 = vmul.f32 %v448_v11, %v448_v11 }
  0x9f   : > { %v450_v13 = vsel %vm436_vm0, %v449_v12, 0.0 }
  0xa0   : > { %451 = vadd.xlane.f32.xlu0 %v450_v13 }
 0x113   : > { %v452_v17 = vpop.xlane.xlu0 %451 }
 0x114   : > { %v453_v18 = vmul.f32 %v452_v17, %v446_v8 }
 0x116   : > { %v454_v20 = vadd.f32 1e-05, %v453_v18 }
 0x118   : > { %860 = vrsqrt.f32 %v454_v20  ;;  %vm461_vm3 = vweird.f32 %v454_v20 }
 0x11e   : > { %v861_v21 = vpop.eup %860 }
 0x11f   : > { %v456_v22 = vmul.f32 %v861_v21, %v454_v20  ;;  %vm462_vm2 = vweird.f32 %v861_v21 }
 0x120   : > { %vm463_vm4 = vmor %vm461_vm3, %vm462_vm2 }
 0x121   : > { %v457_v23 = vmul.f32 %v861_v21, %v456_v22 }
 0x123   : > { %v458_v24 = vmul.f32 0.5, %v457_v23 }
 0x125   : > { %v459_v25 = vsub.f32 1.5, %v458_v24 }
 0x127   : > { %v460_v26 = vmul.f32 %v861_v21, %v459_v25 }
 0x129   : > { %v464_v28 = vsel %vm463_vm4, %v861_v21, %v460_v26 }
 0x12a   : > { %v465_v29 = vmul.f32 %v464_v28, %v448_v11 }
 0x12c   : > { %v469_v31 = vmul.f32 %v852_v27, %v465_v29 }
 0x12e   : > { %v473_v32 = vadd.f32 %v853_v30, %v469_v31 }
 0x130   : > { %v478_v33 = vpack.c.bf16 %v473_v32, %v473_v32 }
 0x132   : > { %750 = vmatmul.msk.bf16.vlgmr.msra.gmra.mxu0 %vm436_vm0, %v478_v33 }
 0x1af   : > { %v507_v37 = vpop.f32.mrf.mxu0 }
 0x1b0   : > { %v508_v38 = vadd.f32 %v854_v36, %v507_v37 }
 0x1b2   : > { %v511_v39 = vmax.f32 %v508_v38, 0.0 }
 0x1b4   : > { %v520_v40 = vpack.c.bf16 %v511_v39, %v511_v39 }
 0x1b6   : > { %767 = vmatmul.msk.bf16.vlgmr.msra.gmra.mxu1 %vm549_vm5, %v520_v40 }
 0x1b7   : > { %v509_v41 = vpop.f32.mrf.mxu0 }
 0x233   : > { %v562_v43 = vpop.f32.mrf.mxu1 }
 0x234   : > { %v563_v44 = vadd.f32 %v855_v42, %v562_v43 }
 0x236   : > { %v566_v45 = vadd.f32 %v563_v44, %v473_v32 }
 0x238   : > { %v569_v46 = vsel %vm436_vm0, %v566_v45, 0.0 }
 0x239   : > { %570 = vadd.xlane.f32.xlu1 %v569_v46 }
 0x23b   : > { %v564_v47 = vpop.f32.mrf.mxu1 }
 0x2ac   : > { %v571_v48 = vpop.xlane.xlu1 %570 }
 0x2ad   : > { %v572_v49 = vmul.f32 %v571_v48, %v446_v8 }
 0x2af   : > { %v573_v50 = vsub.f32 %v566_v45, %v572_v49 }
 0x2b1   : > { %v574_v51 = vmul.f32 %v573_v50, %v573_v50 }
 0x2b3   : > { %v575_v52 = vsel %vm436_vm0, %v574_v51, 0.0 }
 0x2b4   : > { %576 = vadd.xlane.f32.xlu1 %v575_v52 }
 0x327   : > { %v577_v53 = vpop.xlane.xlu1 %576 }
 0x328   : > { %v578_v54 = vmul.f32 %v577_v53, %v446_v8 }
 0x32a   : > { %v579_v55 = vadd.f32 1e-05, %v578_v54 }
 0x32c   : > { %862 = vrsqrt.f32 %v579_v55  ;;  %vm586_vm7 = vweird.f32 %v579_v55 }
 0x332   : > { %v863_v56 = vpop.eup %862 }
 0x333   : > { %v581_v57 = vmul.f32 %v863_v56, %v579_v55  ;;  %vm587_vm6 = vweird.f32 %v863_v56 }
 0x334   : > { %vm588_vm8 = vmor %vm586_vm7, %vm587_vm6 }
 0x335   : > { %v582_v58 = vmul.f32 %v863_v56, %v581_v57 }
 0x337   : > { %v583_v59 = vmul.f32 0.5, %v582_v58 }
 0x339   : > { %v584_v60 = vsub.f32 1.5, %v583_v59 }
 0x33b   : > { %v585_v61 = vmul.f32 %v863_v56, %v584_v60 }
 0x33d   : > { %v589_v63 = vsel %vm588_vm8, %v863_v56, %v585_v61 }
 0x33e   : > { %v590_v1 = vmul.f32 %v589_v63, %v573_v50 }
 0x340   : > { %v594_v2 = vmul.f32 %v856_v62, %v590_v1 }
 0x342   : > { %v598_v3 = vadd.f32 %v857_v0, %v594_v2 }
 0x344   : > { %599 = vst.msk [vmem:[%s431_s16] sm:$0xff] %vm436_vm0, %v598_v3 }
 0x345 PF: > { %s22_s11 = sadd.s32 1, %s1048_s11   ;;  %s1246_s30 = smov %s1044_s10 }
 0x346   : > { %p19_p8 = scmp.ge.s32.totalorder %s22_s11, 4   ;;  %s1247_s10 = smov %s1249_s26 }
 0x348   :  { %21 = sbr.rel (!%p19_p8) target bundleno = 4 (0x4), region = 107 }
 0x34d   :  { %625 = vsyncpa [#allocation3], 1 }
 0x34e   :  { %627 = vsyncpa [#allocation3 + $0x1], 1 }
 0x34f   :  { %628 = vsyncpa [#allocation5], 1 }
 0x350   :  { %629 = vsyncpa [#allocation8], 1 }

// kernel: transformer_decoder.7
= control target key start
LH: loop header
LB: loop body
LE: loop exit
PB: predicated region body
PF: predicated region fallthrough
CT: control target
= control target key end

     0   :  { %s1910_s0 = inlined_call_operand.hbm [shape: f32[2,8,32], index: 0, kind: input, shape index: {}, may-alias: {0,1}]   ;;  %s1911_s1 = inlined_call_operand.hbm [shape: f32[2,8,32], index: 1, kind: input, shape index: {}, may-alias: {0,1}]   ;;  %s1912_s2 = inlined_call_operand.hbm [shape: bf16[32,32], index: 2, kind: input, shape index: {}]   ;;  %s1913_s3 = inlined_call_operand.hbm [shape: f32[1,32], index: 3, kind: input, shape index: {}]   ;;  %s1914_s4 = inlined_call_operand.hbm [shape: bf16[32,64], index: 4, kind: input, shape index: {}]   ;;  %s1915_s5 = inlined_call_operand.hbm [shape: f32[1,64], index: 5, kind: input, shape index: {}]   ;;  %s1916_s6 = inlined_call_operand.hbm [shape: bf16[32,32], index: 6, kind: input, shape index: {}]   ;;  %s1917_s7 = inlined_call_operand.hbm [shape: f32[1,32], index: 7, kind: input, shape index: {}]   ;;  %s1918_s8 = inlined_call_operand.vmem [shape: f32[1,32], index: 8, kind: input, shape index: {}]   ;;  %s1919_s9 = inlined_call_operand.vmem [shape: f32[1,32], index: 9, kind: input, shape index: {}]   ;;  %s1920_s10 = inlined_call_operand.vmem [shape: f32[2,8,32], index: 10, kind: output, shape index: {}]  }
   0x1   :  { %1922 = sst [smem:[#allocation21_spill]] %s1912_s2 }
   0x2   :  { %1923 = sst [smem:[#allocation22_spill]] %s1913_s3 }
   0x3   :  { %1924 = sst [smem:[#allocation23_spill]] %s1914_s4 }
   0x4   :  { %1925 = sst [smem:[#allocation24_spill]] %s1915_s5 }
   0x5   :  { %1926 = sst [smem:[#allocation25_spill]] %s1916_s6 }
   0x6   :  { %1927 = sst [smem:[#allocation26_spill]] %s1917_s7 }
   0x7   :  { %15 = vsyncpa [#allocation3], 0 }
   0x8   :  { %17 = vsyncpa [#allocation3 + $0x1], 0 }
   0x9   :  { %18 = vsyncpa [#allocation5], 0 }
   0xa   :  { %20 = vsyncpa [#allocation5 + $0x1], 0 }
   0xb   :  { %21 = vsyncpa [#allocation8], 0 }
   0xc   :  { %22 = vsyncpa [#allocation11], 0 }
   0xd   :  { %23 = vsyncpa [#allocation14], 0  ;;  %s1689_s13 = smov 0   ;;  %s1691_s14 = smov 0  }
   0xe   :  { %s1693_s15 = smov 0   ;;  %s1695_s8 = smov 0  }
   0xf   :  { %s1697_s16 = smov 0   ;;  %s1699_s9 = smov 0  }
  0x10 LB: > { %s1921_s17 = sadd.s32 4294967295, %s1617_s9   ;;  %p1100_p0 = scmp.ge.s32.totalorder %s1617_s9, 1  ;;  %s1617_s9 = sphi %s1699_s9, %s29_s9   ;;  %s1613_s16 = sphi %s1697_s16, %s1945_s16   ;;  %s1609_s8 = sphi %s1695_s8, %s1944_s8   ;;  %s1605_s15 = sphi %s1693_s15, %s1943_s15   ;;  %s1601_s14 = sphi %s1691_s14, %s1942_s14   ;;  %s1597_s13 = sphi %s1689_s13, %s1941_s13  }
  0x11   : > { %p1723_p1 = scmp.eq.s32.totalorder %s1921_s17, 0  ;;  %p296_p2 = scmp.lt.s32.totalorder %s1617_s9, 3 }
  0x12   : > { %s1929_s2 = sld [smem:[#allocation21_spill]]  ;;  %s1619_s23 = smov [#allocation6]  }
  0x13   : > { %p1731_p3 = pnand %p1100_p0, %p296_p2  ;;  %s309_s24 = sshll.u32 %s1619_s23, 4  ;;  %s310_s24 = int_to_ptr.vmem [resolvable:$true] %s309_s24 }
  0x14   : > { %s1932_s3 = sld [smem:[#allocation22_spill]]  ;;  %s1620_s29 = smov 64  }
  0x15   : > { %p1186_p4 = pneg %p1731_p3  ;;  %s1621_s30 = smov 4  }
  0x16   : > { %s1622_s11 = smov [#allocation7]   ;;  %s1933_s5 = sld [smem:[#allocation24_spill]] }
  0x17   : > { %p1739_p5 = pnand %p1186_p4, %p1723_p1  ;;  %s324_s12 = sshll.u32 %s1622_s11, 4  ;;  %s325_s12 = int_to_ptr.vmem [resolvable:$true] %s324_s12 }
  0x18   : > { %s307_s21 = sshll.u32 %s1929_s2, 4  ;;  %s1934_s4 = sld [smem:[#allocation23_spill]]  ;;  %s308_s21 = int_to_ptr.hbm [resolvable:$true] %s307_s21 }
  0x19   : > { %1189 = dma.hbm_to_vmem [thread:$0]  (!%p1739_p5), %s308_s21, 256, %s310_s24, [#allocation5], %s1620_s29, %s1620_s29, %s1621_s30  }
  0x1a   : > { %s322_s28 = sshll.u32 %s1932_s3, 4  ;;  %s1623_s2 = smov [#allocation10]   ;;  %s323_s28 = int_to_ptr.hbm [resolvable:$true] %s322_s28 }
  0x1b   : > { %1192 = dma.hbm_to_vmem [thread:$0]  (!%p1739_p5), %s323_s28, 16, %s325_s12, [#allocation8]  }
  0x1c   : > { %s348_s23 = sshll.u32 %s1933_s5, 4  ;;  %s350_s3 = sshll.u32 %s1623_s2, 4  ;;  %s349_s23 = int_to_ptr.hbm [resolvable:$true] %s348_s23  ;;  %s351_s3 = int_to_ptr.vmem [resolvable:$true] %s350_s3 }
  0x1d   : > { %1198 = dma.hbm_to_vmem [thread:$0]  (!%p1739_p5), %s349_s23, 16, %s351_s3, [#allocation11]  }
  0x1e   : > { %s333_s17 = sshll.u32 %s1934_s4, 4  ;;  %s1624_s21 = smov [#allocation9]   ;;  %s334_s17 = int_to_ptr.hbm [resolvable:$true] %s333_s17 }
  0x1f   : > { %s335_s24 = sshll.u32 %s1624_s21, 4  ;;  %s1935_s6 = sld [smem:[#allocation25_spill]]  ;;  %s336_s24 = int_to_ptr.vmem [resolvable:$true] %s335_s24 }
  0x20   : > { %1195 = dma.hbm_to_vmem [thread:$0]  (!%p1739_p5), %s334_s17, 256, %s336_s24, [#allocation8], %s1620_s29, %s1620_s29, %s1621_s30  }
  0x21   : > { %s1936_s7 = sld [smem:[#allocation26_spill]]  ;;  %s1625_s20 = smov [#allocation12]  }
  0x22   : > { %s361_s23 = sshll.u32 %s1625_s20, 4  ;;  %s1626_s26 = smov [#allocation13]   ;;  %s362_s23 = int_to_ptr.vmem [resolvable:$true] %s361_s23 }
  0x23   : > { %s376_s27 = sshll.u32 %s1626_s26, 4  ;;  %s41_s17 = sadd.s32 1, %s1613_s16  ;;  %s377_s27 = int_to_ptr.vmem [resolvable:$true] %s376_s27 }
  0x24   : > { %s50_s21 = sadd.s32 1, %s1605_s15  ;;  %p43_p6 = scmp.ge.s32.totalorder %s41_s17, 2 }
  0x25   : > { %s359_s28 = sshll.u32 %s1935_s6, 4  ;;  %p57_p7 = scmp.ne.s32.totalorder %s1605_s15, %s1601_s14  ;;  %s360_s28 = int_to_ptr.hbm [resolvable:$true] %s359_s28 }
  0x26   : > { %1201 = dma.hbm_to_vmem [thread:$0]  (!%p1739_p5), %s360_s28, 256, %s362_s23, [#allocation11], %s1620_s29, %s1620_s29, %s1621_s30  }
  0x27   : > { %s374_s3 = sshll.u32 %s1936_s7, 4  ;;  %p58_p8 = scmp.eq.s32.totalorder %s1617_s9, 0  ;;  %s375_s3 = int_to_ptr.hbm [resolvable:$true] %s374_s3 }
  0x28   : > { %1204 = dma.hbm_to_vmem [thread:$0]  (!%p1739_p5), %s375_s3, 16, %s377_s27, [#allocation14]  }
  0x29   : > { %p63_p9 = scmp.ne.s32.totalorder %s1601_s14, %s1597_s13  ;;  %s1947_s17 = smov (%p43_p6, %s41_s17), 0 }
  0x2a   : > { %p1779_p10 = por %p58_p8, %p57_p7  ;;  %s45_s29 = ssub.s32 %s1613_s16, %s1947_s17 }
  0x2b   : > { %p1785_p11 = por %p1723_p1, %p63_p9  ;;  %p1218_p12 = scmp.lt.s32.totalorder %s1617_s9, 2 }
  0x2c   : > { %p48_p13 = scmp.eq.s32.totalorder %s45_s29, 0  ;;  %s393_s30 = sand.u32 1, %s1605_s15  }
  0x2d   : > { %s1108_s11 = sshll.u32 %s393_s30, 3  ;;  %s1109_s19 = sshll.u32 %s1613_s16, 3 }
  0x2e   : > { %s1794_s13 = scalar_select %p48_p13, %s1605_s15, %s50_s21  }
  0x2f   : > { %s402_s12 = scalar_lea.hbm %s1910_s0, %s1109_s19  ;;  %s397_s3 = scalar_lea.vmem [#allocation2], %s1108_s11 }
  0x30   : > { %s406_s20 = sshll.u32 %s397_s3, 4  ;;  %s404_s23 = sshll.u32 %s402_s12, 4  ;;  %s407_s20 = int_to_ptr.vmem [resolvable:$true] %s406_s20  ;;  %s405_s23 = int_to_ptr.hbm [resolvable:$true] %s404_s23 }
  0x31   : > { %p1206_p0 = pnand %p1218_p12, %p1779_p10  ;;  %s421_s29 = scalar_lea.hbm %s1911_s1, %s1109_s19 }
  0x32   : > { %s413_s4 = sand.u32 1, %s1617_s9   ;;  %s394_s5 = scalar_lea.sflag [#allocation3], %s393_s30 }
  0x33   : > { %1208 = dma.hbm_to_vmem [thread:$0]  (!%p1206_p0), %s405_s23, 128, %s407_s20, %s394_s5  }
  0x34   : > { %s423_s21 = sshll.u32 %s421_s29, 4  ;;  %s417_s6 = scalar_lea.vmem [#allocation4], %s1108_s11  ;;  %s424_s21 = int_to_ptr.hbm [resolvable:$true] %s423_s21 }
  0x35   : > { %s425_s7 = sshll.u32 %s417_s6, 4  ;;  %s414_s28 = scalar_lea.sflag [#allocation5], %s413_s4  ;;  %s426_s7 = int_to_ptr.vmem [resolvable:$true] %s425_s7 }
  0x36   : > { %1211 = dma.hbm_to_vmem [thread:$0]  (!%p1206_p0), %s424_s21, 128, %s426_s7, %s414_s28  }
  0x37   : > { %434 = sbr.rel (%p1731_p3) target bundleno = 1520 (0x5f0), region = 60  ;;  %s436_s24 = sand.u32 (!%p1731_p3), 1, %s1601_s14  }
  0x38   : > { %s1113_s2 = sshll.u32 (!%p1731_p3), %s436_s24, 3  ;;  %s437_s12 = scalar_lea.sflag (!%p1731_p3), [#allocation3], %s436_s24 }
  0x39   : > { %s440_s3 = scalar_lea.vmem (!%p1731_p3), [#allocation2], %s1113_s2 }
  0x3c   : > { %1572 = dma.done.wait (%p1785_p11), %s437_s12, 128  }
  0x3d   : > { %1574 = vsyncadd (%p1785_p11), %s437_s12, 4294967168  ;;  %s1939_s5 = sadd.s32 4294967295, %s1617_s9   ;;  %s450_s7 = scalar_lea.vmem [#allocation4], %s1113_s2 }
  0x3e   : > { %s446_s6 = sand.u32 1, %s1939_s5  }
  0x3f   : > { %s447_s4 = scalar_lea.sflag [#allocation5], %s446_s6 }
  0x40   : > { %1576 = dma.done.wait (%p1785_p11), %s447_s4, 128  }
  0x41   : > { %1578 = vsyncadd (%p1785_p11), %s447_s4, 4294967168 }
  0x42   : > { %1580 = dma.done.wait (%p1723_p1), [#allocation5], 256  }
  0x43   : > { %1582 = vsyncadd (%p1723_p1), [#allocation5], 4294967040 }
  0x44   : > { %1584 = dma.done.wait (%p1723_p1), [#allocation8], 272  }
  0x45   : > { %1586 = vsyncadd (%p1723_p1), [#allocation8], 4294967024 }
  0x46   : > { %1588 = dma.done.wait (%p1723_p1), [#allocation11], 272  }
  0x47   : > { %1590 = vsyncadd (%p1723_p1), [#allocation11], 4294967024 }
  0x48   : > { %1592 = dma.done.wait (%p1723_p1), [#allocation14], 16  }
  0x49   : > { %1594 = vsyncadd (%p1723_p1), [#allocation14], 4294967280  ;;  %v1157_v0 = vld [vmem:[#allocation9 + $0x8] sm:$0xff]  ;;  %v1156_v1 = vld [vmem:[#allocation9] sm:$0xff]  ;;  %vm556_vm0 = vcmask 261120   ;;  %vm617_vm1 = vcmask 64512  }
  0x4a   : > { %v1155_v2 = vld [vmem:[#allocation6 + $0x8] sm:$0xff]  ;;  %603 = vmatpush.bf16.msra.mxu1 %v1157_v0  ;;  %v534_v3 = vld [vmem:[%s450_s7] sm:$0xff]  ;;  %v1154_v4 = vld [vmem:[#allocation6] sm:$0xff]  ;;  %s1627_s18 = smov 120   ;;  %s1628_s22 = smov 96   ;;  %vm656_vm2 = vcmask 1043456  }
  0x4b   : > { %566 = vmatpush.bf16.msra.mxu0 %v1155_v2  ;;  %v1835_v5 = vld [vmem:[%s440_s3] sm:$0xff]  ;;  %v577_v6 = vpack.c.bf16 %v534_v3, %v534_v3  ;;  %v1289_v11 = vld [vmem:[#allocation7] ss:$0 sm:$0xff]  ;;  %s1629_s25 = smov 112   ;;  %s1630_s30 = smov 104  }
  0x4c   : > { %v539_v7 = vpack.c.bf16 %v1835_v5, %v1835_v5  ;;  %v1288_v8 = vld [vmem:[#allocation10] ss:$0 sm:$0xff]  ;;  %s1631_s11 = smov 88   ;;  %v610_v37 = vld [vmem:[#allocation12] sm:$0xf]  ;;  %s1632_s19 = smov 72  }
  0x4d   : > { %v678_v38 = vsel %vm656_vm2, %v610_v37, 0  ;;  %v611_v52 = vld [vmem:[#allocation12 + $0x4] sm:$0xf]  ;;  %s1633_s20 = smov 80   ;;  %p525_p1 = scmp.lt.s32.totalorder %s1609_s8, 1 }
  0x4e   : > { %604 = vmatpush.bf16.msra.mxu1 %v1156_v1  ;;  %v760_v53 = vsel %vm656_vm2, %v611_v52, 0 }
  0x4f   : > { %567 = vmatpush.bf16.msra.mxu0 %v1154_v4  ;;  %s1949_s8 = smov (!%p525_p1, %s1609_s8), 1 }
  0x50   : > { %s1121_s23 = sshll.u32 %s1949_s8, 3 }
  0x51   : > { %1139 = vmatmul.msk.bf16.vlgmr.msra.gmra.mxu1 %vm556_vm0, %v577_v6  ;;  %s531_s29 = scalar_lea.vmem %s1920_s10, %s1121_s23 }
  0x52   : > { %1130 = vmatmul.msk.bf16.vlgmr.msra.gmra.mxu0 %vm556_vm0, %v539_v7 }
  0xce   : > { %v606_v9 = vpop.f32.mrf.mxu1 }
  0xcf   : > { %v607_v10 = vadd.f32 %v1288_v8, %v606_v9  ;;  %v569_v12 = vpop.f32.mrf.mxu0 }
  0xd0   : > { %v570_v15 = vadd.f32 %v1289_v11, %v569_v12  ;;  %v1290_v11 = vld [vmem:[#allocation13] ss:$0 sm:$0xff] }
  0xd1   : > { %v1841_v13 = vpack.c.bf16 %v607_v10, %v607_v10 }
  0xd2   : > { %v615_v17 = vpack.c.bf16 %v570_v15, %v570_v15 }
  0xd3   : > { %700 = vrot.lane.b32.xlu0 %v1841_v13, %s1627_s18  ;;  %v622_v14 = vsel %vm617_vm1, %v1841_v13, 0 }
  0xd4   : > { %631 = vmatpush.bf16.xpose.msra.mxu2 %v622_v14 }
  0xd6   : > { %v608_v16 = vpop.f32.mrf.mxu1 }
  0xd7   : > { %v571_v18 = vpop.f32.mrf.mxu0 }
  0xdb   : > { %698 = vrot.lane.b32.xlu0 %v615_v17, %s1627_s18  ;;  %1140 = vmatmul.msk.bf16.vlgmr.msra.gmra.mxu2 %vm617_vm1, %v615_v17 }
  0xdc   : > { %769 = vmatpush.bf16.msrb.mxu2 %v760_v53 }
  0xe3   : > { %651 = vrot.lane.b32.xlu0 %v1841_v13, %s1628_s22 }
  0xeb   : > { %778 = vrot.lane.b32.xlu0 %v1841_v13, %s1629_s25 }
  0xf3   : > { %854 = vrot.lane.b32.xlu0 %v615_v17, %s1630_s30 }
  0xfb   : > { %776 = vrot.lane.b32.xlu0 %v615_v17, %s1629_s25 }
 0x145   : > { %v701_v19 = vpop.permute.xlu0 %700 }
 0x146   : > { %v706_v20 = vsel %vm617_vm1, %v701_v19, 0 }
 0x147   : > { %715 = vmatpush.bf16.xpose.msrb.mxu0 %v706_v20 }
 0x14d   : > { %v699_v21 = vpop.permute.xlu0 %698 }
 0x14e   : > { %1143 = vmatmul.msk.bf16.vlgmr.msrb.gmra.mxu0 %vm617_vm1, %v699_v21 }
 0x155   : > { %v652_v22 = vpop.permute.xlu0 %651 }
 0x156   : > { %v658_v23 = vsel %vm656_vm2, %v652_v22, 0 }
 0x157   : > { %667 = vmatpush.bf16.msra.mxu3 %v658_v23 }
 0x15b   : > { %687 = vmatpush.bf16.msrb.mxu3 %v678_v38 }
 0x15d   : > { %v779_v49 = vpop.permute.xlu0 %778 }
 0x15e   : > { %v633_v24 = vpop.f32.mrf.mxu2  ;;  %v784_v51 = vsel %vm617_vm1, %v779_v49, 0 }
 0x15f   : > { %v637_v25 = vmul.f32 0.35355338, %v633_v24 }
 0x161   : > { %v638_v26 = vsel %vm617_vm1, %v637_v25, -inf }
 0x162   : > { %639 = vmax.xlane.f32.xlu1 %v638_v26 }
 0x165   : > { %v855_v62 = vpop.permute.xlu0 %854 }
 0x166   : > { %v635_v27 = vpop.f32.mrf.mxu2 }
 0x16d   : > { %v777_v0 = vpop.permute.xlu0 %776 }
 0x1cb   : > { %v717_v28 = vpop.f32.mrf.mxu0 }
 0x1cc   : > { %v721_v29 = vmul.f32 0.35355338, %v717_v28 }
 0x1ce   : > { %v722_v30 = vsel %vm617_vm1, %v721_v29, -inf }
 0x1cf   : > { %723 = vmax.xlane.f32.xlu1 %v722_v30 }
 0x1d3   : > { %v719_v31 = vpop.f32.mrf.mxu0 }
 0x1d5   : > { %v640_v32 = vpop.xlane.xlu1 %639 }
 0x1d6   : > { %v641_v33 = vsub.f32 %v637_v25, %v640_v32 }
 0x1d8   : > { %v642_v34 = vmul.f32 1.442695, %v641_v33 }
 0x1da   : > { %1291 = vpow2.f32 %v642_v34 }
 0x1e0   : > { %v1292_v35 = vpop.eup %1291 }
 0x1e1   : > { %v644_v36 = vsel %vm617_vm1, %v1292_v35, 0.0 }
 0x1e2   : > { %645 = vadd.xlane.f32.xlu2 %v644_v36 }
 0x1e8   : > { %734 = vrot.lane.b32.xlu1 %v1841_v13, %s1631_s11 }
 0x242   : > { %v724_v39 = vpop.xlane.xlu1 %723 }
 0x243   : > { %v725_v40 = vsub.f32 %v721_v29, %v724_v39  ;;  %v612_v39 = vld [vmem:[#allocation12 + $0x8] sm:$0xf] }
 0x245   : > { %v726_v41 = vmul.f32 1.442695, %v725_v40  ;;  %v838_v40 = vsel %vm656_vm2, %v612_v39, 0 }
 0x247   : > { %1293 = vpow2.f32 %v726_v41 }
 0x24d   : > { %v1294_v42 = vpop.eup %1293 }
 0x24e   : > { %v728_v43 = vsel %vm617_vm1, %v1294_v42, 0.0 }
 0x24f   : > { %729 = vadd.xlane.f32.xlu2 %v728_v43 }
 0x255   : > { %v646_v44 = vpop.xlane.xlu2 %645 }
 0x256   : > { %1295 = vrcp.f32 %v646_v44  ;;  %v613_v44 = vld [vmem:[#allocation12 + $0xc] sm:$0xf] }
 0x25a   : > { %v735_v45 = vpop.permute.xlu1 %734 }
 0x25b   : > { %v740_v46 = vsel %vm656_vm2, %v735_v45, 0  ;;  %v916_v45 = vsel %vm656_vm2, %v613_v44, 0 }
 0x25c   : > { %v1296_v47 = vpop.eup %1295  ;;  %749 = vmatpush.bf16.msrb.mxu1 %v740_v46 }
 0x25d   : > { %v648_v48 = vmul.f32 %v1296_v47, %v1292_v35 }
 0x25f   : > { %v649_v50 = vpack.c.bf16 %v648_v48, %v648_v48 }
 0x260   : > { %847 = vmatpush.bf16.msra.mxu1 %v838_v40 }
 0x261   : > { %1141 = vmatmul.msk.bf16.vlgmr.msra.gmra.mxu3 %vm617_vm1, %v649_v50 }
 0x262   : > { %793 = vmatpush.bf16.xpose.msra.mxu3 %v784_v51 }
 0x267   : > { %856 = vrot.lane.b32.xlu2 %v1841_v13, %s1630_s30 }
 0x2c2   : > { %v730_v54 = vpop.xlane.xlu2 %729 }
 0x2c3   : > { %1297 = vrcp.f32 %v730_v54 }
 0x2c9   : > { %v1298_v55 = vpop.eup %1297 }
 0x2ca   : > { %v732_v56 = vmul.f32 %v1298_v55, %v1294_v42  ;;  %v857_v57 = vpop.permute.xlu2 %856 }
 0x2cb   : > { %v862_v58 = vsel %vm617_vm1, %v857_v57, 0 }
 0x2cc   : > { %871 = vmatpush.bf16.xpose.msra.mxu2 %v862_v58  ;;  %v733_v59 = vpack.c.bf16 %v732_v56, %v732_v56 }
 0x2ce   : > { %1144 = vmatmul.msk.bf16.vlgmr.msrb.gmra.mxu1 %vm617_vm1, %v733_v59 }
 0x2e4   : > { %v669_v60 = vpop.f32.mrf.mxu3 }
 0x2e5   : > { %v673_v61 = vpack.c.bf16 %v669_v60, %v669_v60 }
 0x2e7   : > { %1142 = vmatmul.msk.bf16.vlgmr.msrb.gmra.mxu3 %vm617_vm1, %v673_v61 }
 0x2ec   : > { %v671_v63 = vpop.f32.mrf.mxu3 }
 0x2f7   : > { %1146 = vmatmul.msk.bf16.vlgmr.msra.gmra.mxu3 %vm617_vm1, %v777_v0 }
 0x34b   : > { %v751_v1 = vpop.f32.mrf.mxu1 }
 0x34c   : > { %v755_v2 = vpack.c.bf16 %v751_v1, %v751_v1 }
 0x34e   : > { %1145 = vmatmul.msk.bf16.vlgmr.msrb.gmra.mxu2 %vm617_vm1, %v755_v2 }
 0x353   : > { %v753_v3 = vpop.f32.mrf.mxu1 }
 0x35e   : > { %1149 = vmatmul.msk.bf16.vlgmr.msra.gmra.mxu2 %vm617_vm1, %v855_v62 }
 0x36a   : > { %v689_v4 = vpop.f32.mrf.mxu3 }
 0x36b   : > { %v696_v12 = vadd.f32 %v1290_v11, %v689_v4 }
 0x372   : > { %v691_v6 = vpop.f32.mrf.mxu3 }
 0x37a   : > { %v795_v7 = vpop.f32.mrf.mxu3 }
 0x37b   : > { %v799_v8 = vmul.f32 0.35355338, %v795_v7 }
 0x37d   : > { %v800_v9 = vsel %vm617_vm1, %v799_v8, -inf }
 0x37e   : > { %801 = vmax.xlane.f32.xlu1 %v800_v9 }
 0x382   : > { %v797_v10 = vpop.f32.mrf.mxu3 }
 0x397   : > { %890 = vrot.lane.b32.xlu1 %v1841_v13, %s1632_s19 }
 0x3d1   : > { %v771_v14 = vpop.f32.mrf.mxu2 }
 0x3d2   : > { %v775_v15 = vadd.f32 %v771_v14, %v696_v12 }
 0x3d9   : > { %v773_v16 = vpop.f32.mrf.mxu2 }
 0x3e1   : > { %v873_v17 = vpop.f32.mrf.mxu2 }
 0x3e2   : > { %v877_v18 = vmul.f32 0.35355338, %v873_v17 }
 0x3e4   : > { %v878_v19 = vsel %vm617_vm1, %v877_v18, -inf }
 0x3e5   : > { %879 = vmax.xlane.f32.xlu2 %v878_v19 }
 0x3e9   : > { %v875_v20 = vpop.f32.mrf.mxu2 }
 0x3f1   : > { %v802_v21 = vpop.xlane.xlu1 %801 }
 0x3f2   : > { %v803_v22 = vsub.f32 %v799_v8, %v802_v21 }
 0x3f4   : > { %v804_v23 = vmul.f32 1.442695, %v803_v22 }
 0x3f6   : > { %1299 = vpow2.f32 %v804_v23 }
 0x3fc   : > { %v1300_v24 = vpop.eup %1299 }
 0x3fd   : > { %v806_v25 = vsel %vm617_vm1, %v1300_v24, 0.0 }
 0x3fe   : > { %807 = vadd.xlane.f32.xlu2 %v806_v25 }
 0x409   : > { %v891_v26 = vpop.permute.xlu1 %890 }
 0x40a   : > { %v896_v27 = vsel %vm656_vm2, %v891_v26, 0 }
 0x40b   : > { %905 = vmatpush.bf16.msrb.mxu3 %v896_v27 }
 0x416   : > { %812 = vrot.lane.b32.xlu2 %v1841_v13, %s1633_s20 }
 0x458   : > { %v880_v28 = vpop.xlane.xlu2 %879 }
 0x459   : > { %v881_v29 = vsub.f32 %v877_v18, %v880_v28 }
 0x45b   : > { %v882_v30 = vmul.f32 1.442695, %v881_v29 }
 0x45d   : > { %1301 = vpow2.f32 %v882_v30 }
 0x463   : > { %v1302_v31 = vpop.eup %1301 }
 0x464   : > { %v884_v32 = vsel %vm617_vm1, %v1302_v31, 0.0 }
 0x465   : > { %885 = vadd.xlane.f32.xlu0 %v884_v32 }
 0x471   : > { %v808_v33 = vpop.xlane.xlu2 %807 }
 0x472   : > { %1303 = vrcp.f32 %v808_v33 }
 0x478   : > { %v1304_v34 = vpop.eup %1303 }
 0x479   : > { %v810_v35 = vmul.f32 %v1304_v34, %v1300_v24  ;;  %v813_v36 = vpop.permute.xlu2 %812 }
 0x47a   : > { %v818_v37 = vsel %vm656_vm2, %v813_v36, 0 }
 0x47b   : > { %v811_v38 = vpack.c.bf16 %v810_v35, %v810_v35  ;;  %827 = vmatpush.bf16.msra.mxu0 %v818_v37 }
 0x47e   : > { %1147 = vmatmul.msk.bf16.vlgmr.msra.gmra.mxu0 %vm617_vm1, %v811_v38 }
 0x47f   : > { %925 = vmatpush.bf16.msrb.mxu0 %v916_v45 }
 0x4d8   : > { %v886_v13 = vpop.xlane.xlu0 %885 }
 0x4d9   : > { %1305 = vrcp.f32 %v886_v13 }
 0x4df   : > { %v1306_v41 = vpop.eup %1305 }
 0x4e0   : > { %v888_v42 = vmul.f32 %v1306_v41, %v1302_v31 }
 0x4e2   : > { %v889_v43 = vpack.c.bf16 %v888_v42, %v888_v42 }
 0x4e4   : > { %1150 = vmatmul.msk.bf16.vlgmr.msrb.gmra.mxu3 %vm617_vm1, %v889_v43 }
 0x4fb   : > { %v829_v46 = vpop.f32.mrf.mxu0 }
 0x4fc   : > { %v833_v47 = vpack.c.bf16 %v829_v46, %v829_v46 }
 0x4fe   : > { %1148 = vmatmul.msk.bf16.vlgmr.msra.gmra.mxu1 %vm617_vm1, %v833_v47 }
 0x503   : > { %v831_v48 = vpop.f32.mrf.mxu0 }
 0x567   : > { %v907_v49 = vpop.f32.mrf.mxu3 }
 0x568   : > { %v911_v50 = vpack.c.bf16 %v907_v49, %v907_v49 }
 0x56a   : > { %1151 = vmatmul.msk.bf16.vlgmr.msrb.gmra.mxu0 %vm617_vm1, %v911_v50 }
 0x56f   : > { %v909_v51 = vpop.f32.mrf.mxu3 }
 0x57b   : > { %v849_v52 = vpop.f32.mrf.mxu1 }
 0x57c   : > { %v853_v53 = vadd.f32 %v849_v52, %v775_v15 }
 0x583   : > { %v851_v54 = vpop.f32.mrf.mxu1 }
 0x5e7   : > { %v927_v55 = vpop.f32.mrf.mxu0 }
 0x5e8   : > { %v931_v56 = vadd.f32 %v927_v55, %v853_v53 }
 0x5ea   : > { %v932_v57 = vadd.f32 %v931_v56, %v1835_v5 }
 0x5ec   : > { %933 = vst.msk [vmem:[%s531_s29] sm:$0xff] %vm556_vm0, %v932_v57 }
 0x5ef   : > { %v929_v58 = vpop.f32.mrf.mxu0 }
 0x5f0 PF: > { %s29_s9 = sadd.s32 1, %s1617_s9   ;;  %s1940_s21 = smov %s1794_s13 }
 0x5f1   : > { %p26_p2 = scmp.ge.s32.totalorder %s29_s9, 4   ;;  %s1941_s13 = smov %s1601_s14 }
 0x5f2   : > { %s1942_s14 = smov %s1605_s15  ;;  %s1943_s15 = smov %s1940_s21 }
 0x5f3   : > { %s1944_s8 = smov %s1613_s16  ;;  %s1945_s16 = smov %s1947_s17 }
 0x5f4   :  { %28 = sbr.rel (!%p26_p2) target bundleno = 16 (0x10), region = 137 }
 0x5f9   :  { %959 = vsyncpa [#allocation3], 1 }
 0x5fa   :  { %961 = vsyncpa [#allocation3 + $0x1], 1 }
 0x5fb   :  { %962 = vsyncpa [#allocation5], 1 }
 0x5fc   :  { %964 = vsyncpa [#allocation5 + $0x1], 1 }
 0x5fd   :  { %965 = vsyncpa [#allocation8], 1 }
 0x5fe   :  { %966 = vsyncpa [#allocation11], 1 }
 0x5ff   :  { %967 = vsyncpa [#allocation14], 1 }

// kernel: transformer_decoder.10
= control target key start
LH: loop header
LB: loop body
LE: loop exit
PB: predicated region body
PF: predicated region fallthrough
CT: control target
= control target key end

     0   :  { %15 = vsyncpa [#allocation3], 0  ;;  %s1369_s0 = inlined_call_operand.vmem [shape: f32[2,8,32], index: 0, kind: input, shape index: {}, may-alias: {0,1}]   ;;  %s1370_s1 = inlined_call_operand.vmem [shape: f32[2,8,32], index: 1, kind: input, shape index: {}, may-alias: {0,1}]   ;;  %s1371_s2 = inlined_call_operand.vmem [shape: bf16[32,32], index: 2, kind: input, shape index: {}]   ;;  %s1372_s3 = inlined_call_operand.vmem [shape: f32[1,32], index: 3, kind: input, shape index: {}]   ;;  %s1373_s4 = inlined_call_operand.vmem [shape: bf16[32,64], index: 4, kind: input, shape index: {}]   ;;  %s1374_s5 = inlined_call_operand.hbm [shape: f32[1,64], index: 5, kind: input, shape index: {}]   ;;  %s1375_s6 = inlined_call_operand.hbm [shape: bf16[32,32], index: 6, kind: input, shape index: {}]   ;;  %s1376_s7 = inlined_call_operand.vmem [shape: f32[1,32], index: 7, kind: input, shape index: {}]   ;;  %s1377_s8 = inlined_call_operand.vmem [shape: f32[1,32], index: 8, kind: input, shape index: {}]   ;;  %s1378_s9 = inlined_call_operand.vmem [shape: f32[1,32], index: 9, kind: input, shape index: {}]   ;;  %s1379_s10 = inlined_call_operand.vmem [shape: f32[2,8,32], index: 10, kind: output, shape index: {}]  }
   0x1   :  { %16 = vsyncpa [#allocation5], 0  ;;  %s1225_s13 = smov 0   ;;  %s1227_s14 = smov 0  }
   0x2   :  { %s1229_s15 = smov 0  }
   0x3 LB: > { %s946_s8 = sadd.s32 4294967295, %s1157_s15   ;;  %s34_s9 = sadd.s32 1, %s1153_s14  ;;  %s1157_s15 = sphi %s1229_s15, %s22_s15   ;;  %s1153_s14 = sphi %s1227_s14, %s1383_s14   ;;  %s1149_s13 = sphi %s1225_s13, %s1382_s13  }
   0x4   : > { %p36_p0 = scmp.ge.s32.totalorder %s34_s9, 2  ;;  %p948_p1 = scmp.ge.s32.totalorder %s1157_s15, 1 }
   0x5   : > { %p289_p2 = scmp.lt.s32.totalorder %s1157_s15, 3  ;;  %p1250_p4 = scmp.eq.s32.totalorder %s946_s8, 0 }
   0x6   : > { %s1385_s9 = smov (%p36_p0, %s34_s9), 0  ;;  %s310_s20 = sshll.u32 %s1374_s5, 4  ;;  %s311_s20 = int_to_ptr.hbm [resolvable:$true] %s310_s20 }
   0x7   : > { %p1246_p3 = pnand %p948_p1, %p289_p2  ;;  %s1159_s21 = smov [#allocation2]  }
   0x8   : > { %s312_s22 = sshll.u32 %s1159_s21, 4  ;;  %s321_s25 = sshll.u32 %s1375_s6, 4  ;;  %s313_s22 = int_to_ptr.vmem [resolvable:$true] %s312_s22  ;;  %s322_s25 = int_to_ptr.hbm [resolvable:$true] %s321_s25 }
   0x9   : > { %p1002_p5 = pneg %p1246_p3  ;;  %s1160_s26 = smov [#allocation4]  }
   0xa   : > { %s323_s27 = sshll.u32 %s1160_s26, 4  ;;  %s1161_s28 = smov 64   ;;  %s324_s27 = int_to_ptr.vmem [resolvable:$true] %s323_s27 }
   0xb   : > { %p1003_p6 = pnand %p1250_p4, %p1002_p5  ;;  %s1162_s29 = smov 4  }
   0xc   : > { %365 = sbr.rel (%p1246_p3) target bundleno = 1467 (0x5bb), region = 60 }
   0xd   : > { %1005 = dma.hbm_to_vmem [thread:$0]  (!%p1003_p6), %s311_s20, 16, %s313_s22, [#allocation3]  }
   0xe   : > { %1008 = dma.hbm_to_vmem [thread:$0]  (!%p1003_p6), %s322_s25, 256, %s324_s27, [#allocation5], %s1161_s28, %s1161_s28, %s1162_s29  }
  0x11   : > { %1140 = dma.done.wait (%p1250_p4), [#allocation3], 16  }
  0x12   : > { %1142 = vsyncadd (%p1250_p4), [#allocation3], 4294967280 }
  0x13   : > { %1144 = dma.done.wait (%p1250_p4), [#allocation5], 256  }
  0x14   : > { %1146 = vsyncadd (%p1250_p4), [#allocation5], 4294967040  ;;  %p417_p7 = scmp.lt.s32.totalorder %s1149_s13, 1  ;;  %v993_v0 = vld [vmem:[%s1373_s4 + $0x8] sm:$0xff]  ;;  %v992_v1 = vld [vmem:[%s1373_s4] sm:$0xff]  ;;  %vm459_vm0 = vcmask 261120  }
  0x15   : > { %v991_v2 = vld [vmem:[%s1371_s2 + $0x8] sm:$0xff]  ;;  %506 = vmatpush.bf16.msra.mxu1 %v993_v0  ;;  %v990_v4 = vld [vmem:[%s1371_s2] sm:$0xff]  ;;  %vm520_vm1 = vcmask 64512   ;;  %s1163_s28 = smov 120   ;;  %s1164_s29 = smov 96   ;;  %vm559_vm2 = vcmask 1043456  }
  0x16   : > { %s1387_s13 = smov (!%p417_p7, %s1149_s13), 1  ;;  %469 = vmatpush.bf16.msra.mxu0 %v991_v2  ;;  %v1048_v8 = vld [vmem:[#allocation2] ss:$0 sm:$0xff]  ;;  %s1165_s11 = smov 112   ;;  %v513_v37 = vld [vmem:[#allocation4] sm:$0xf] }
  0x17   : > { %s1276_s30 = sshll.u32 %s1387_s13, 3  ;;  %v1049_v11 = vld [vmem:[%s1372_s3] ss:$0 sm:$0xff]  ;;  %s1166_s12 = smov 104   ;;  %v581_v38 = vsel %vm559_vm2, %v513_v37, 0 }
  0x18   : > { %s427_s8 = scalar_lea.vmem %s1370_s1, %s1276_s30  ;;  %s423_s17 = scalar_lea.vmem %s1369_s0, %s1276_s30  ;;  %v514_v52 = vld [vmem:[#allocation4 + $0x4] sm:$0xf] }
  0x19   : > { %v437_v3 = vld [vmem:[%s427_s8] sm:$0xff]  ;;  %507 = vmatpush.bf16.msra.mxu1 %v992_v1  ;;  %s1167_s8 = smov 88   ;;  %v663_v53 = vsel %vm559_vm2, %v514_v52, 0  ;;  %s1168_s16 = smov 72  }
  0x1a   : > { %v1298_v5 = vld [vmem:[%s423_s17] sm:$0xff]  ;;  %v480_v6 = vpack.c.bf16 %v437_v3, %v437_v3  ;;  %470 = vmatpush.bf16.msra.mxu0 %v990_v4  ;;  %s1169_s20 = smov 80   ;;  %s434_s22 = scalar_lea.vmem %s1379_s10, %s1276_s30 }
  0x1b   : > { %v442_v7 = vpack.c.bf16 %v1298_v5, %v1298_v5 }
  0x1c   : > { %975 = vmatmul.msk.bf16.vlgmr.msra.gmra.mxu1 %vm459_vm0, %v480_v6 }
  0x1d   : > { %966 = vmatmul.msk.bf16.vlgmr.msra.gmra.mxu0 %vm459_vm0, %v442_v7 }
  0x99   : > { %v509_v9 = vpop.f32.mrf.mxu1 }
  0x9a   : > { %v510_v10 = vadd.f32 %v1048_v8, %v509_v9  ;;  %v472_v12 = vpop.f32.mrf.mxu0 }
  0x9b   : > { %v473_v15 = vadd.f32 %v1049_v11, %v472_v12  ;;  %v1050_v11 = vld [vmem:[%s1376_s7] ss:$0 sm:$0xff] }
  0x9c   : > { %v1307_v13 = vpack.c.bf16 %v510_v10, %v510_v10 }
  0x9d   : > { %v518_v17 = vpack.c.bf16 %v473_v15, %v473_v15 }
  0x9e   : > { %603 = vrot.lane.b32.xlu0 %v1307_v13, %s1163_s28  ;;  %v525_v14 = vsel %vm520_vm1, %v1307_v13, 0 }
  0x9f   : > { %534 = vmatpush.bf16.xpose.msra.mxu2 %v525_v14 }
  0xa1   : > { %v511_v16 = vpop.f32.mrf.mxu1 }
  0xa2   : > { %v474_v18 = vpop.f32.mrf.mxu0 }
  0xa6   : > { %601 = vrot.lane.b32.xlu0 %v518_v17, %s1163_s28  ;;  %976 = vmatmul.msk.bf16.vlgmr.msra.gmra.mxu2 %vm520_vm1, %v518_v17 }
  0xa7   : > { %672 = vmatpush.bf16.msrb.mxu2 %v663_v53 }
  0xae   : > { %554 = vrot.lane.b32.xlu0 %v1307_v13, %s1164_s29 }
  0xb6   : > { %681 = vrot.lane.b32.xlu0 %v1307_v13, %s1165_s11 }
  0xbe   : > { %757 = vrot.lane.b32.xlu0 %v518_v17, %s1166_s12 }
  0xc6   : > { %679 = vrot.lane.b32.xlu0 %v518_v17, %s1165_s11 }
 0x110   : > { %v604_v19 = vpop.permute.xlu0 %603 }
 0x111   : > { %v609_v20 = vsel %vm520_vm1, %v604_v19, 0 }
 0x112   : > { %618 = vmatpush.bf16.xpose.msrb.mxu0 %v609_v20 }
 0x118   : > { %v602_v21 = vpop.permute.xlu0 %601 }
 0x119   : > { %979 = vmatmul.msk.bf16.vlgmr.msrb.gmra.mxu0 %vm520_vm1, %v602_v21 }
 0x120   : > { %v555_v22 = vpop.permute.xlu0 %554 }
 0x121   : > { %v561_v23 = vsel %vm559_vm2, %v555_v22, 0 }
 0x122   : > { %570 = vmatpush.bf16.msra.mxu3 %v561_v23 }
 0x126   : > { %590 = vmatpush.bf16.msrb.mxu3 %v581_v38 }
 0x128   : > { %v682_v49 = vpop.permute.xlu0 %681 }
 0x129   : > { %v536_v24 = vpop.f32.mrf.mxu2  ;;  %v687_v51 = vsel %vm520_vm1, %v682_v49, 0 }
 0x12a   : > { %v540_v25 = vmul.f32 0.35355338, %v536_v24 }
 0x12c   : > { %v541_v26 = vsel %vm520_vm1, %v540_v25, -inf }
 0x12d   : > { %542 = vmax.xlane.f32.xlu1 %v541_v26 }
 0x130   : > { %v758_v62 = vpop.permute.xlu0 %757 }
 0x131   : > { %v538_v27 = vpop.f32.mrf.mxu2 }
 0x138   : > { %v680_v0 = vpop.permute.xlu0 %679 }
 0x196   : > { %v620_v28 = vpop.f32.mrf.mxu0 }
 0x197   : > { %v624_v29 = vmul.f32 0.35355338, %v620_v28 }
 0x199   : > { %v625_v30 = vsel %vm520_vm1, %v624_v29, -inf }
 0x19a   : > { %626 = vmax.xlane.f32.xlu1 %v625_v30 }
 0x19e   : > { %v622_v31 = vpop.f32.mrf.mxu0 }
 0x1a0   : > { %v543_v32 = vpop.xlane.xlu1 %542 }
 0x1a1   : > { %v544_v33 = vsub.f32 %v540_v25, %v543_v32 }
 0x1a3   : > { %v545_v34 = vmul.f32 1.442695, %v544_v33 }
 0x1a5   : > { %1051 = vpow2.f32 %v545_v34 }
 0x1ab   : > { %v1052_v35 = vpop.eup %1051 }
 0x1ac   : > { %v547_v36 = vsel %vm520_vm1, %v1052_v35, 0.0 }
 0x1ad   : > { %548 = vadd.xlane.f32.xlu2 %v547_v36 }
 0x1b3   : > { %637 = vrot.lane.b32.xlu1 %v1307_v13, %s1167_s8 }
 0x20d   : > { %v627_v39 = vpop.xlane.xlu1 %626 }
 0x20e   : > { %v628_v40 = vsub.f32 %v624_v29, %v627_v39  ;;  %v515_v39 = vld [vmem:[#allocation4 + $0x8] sm:$0xf] }
 0x210   : > { %v629_v41 = vmul.f32 1.442695, %v628_v40  ;;  %v741_v40 = vsel %vm559_vm2, %v515_v39, 0 }
 0x212   : > { %1053 = vpow2.f32 %v629_v41 }
 0x218   : > { %v1054_v42 = vpop.eup %1053 }
 0x219   : > { %v631_v43 = vsel %vm520_vm1, %v1054_v42, 0.0 }
 0x21a   : > { %632 = vadd.xlane.f32.xlu2 %v631_v43 }
 0x220   : > { %v549_v44 = vpop.xlane.xlu2 %548 }
 0x221   : > { %1055 = vrcp.f32 %v549_v44  ;;  %v516_v44 = vld [vmem:[#allocation4 + $0xc] sm:$0xf] }
 0x225   : > { %v638_v45 = vpop.permute.xlu1 %637 }
 0x226   : > { %v643_v46 = vsel %vm559_vm2, %v638_v45, 0  ;;  %v819_v45 = vsel %vm559_vm2, %v516_v44, 0 }
 0x227   : > { %v1056_v47 = vpop.eup %1055  ;;  %652 = vmatpush.bf16.msrb.mxu1 %v643_v46 }
 0x228   : > { %v551_v48 = vmul.f32 %v1056_v47, %v1052_v35 }
 0x22a   : > { %v552_v50 = vpack.c.bf16 %v551_v48, %v551_v48 }
 0x22b   : > { %750 = vmatpush.bf16.msra.mxu1 %v741_v40 }
 0x22c   : > { %977 = vmatmul.msk.bf16.vlgmr.msra.gmra.mxu3 %vm520_vm1, %v552_v50 }
 0x22d   : > { %696 = vmatpush.bf16.xpose.msra.mxu3 %v687_v51 }
 0x232   : > { %759 = vrot.lane.b32.xlu2 %v1307_v13, %s1166_s12 }
 0x28d   : > { %v633_v54 = vpop.xlane.xlu2 %632 }
 0x28e   : > { %1057 = vrcp.f32 %v633_v54 }
 0x294   : > { %v1058_v55 = vpop.eup %1057 }
 0x295   : > { %v635_v56 = vmul.f32 %v1058_v55, %v1054_v42  ;;  %v760_v57 = vpop.permute.xlu2 %759 }
 0x296   : > { %v765_v58 = vsel %vm520_vm1, %v760_v57, 0 }
 0x297   : > { %774 = vmatpush.bf16.xpose.msra.mxu2 %v765_v58  ;;  %v636_v59 = vpack.c.bf16 %v635_v56, %v635_v56 }
 0x299   : > { %980 = vmatmul.msk.bf16.vlgmr.msrb.gmra.mxu1 %vm520_vm1, %v636_v59 }
 0x2af   : > { %v572_v60 = vpop.f32.mrf.mxu3 }
 0x2b0   : > { %v576_v61 = vpack.c.bf16 %v572_v60, %v572_v60 }
 0x2b2   : > { %978 = vmatmul.msk.bf16.vlgmr.msrb.gmra.mxu3 %vm520_vm1, %v576_v61 }
 0x2b7   : > { %v574_v63 = vpop.f32.mrf.mxu3 }
 0x2c2   : > { %982 = vmatmul.msk.bf16.vlgmr.msra.gmra.mxu3 %vm520_vm1, %v680_v0 }
 0x316   : > { %v654_v1 = vpop.f32.mrf.mxu1 }
 0x317   : > { %v658_v2 = vpack.c.bf16 %v654_v1, %v654_v1 }
 0x319   : > { %981 = vmatmul.msk.bf16.vlgmr.msrb.gmra.mxu2 %vm520_vm1, %v658_v2 }
 0x31e   : > { %v656_v3 = vpop.f32.mrf.mxu1 }
 0x329   : > { %985 = vmatmul.msk.bf16.vlgmr.msra.gmra.mxu2 %vm520_vm1, %v758_v62 }
 0x335   : > { %v592_v4 = vpop.f32.mrf.mxu3 }
 0x336   : > { %v599_v12 = vadd.f32 %v1050_v11, %v592_v4 }
 0x33d   : > { %v594_v6 = vpop.f32.mrf.mxu3 }
 0x345   : > { %v698_v7 = vpop.f32.mrf.mxu3 }
 0x346   : > { %v702_v8 = vmul.f32 0.35355338, %v698_v7 }
 0x348   : > { %v703_v9 = vsel %vm520_vm1, %v702_v8, -inf }
 0x349   : > { %704 = vmax.xlane.f32.xlu1 %v703_v9 }
 0x34d   : > { %v700_v10 = vpop.f32.mrf.mxu3 }
 0x362   : > { %793 = vrot.lane.b32.xlu1 %v1307_v13, %s1168_s16 }
 0x39c   : > { %v674_v14 = vpop.f32.mrf.mxu2 }
 0x39d   : > { %v678_v15 = vadd.f32 %v674_v14, %v599_v12 }
 0x3a4   : > { %v676_v16 = vpop.f32.mrf.mxu2 }
 0x3ac   : > { %v776_v17 = vpop.f32.mrf.mxu2 }
 0x3ad   : > { %v780_v18 = vmul.f32 0.35355338, %v776_v17 }
 0x3af   : > { %v781_v19 = vsel %vm520_vm1, %v780_v18, -inf }
 0x3b0   : > { %782 = vmax.xlane.f32.xlu2 %v781_v19 }
 0x3b4   : > { %v778_v20 = vpop.f32.mrf.mxu2 }
 0x3bc   : > { %v705_v21 = vpop.xlane.xlu1 %704 }
 0x3bd   : > { %v706_v22 = vsub.f32 %v702_v8, %v705_v21 }
 0x3bf   : > { %v707_v23 = vmul.f32 1.442695, %v706_v22 }
 0x3c1   : > { %1059 = vpow2.f32 %v707_v23 }
 0x3c7   : > { %v1060_v24 = vpop.eup %1059 }
 0x3c8   : > { %v709_v25 = vsel %vm520_vm1, %v1060_v24, 0.0 }
 0x3c9   : > { %710 = vadd.xlane.f32.xlu2 %v709_v25 }
 0x3d4   : > { %v794_v26 = vpop.permute.xlu1 %793 }
 0x3d5   : > { %v799_v27 = vsel %vm559_vm2, %v794_v26, 0 }
 0x3d6   : > { %808 = vmatpush.bf16.msrb.mxu3 %v799_v27 }
 0x3e1   : > { %715 = vrot.lane.b32.xlu2 %v1307_v13, %s1169_s20 }
 0x423   : > { %v783_v28 = vpop.xlane.xlu2 %782 }
 0x424   : > { %v784_v29 = vsub.f32 %v780_v18, %v783_v28 }
 0x426   : > { %v785_v30 = vmul.f32 1.442695, %v784_v29 }
 0x428   : > { %1061 = vpow2.f32 %v785_v30 }
 0x42e   : > { %v1062_v31 = vpop.eup %1061 }
 0x42f   : > { %v787_v32 = vsel %vm520_vm1, %v1062_v31, 0.0 }
 0x430   : > { %788 = vadd.xlane.f32.xlu0 %v787_v32 }
 0x43c   : > { %v711_v33 = vpop.xlane.xlu2 %710 }
 0x43d   : > { %1063 = vrcp.f32 %v711_v33 }
 0x443   : > { %v1064_v34 = vpop.eup %1063 }
 0x444   : > { %v713_v35 = vmul.f32 %v1064_v34, %v1060_v24  ;;  %v716_v36 = vpop.permute.xlu2 %715 }
 0x445   : > { %v721_v37 = vsel %vm559_vm2, %v716_v36, 0 }
 0x446   : > { %v714_v38 = vpack.c.bf16 %v713_v35, %v713_v35  ;;  %730 = vmatpush.bf16.msra.mxu0 %v721_v37 }
 0x449   : > { %983 = vmatmul.msk.bf16.vlgmr.msra.gmra.mxu0 %vm520_vm1, %v714_v38 }
 0x44a   : > { %828 = vmatpush.bf16.msrb.mxu0 %v819_v45 }
 0x4a3   : > { %v789_v13 = vpop.xlane.xlu0 %788 }
 0x4a4   : > { %1065 = vrcp.f32 %v789_v13 }
 0x4aa   : > { %v1066_v41 = vpop.eup %1065 }
 0x4ab   : > { %v791_v42 = vmul.f32 %v1066_v41, %v1062_v31 }
 0x4ad   : > { %v792_v43 = vpack.c.bf16 %v791_v42, %v791_v42 }
 0x4af   : > { %986 = vmatmul.msk.bf16.vlgmr.msrb.gmra.mxu3 %vm520_vm1, %v792_v43 }
 0x4c6   : > { %v732_v46 = vpop.f32.mrf.mxu0 }
 0x4c7   : > { %v736_v47 = vpack.c.bf16 %v732_v46, %v732_v46 }
 0x4c9   : > { %984 = vmatmul.msk.bf16.vlgmr.msra.gmra.mxu1 %vm520_vm1, %v736_v47 }
 0x4ce   : > { %v734_v48 = vpop.f32.mrf.mxu0 }
 0x532   : > { %v810_v49 = vpop.f32.mrf.mxu3 }
 0x533   : > { %v814_v50 = vpack.c.bf16 %v810_v49, %v810_v49 }
 0x535   : > { %987 = vmatmul.msk.bf16.vlgmr.msrb.gmra.mxu0 %vm520_vm1, %v814_v50 }
 0x53a   : > { %v812_v51 = vpop.f32.mrf.mxu3 }
 0x546   : > { %v752_v52 = vpop.f32.mrf.mxu1 }
 0x547   : > { %v756_v53 = vadd.f32 %v752_v52, %v678_v15 }
 0x54e   : > { %v754_v54 = vpop.f32.mrf.mxu1 }
 0x5b2   : > { %v830_v55 = vpop.f32.mrf.mxu0 }
 0x5b3   : > { %v834_v56 = vadd.f32 %v830_v55, %v756_v53 }
 0x5b5   : > { %v835_v57 = vadd.f32 %v834_v56, %v1298_v5 }
 0x5b7   : > { %836 = vst.msk [vmem:[%s434_s22] sm:$0xff] %vm459_vm0, %v835_v57 }
 0x5ba   : > { %v832_v58 = vpop.f32.mrf.mxu0 }
 0x5bb PF: > { %s22_s15 = sadd.s32 1, %s1157_s15   ;;  %s1382_s13 = smov %s1153_s14 }
 0x5bc   : > { %p19_p8 = scmp.ge.s32.totalorder %s22_s15, 4   ;;  %s1383_s14 = smov %s1385_s9 }
 0x5be   :  { %21 = sbr.rel (!%p19_p8) target bundleno = 3 (0x3), region = 102 }
 0x5c3   :  { %862 = vsyncpa [#allocation3], 1 }
 0x5c4   :  { %864 = vsyncpa [#allocation3 + $0x1], 1 }
 0x5c5   :  { %865 = vsyncpa [#allocation5], 1 }

// kernel: transformer_decoder.13
= control target key start
LH: loop header
LB: loop body
LE: loop exit
PB: predicated region body
PF: predicated region fallthrough
CT: control target
= control target key end

     0   :  { %8 = vsyncpa [#allocation3], 0  ;;  %s601_s0 = inlined_call_operand.vmem [shape: f32[2,8,32], index: 0, kind: input, shape index: {}]   ;;  %s602_s1 = inlined_call_operand.vmem [shape: f32[1,32], index: 1, kind: input, shape index: {}]   ;;  %s603_s2 = inlined_call_operand.vmem [shape: f32[1,32], index: 2, kind: input, shape index: {}]   ;;  %s604_s3 = inlined_call_operand.hbm [shape: f32[2,8,32], index: 3, kind: output, shape index: {}]  }
   0x1   :  { %10 = vsyncpa [#allocation3 + $0x1], 0  ;;  %s495_s12 = smov 0   ;;  %s497_s13 = smov 0  }
   0x2   :  { %s499_s14 = smov 0   ;;  %s501_s15 = smov 0  }
   0x3   :  { %s503_s16 = smov 0   ;;  %s505_s17 = smov 0  }
   0x4 LB: > { %s321_s18 = sadd.s32 4294967295, %s472_s17   ;;  %s322_s19 = sadd.s32 4294967294, %s472_s17   ;;  %s472_s17 = sphi %s505_s17, %s16_s17   ;;  %s468_s16 = sphi %s503_s16, %s611_s16   ;;  %s464_s15 = sphi %s501_s15, %s610_s15   ;;  %s460_s14 = sphi %s499_s14, %s609_s14   ;;  %s456_s13 = sphi %s497_s13, %s608_s13   ;;  %s452_s12 = sphi %s495_s12, %s607_s12  }
   0x5   : > { %s28_s20 = sadd.s32 1, %s468_s16  ;;  %s107_s21 = sadd.s32 1, %s460_s14 }
   0x6   : > { %p30_p0 = scmp.ge.s32.totalorder %s28_s20, 2  ;;  %p117_p1 = scmp.ne.s32.totalorder %s460_s14, %s456_s13 }
   0x7   : > { %p118_p2 = scmp.eq.s32.totalorder %s321_s18, 1  ;;  %p123_p3 = scmp.ne.s32.totalorder %s456_s13, %s452_s12 }
   0x8   : > { %s613_s20 = smov (%p30_p0, %s28_s20), 0  ;;  %p124_p5 = scmp.eq.s32.totalorder %s322_s19, 1 }
   0x9   : > { %p535_p4 = por %p118_p2, %p117_p1  ;;  %s102_s23 = ssub.s32 %s468_s16, %s613_s20 }
   0xa   : > { %p325_p6 = scmp.ge.s32.totalorder %s472_s17, 1  ;;  %p105_p7 = scmp.eq.s32.totalorder %s102_s23, 0 }
   0xb   : > { %p542_p8 = por %p124_p5, %p123_p3  ;;  %p158_p9 = scmp.lt.s32.totalorder %s472_s17, 3 }
   0xc   : > { %s548_s25 = scalar_select %p105_p7, %s460_s14, %s107_s21  }
   0xd   : > { %p159_p10 = pnand %p325_p6, %p158_p9 }
   0xe   : > { %p184_p11 = scmp.lt.s32.totalorder (!%p159_p10), %s464_s15, 1  ;;  %s181_s4 = sand.u32 (!%p159_p10), 1, %s456_s13  }
   0xf   : > { %162 = sbr.rel (%p159_p10) target bundleno = 296 (0x128), region = 32  ;;  %s326_s5 = sshll.u32 (!%p159_p10), %s181_s4, 3 }
  0x10   : > { %s329_s6 = sshll.u32 (!%p159_p10), %s464_s15, 3  ;;  %s183_s21 = scalar_lea.vmem (!%p159_p10), [#allocation2], %s326_s5 }
  0x11   : > { %s245_s11 = scalar_lea.hbm (!%p159_p10), %s604_s3, %s329_s6  ;;  %s414_s5 = scalar_lea.hbm (!%p159_p10), %s604_s3, 16 }
  0x12   : > { %s249_s23 = sshll.u32 (!%p159_p10), %s245_s11, 4  ;;  %s250_s23 = int_to_ptr.hbm [resolvable:$true] %s249_s23 }
  0x14   : > { %s185_s26 = scalar_select %p184_p11, %s464_s15, 1  ;;  %vm194_vm0 = vcmask 261120   ;;  %v474_v2 = vmov 32.0   ;;  %v388_v23 = vld [vmem:[%s602_s1] ss:$0 sm:$0xff] }
  0x15   : > { %390 = vrcp.f32 %v474_v2  ;;  %v389_v26 = vld [vmem:[%s603_s2] ss:$0 sm:$0xff]  ;;  %s247_s15 = sshll.u32 %s183_s21, 4  ;;  %s248_s15 = int_to_ptr.vmem [resolvable:$true] %s247_s15 }
  0x16   : > { %s327_s27 = sshll.u32 %s185_s26, 3  ;;  %s234_s26 = scalar_lea.sflag [#allocation3], %s181_s4 }
  0x17   : > { %s190_s30 = scalar_lea.vmem %s601_s0, %s327_s27  ;;  %s408_s27 = sshra.s32 %s250_s23, 4  ;;  %s409_s27 = int_to_ptr.hbm [resolvable:$true] %s408_s27 }
  0x18   : > { %v191_v0 = vld [vmem:[%s190_s30] sm:$0xff]  ;;  %s410_s28 = scalar_lea.hbm %s409_s27, 8  ;;  %p415_p1 = scmp.lt.s32.totalorder %s409_s27, %s604_s3 }
  0x19   : > { %v195_v1 = vsel %vm194_vm0, %v191_v0, 0.0  ;;  %p411_p12 = scmp.ne.s32.totalorder %s409_s27, %s410_s28  ;;  %p416_p2 = scmp.lt.s32.totalorder %s414_s5, %s410_s28 }
  0x1a   : > { %196 = vadd.xlane.f32.xlu0 %v195_v1 }
  0x1b   : > { %v391_v3 = vpop.eup %390  ;;  %p412_p13 = pnand %p411_p12, %p535_p4  ;;  %p417_p3 = por %p416_p2, %p415_p1 }
  0x1c   : > { %v199_v4 = vmul.f32 32.0, %v391_v3  ;;  %vm203_vm1 = vweird.f32 %v391_v3 }
  0x1d   : > { %p413_p0 = pneg %p412_p13 }
  0x1e   : > { %v200_v5 = vsub.f32 1.0, %v199_v4 }
  0x1f   : > { %p418_p5 = pnand %p417_p3, %p413_p0 }
  0x20   : > { %v201_v6 = vmul.f32 %v391_v3, %v200_v5 }
  0x22   : > { %v202_v7 = vadd.f32 %v391_v3, %v201_v6 }
  0x24   : > { %v204_v8 = vsel %vm203_vm1, %v391_v3, %v202_v7 }
  0x8d   : > { %v197_v9 = vpop.xlane.xlu0 %196 }
  0x8e   : > { %v205_v10 = vmul.f32 %v204_v8, %v197_v9 }
  0x90   : > { %v206_v11 = vsub.f32 %v191_v0, %v205_v10 }
  0x92   : > { %v207_v12 = vmul.f32 %v206_v11, %v206_v11 }
  0x94   : > { %v208_v13 = vsel %vm194_vm0, %v207_v12, 0.0 }
  0x95   : > { %209 = vadd.xlane.f32.xlu0 %v208_v13 }
 0x108   : > { %v210_v14 = vpop.xlane.xlu0 %209 }
 0x109   : > { %v211_v15 = vmul.f32 %v210_v14, %v204_v8 }
 0x10b   : > { %v212_v16 = vadd.f32 1e-05, %v211_v15 }
 0x10d   : > { %392 = vrsqrt.f32 %v212_v16  ;;  %vm219_vm3 = vweird.f32 %v212_v16 }
 0x113   : > { %v393_v17 = vpop.eup %392 }
 0x114   : > { %v214_v18 = vmul.f32 %v393_v17, %v212_v16  ;;  %vm220_vm2 = vweird.f32 %v393_v17 }
 0x115   : > { %vm221_vm4 = vmor %vm219_vm3, %vm220_vm2 }
 0x116   : > { %v215_v19 = vmul.f32 %v393_v17, %v214_v18 }
 0x118   : > { %v216_v20 = vmul.f32 0.5, %v215_v19 }
 0x11a   : > { %v217_v21 = vsub.f32 1.5, %v216_v20 }
 0x11c   : > { %v218_v22 = vmul.f32 %v393_v17, %v217_v21 }
 0x11e   : > { %v222_v24 = vsel %vm221_vm4, %v393_v17, %v218_v22 }
 0x11f   : > { %v223_v25 = vmul.f32 %v222_v24, %v206_v11 }
 0x121   : > { %v227_v27 = vmul.f32 %v388_v23, %v223_v25 }
 0x123   : > { %v231_v28 = vadd.f32 %v389_v26, %v227_v27 }
 0x125   : > { %232 = vst.msk [vmem:[%s183_s21] sm:$0xff] %vm194_vm0, %v231_v28 }
 0x126   : > { %421 = shalt.err (!%p418_p5)
}
 0x127   : > { %332 = dma.vmem_to_hbm [thread:$0]  (%p535_p4), %s248_s15, 128, %s250_s23, %s234_s26  }
 0x128 PF: > { %p338_p6 = scmp.ge.s32.totalorder %s472_s17, 2  ;;  %s261_s4 = sand.u32 1, %s452_s12  }
 0x129   : > { %s262_s8 = scalar_lea.sflag [#allocation3], %s261_s4 }
 0x12a   : > { %p335_p7 = pnand %p338_p6, %p542_p8 }
 0x12c   : > { %p336_p9 = pneg %p335_p7 }
 0x12e   : > { %447 = dma.done.wait (%p336_p9), %s262_s8, 128  }
 0x12f   : > { %449 = vsyncadd (%p336_p9), %s262_s8, 4294967168  ;;  %s16_s17 = sadd.s32 1, %s472_s17   ;;  %s607_s12 = smov %s456_s13 }
 0x130   : > { %p13_p10 = scmp.ge.s32.totalorder %s16_s17, 4   ;;  %s608_s13 = smov %s460_s14 }
 0x131   : > { %s609_s14 = smov %s548_s25  ;;  %s610_s15 = smov %s468_s16 }
 0x132   : > { %s611_s16 = smov %s613_s20  ;;  %15 = sbr.rel (!%p13_p10) target bundleno = 4 (0x4), region = 67 }
 0x137   :  { %268 = vsyncpa [#allocation3], 1 }
 0x138   :  { %270 = vsyncpa [#allocation3 + $0x1], 1 }

// kernel: transformer_decoder.12
= control target key start
LH: loop header
LB: loop body
LE: loop exit
PB: predicated region body
PF: predicated region fallthrough
CT: control target
= control target key end

     0   :  { %s754_s30 = smov 0   ;;  %s756_s10 = smov 0   ;;  %s836_s0 = inlined_call_operand.vmem [shape: f32[2,8,32], index: 0, kind: input, shape index: {}]   ;;  %s837_s1 = inlined_call_operand.vmem [shape: f32[1,32], index: 1, kind: input, shape index: {}]   ;;  %s838_s2 = inlined_call_operand.vmem [shape: f32[1,32], index: 2, kind: input, shape index: {}]   ;;  %s839_s3 = inlined_call_operand.vmem [shape: bf16[32,64], index: 3, kind: input, shape index: {}]   ;;  %s840_s4 = inlined_call_operand.vmem [shape: f32[1,64], index: 4, kind: input, shape index: {}]   ;;  %s841_s5 = inlined_call_operand.vmem [shape: bf16[64,32], index: 5, kind: input, shape index: {}]   ;;  %s842_s6 = inlined_call_operand.vmem [shape: f32[1,32], index: 6, kind: input, shape index: {}]   ;;  %s843_s7 = inlined_call_operand.vmem [shape: f32[1,32], index: 7, kind: input, shape index: {}]   ;;  %s844_s8 = inlined_call_operand.vmem [shape: f32[1,32], index: 8, kind: input, shape index: {}]   ;;  %s845_s9 = inlined_call_operand.vmem [shape: f32[2,8,32], index: 9, kind: output, shape index: {}]  }
   0x1   :  { %s758_s11 = smov 0  }
   0x2 LB: > { %s31_s12 = sadd.s32 1, %s697_s10  ;;  %p605_p0 = scmp.ge.s32.totalorder %s701_s11, 1  ;;  %s701_s11 = sphi %s758_s11, %s19_s11   ;;  %s697_s10 = sphi %s756_s10, %s847_s10   ;;  %s693_s30 = sphi %s754_s30, %s846_s30  }
   0x3   : > { %p33_p1 = scmp.ge.s32.totalorder %s31_s12, 2  ;;  %p305_p2 = scmp.lt.s32.totalorder %s701_s11, 3 }
   0x5   : > { %s849_s12 = smov (%p33_p1, %s31_s12), 0  ;;  %p306_p3 = pnand %p605_p0, %p305_p2 }
   0x6   : > { %p345_p4 = scmp.lt.s32.totalorder (!%p306_p3), %s693_s30, 1 }
   0x7   : > { %309 = sbr.rel (%p306_p3) target bundleno = 817 (0x331), region = 56 }
   0xc   : > { %s851_s30 = smov (!%p345_p4, %s693_s30), 1  ;;  %vm363_vm0 = vcmask 261120   ;;  %v703_v2 = vmov 32.0   ;;  %v637_v14 = vld [vmem:[%s839_s3 + $0x8] sm:$0xff]  ;;  %v636_v15 = vld [vmem:[%s839_s3] sm:$0xff]  ;;  %v641_v16 = vld [vmem:[%s841_s5 + $0x18] sm:$0xff] }
   0xd   : > { %s606_s13 = sshll.u32 %s851_s30, 3  ;;  %673 = vrcp.f32 %v703_v2  ;;  %431 = vmatpush.bf16.msra.mxu0 %v637_v14  ;;  %484 = vmatpush.bf16.msra.mxu1 %v641_v16  ;;  %v640_v19 = vld [vmem:[%s841_s5 + $0x10] sm:$0xff]  ;;  %v667_v27 = vld [vmem:[%s837_s1] ss:$0 sm:$0xff]  ;;  %v639_v34 = vld [vmem:[%s841_s5 + $0x8] sm:$0xff]  ;;  %vm476_vm5 = vcmask 523264  }
   0xe   : > { %s351_s16 = scalar_lea.vmem %s836_s0, %s606_s13  ;;  %v668_v30 = vld [vmem:[%s838_s2] ss:$0 sm:$0xff]  ;;  %s358_s27 = scalar_lea.vmem %s845_s9, %s606_s13 }
   0xf   : > { %v360_v0 = vld [vmem:[%s351_s16] sm:$0xff] }
  0x10   : > { %v364_v1 = vsel %vm363_vm0, %v360_v0, 0.0  ;;  %v638_v35 = vld [vmem:[%s841_s5] sm:$0xff] }
  0x11   : > { %365 = vadd.xlane.f32.xlu0 %v364_v1  ;;  %432 = vmatpush.bf16.msra.mxu0 %v636_v15  ;;  %v669_v36 = vld [vmem:[%s840_s4] ss:$0 sm:$0xff] }
  0x12   : > { %485 = vmatpush.bf16.msra.mxu1 %v640_v19  ;;  %v670_v42 = vld [vmem:[%s842_s6] ss:$0 sm:$0xff] }
  0x13   : > { %v674_v3 = vpop.eup %673  ;;  %v671_v62 = vld [vmem:[%s843_s7] ss:$0 sm:$0xff] }
  0x14   : > { %v368_v4 = vmul.f32 32.0, %v674_v3  ;;  %vm372_vm1 = vweird.f32 %v674_v3 }
  0x16   : > { %v369_v5 = vsub.f32 1.0, %v368_v4  ;;  %486 = vmatpush.bf16.msra.mxu1 %v639_v34 }
  0x18   : > { %v370_v6 = vmul.f32 %v674_v3, %v369_v5 }
  0x1a   : > { %v371_v7 = vadd.f32 %v674_v3, %v370_v6  ;;  %487 = vmatpush.bf16.msra.mxu1 %v638_v35 }
  0x1c   : > { %v373_v8 = vsel %vm372_vm1, %v674_v3, %v371_v7 }
  0x84   : > { %v366_v9 = vpop.xlane.xlu0 %365 }
  0x85   : > { %v374_v10 = vmul.f32 %v373_v8, %v366_v9 }
  0x87   : > { %v375_v11 = vsub.f32 %v360_v0, %v374_v10  ;;  %v672_v0 = vld [vmem:[%s844_s8] ss:$0 sm:$0xff] }
  0x89   : > { %v376_v12 = vmul.f32 %v375_v11, %v375_v11 }
  0x8b   : > { %v377_v13 = vsel %vm363_vm0, %v376_v12, 0.0 }
  0x8c   : > { %378 = vadd.xlane.f32.xlu0 %v377_v13 }
  0xff   : > { %v379_v17 = vpop.xlane.xlu0 %378 }
 0x100   : > { %v380_v18 = vmul.f32 %v379_v17, %v373_v8 }
 0x102   : > { %v381_v20 = vadd.f32 1e-05, %v380_v18 }
 0x104   : > { %675 = vrsqrt.f32 %v381_v20  ;;  %vm388_vm3 = vweird.f32 %v381_v20 }
 0x10a   : > { %v676_v21 = vpop.eup %675 }
 0x10b   : > { %v383_v22 = vmul.f32 %v676_v21, %v381_v20  ;;  %vm389_vm2 = vweird.f32 %v676_v21 }
 0x10c   : > { %vm390_vm4 = vmor %vm388_vm3, %vm389_vm2 }
 0x10d   : > { %v384_v23 = vmul.f32 %v676_v21, %v383_v22 }
 0x10f   : > { %v385_v24 = vmul.f32 0.5, %v384_v23 }
 0x111   : > { %v386_v25 = vsub.f32 1.5, %v385_v24 }
 0x113   : > { %v387_v26 = vmul.f32 %v676_v21, %v386_v25 }
 0x115   : > { %v391_v28 = vsel %vm390_vm4, %v676_v21, %v387_v26 }
 0x116   : > { %v392_v29 = vmul.f32 %v391_v28, %v375_v11 }
 0x118   : > { %v396_v31 = vmul.f32 %v667_v27, %v392_v29 }
 0x11a   : > { %v400_v32 = vadd.f32 %v668_v30, %v396_v31 }
 0x11c   : > { %v405_v33 = vpack.c.bf16 %v400_v32, %v400_v32 }
 0x11e   : > { %616 = vmatmul.msk.bf16.vlgmr.msra.gmra.mxu0 %vm363_vm0, %v405_v33 }
 0x19b   : > { %v434_v37 = vpop.f32.mrf.mxu0 }
 0x19c   : > { %v435_v38 = vadd.f32 %v669_v36, %v434_v37 }
 0x19e   : > { %v438_v39 = vmax.f32 %v435_v38, 0.0 }
 0x1a0   : > { %v447_v40 = vpack.c.bf16 %v438_v39, %v438_v39 }
 0x1a2   : > { %633 = vmatmul.msk.bf16.vlgmr.msra.gmra.mxu1 %vm476_vm5, %v447_v40 }
 0x1a3   : > { %v436_v41 = vpop.f32.mrf.mxu0 }
 0x21f   : > { %v489_v43 = vpop.f32.mrf.mxu1 }
 0x220   : > { %v490_v44 = vadd.f32 %v670_v42, %v489_v43 }
 0x222   : > { %v493_v45 = vadd.f32 %v490_v44, %v400_v32 }
 0x224   : > { %v496_v46 = vsel %vm363_vm0, %v493_v45, 0.0 }
 0x225   : > { %497 = vadd.xlane.f32.xlu1 %v496_v46 }
 0x227   : > { %v491_v47 = vpop.f32.mrf.mxu1 }
 0x298   : > { %v498_v48 = vpop.xlane.xlu1 %497 }
 0x299   : > { %v499_v49 = vmul.f32 %v498_v48, %v373_v8 }
 0x29b   : > { %v500_v50 = vsub.f32 %v493_v45, %v499_v49 }
 0x29d   : > { %v501_v51 = vmul.f32 %v500_v50, %v500_v50 }
 0x29f   : > { %v502_v52 = vsel %vm363_vm0, %v501_v51, 0.0 }
 0x2a0   : > { %503 = vadd.xlane.f32.xlu1 %v502_v52 }
 0x313   : > { %v504_v53 = vpop.xlane.xlu1 %503 }
 0x314   : > { %v505_v54 = vmul.f32 %v504_v53, %v373_v8 }
 0x316   : > { %v506_v55 = vadd.f32 1e-05, %v505_v54 }
 0x318   : > { %677 = vrsqrt.f32 %v506_v55  ;;  %vm513_vm7 = vweird.f32 %v506_v55 }
 0x31e   : > { %v678_v56 = vpop.eup %677 }
 0x31f   : > { %v508_v57 = vmul.f32 %v678_v56, %v506_v55  ;;  %vm514_vm6 = vweird.f32 %v678_v56 }
 0x320   : > { %vm515_vm8 = vmor %vm513_vm7, %vm514_vm6 }
 0x321   : > { %v509_v58 = vmul.f32 %v678_v56, %v508_v57 }
 0x323   : > { %v510_v59 = vmul.f32 0.5, %v509_v58 }
 0x325   : > { %v511_v60 = vsub.f32 1.5, %v510_v59 }
 0x327   : > { %v512_v61 = vmul.f32 %v678_v56, %v511_v60 }
 0x329   : > { %v516_v63 = vsel %vm515_vm8, %v678_v56, %v512_v61 }
 0x32a   : > { %v517_v1 = vmul.f32 %v516_v63, %v500_v50 }
 0x32c   : > { %v521_v2 = vmul.f32 %v671_v62, %v517_v1 }
 0x32e   : > { %v525_v3 = vadd.f32 %v672_v0, %v521_v2 }
 0x330   : > { %526 = vst.msk [vmem:[%s358_s27] sm:$0xff] %vm363_vm0, %v525_v3 }
 0x331 PF: > { %s19_s11 = sadd.s32 1, %s701_s11   ;;  %s846_s30 = smov %s697_s10 }
 0x332   : > { %p16_p5 = scmp.ge.s32.totalorder %s19_s11, 4   ;;  %s847_s10 = smov %s849_s12 }
 0x334   :  { %18 = sbr.rel (!%p16_p5) target bundleno = 2 (0x2), region = 86 }

// kernel: transformer_decoder.11
= control target key start
LH: loop header
LB: loop body
LE: loop exit
PB: predicated region body
PF: predicated region fallthrough
CT: control target
= control target key end

     0   :  { %s1826_s0 = inlined_call_operand.vmem [shape: f32[2,8,32], index: 0, kind: input, shape index: {}]   ;;  %s1827_s1 = inlined_call_operand.hbm [shape: f32[2,8,32], index: 1, kind: input, shape index: {}]   ;;  %s1828_s2 = inlined_call_operand.hbm [shape: bf16[32,32], index: 2, kind: input, shape index: {}]   ;;  %s1829_s3 = inlined_call_operand.vmem [shape: f32[1,32], index: 3, kind: input, shape index: {}]   ;;  %s1830_s4 = inlined_call_operand.hbm [shape: bf16[32,64], index: 4, kind: input, shape index: {}]   ;;  %s1831_s5 = inlined_call_operand.hbm [shape: f32[1,64], index: 5, kind: input, shape index: {}]   ;;  %s1832_s6 = inlined_call_operand.hbm [shape: bf16[32,32], index: 6, kind: input, shape index: {}]   ;;  %s1833_s7 = inlined_call_operand.hbm [shape: f32[1,32], index: 7, kind: input, shape index: {}]   ;;  %s1834_s8 = inlined_call_operand.vmem [shape: f32[1,32], index: 8, kind: input, shape index: {}]   ;;  %s1835_s9 = inlined_call_operand.vmem [shape: f32[1,32], index: 9, kind: input, shape index: {}]   ;;  %s1836_s10 = inlined_call_operand.vmem [shape: f32[2,8,32], index: 10, kind: output, shape index: {}]  }
   0x1   :  { %1837 = sst [smem:[#allocation16_spill]] %s1828_s2 }
   0x2   :  { %1838 = sst [smem:[#allocation17_spill]] %s1829_s3 }
   0x3   :  { %1839 = sst [smem:[#allocation18_spill]] %s1831_s5 }
   0x4   :  { %1840 = sst [smem:[#allocation19_spill]] %s1836_s10 }
   0x5   :  { %15 = vsyncpa [#allocation3], 0 }
   0x6   :  { %17 = vsyncpa [#allocation3 + $0x1], 0 }
   0x7   :  { %18 = vsyncpa [#allocation5], 0 }
   0x8   :  { %19 = vsyncpa [#allocation8], 0 }
   0x9   :  { %20 = vsyncpa [#allocation11], 0  ;;  %s1602_s13 = smov 0   ;;  %s1604_s14 = smov 0  }
   0xa   :  { %s1606_s15 = smov 0   ;;  %s1608_s16 = smov 0  }
   0xb   :  { %s1610_s17 = smov 0   ;;  %s1612_s18 = smov 0  }
   0xc LB: > { %s1091_s19 = sadd.s32 4294967295, %s1530_s18   ;;  %p1093_p0 = scmp.ge.s32.totalorder %s1530_s18, 1  ;;  %s1530_s18 = sphi %s1612_s18, %s26_s18   ;;  %s1526_s17 = sphi %s1610_s17, %s1854_s17   ;;  %s1522_s16 = sphi %s1608_s16, %s1853_s16   ;;  %s1518_s15 = sphi %s1606_s15, %s1852_s15   ;;  %s1514_s14 = sphi %s1604_s14, %s1851_s14   ;;  %s1510_s13 = sphi %s1602_s13, %s1850_s13  }
   0xd   : > { %p1634_p1 = scmp.eq.s32.totalorder %s1091_s19, 0  ;;  %p293_p2 = scmp.lt.s32.totalorder %s1530_s18, 3 }
   0xe   : > { %s1842_s2 = sld [smem:[#allocation16_spill]]  ;;  %s1532_s25 = smov [#allocation4]  }
   0xf   : > { %p1642_p3 = pnand %p1093_p0, %p293_p2  ;;  %s306_s26 = sshll.u32 %s1532_s25, 4  ;;  %s307_s26 = int_to_ptr.vmem [resolvable:$true] %s306_s26 }
  0x10   : > { %s1845_s5 = sld [smem:[#allocation18_spill]]  ;;  %s1533_s11 = smov 64  }
  0x11   : > { %p1169_p4 = pneg %p1642_p3  ;;  %s1534_s12 = smov 4  }
  0x12   : > { %s1535_s19 = smov [#allocation7]   ;;  %s1536_s10 = smov [#allocation6]  }
  0x13   : > { %p1650_p5 = pnand %p1169_p4, %p1634_p1  ;;  %s338_s21 = sshll.u32 %s1535_s19, 4  ;;  %s339_s21 = int_to_ptr.vmem [resolvable:$true] %s338_s21 }
  0x14   : > { %s304_s23 = sshll.u32 %s1842_s2, 4  ;;  %s321_s2 = sshll.u32 %s1830_s4, 4  ;;  %s305_s23 = int_to_ptr.hbm [resolvable:$true] %s304_s23  ;;  %s322_s2 = int_to_ptr.hbm [resolvable:$true] %s321_s2 }
  0x15   : > { %1172 = dma.hbm_to_vmem [thread:$0]  (!%p1650_p5), %s305_s23, 256, %s307_s26, [#allocation5], %s1533_s11, %s1533_s11, %s1534_s12  }
  0x16   : > { %s336_s30 = sshll.u32 %s1845_s5, 4  ;;  %s347_s5 = sshll.u32 %s1832_s6, 4  ;;  %s337_s30 = int_to_ptr.hbm [resolvable:$true] %s336_s30  ;;  %s348_s5 = int_to_ptr.hbm [resolvable:$true] %s347_s5 }
  0x17   : > { %1178 = dma.hbm_to_vmem [thread:$0]  (!%p1650_p5), %s337_s30, 16, %s339_s21, [#allocation8]  }
  0x18   : > { %s323_s3 = sshll.u32 %s1536_s10, 4  ;;  %s1537_s23 = smov [#allocation9]   ;;  %s324_s3 = int_to_ptr.vmem [resolvable:$true] %s323_s3 }
  0x19   : > { %1175 = dma.hbm_to_vmem [thread:$0]  (!%p1650_p5), %s322_s2, 256, %s324_s3, [#allocation5], %s1533_s11, %s1533_s11, %s1534_s12  }
  0x1a   : > { %s349_s26 = sshll.u32 %s1537_s23, 4  ;;  %s362_s21 = sshll.u32 %s1833_s7, 4  ;;  %s350_s26 = int_to_ptr.vmem [resolvable:$true] %s349_s26  ;;  %s363_s21 = int_to_ptr.hbm [resolvable:$true] %s362_s21 }
  0x1b   : > { %1181 = dma.hbm_to_vmem [thread:$0]  (!%p1650_p5), %s348_s5, 256, %s350_s26, [#allocation8], %s1533_s11, %s1533_s11, %s1534_s12  }
  0x1c   : > { %s1538_s10 = smov [#allocation10]   ;;  %s38_s2 = sadd.s32 1, %s1526_s17 }
  0x1d   : > { %s364_s22 = sshll.u32 %s1538_s10, 4  ;;  %p40_p6 = scmp.ge.s32.totalorder %s38_s2, 2  ;;  %s365_s22 = int_to_ptr.vmem [resolvable:$true] %s364_s22 }
  0x1e   : > { %1184 = dma.hbm_to_vmem [thread:$0]  (!%p1650_p5), %s363_s21, 16, %s365_s22, [#allocation11]  }
  0x1f   : > { %p80_p7 = scmp.ne.s32.totalorder %s1518_s15, %s1514_s14  ;;  %p81_p8 = scmp.eq.s32.totalorder %s1530_s18, 0 }
  0x20   : > { %s1856_s2 = smov (%p40_p6, %s38_s2), 0  ;;  %s73_s3 = sadd.s32 1, %s1518_s15 }
  0x21   : > { %p86_p9 = scmp.ne.s32.totalorder %s1514_s14, %s1510_s13  ;;  %s70_s25 = ssub.s32 %s1526_s17, %s1856_s2 }
  0x22   : > { %p1687_p10 = por %p81_p8, %p80_p7  ;;  %p71_p11 = scmp.eq.s32.totalorder %s70_s25, 0 }
  0x23   : > { %p1693_p12 = por %p1634_p1, %p86_p9  ;;  %s391_s11 = sand.u32 1, %s1518_s15  }
  0x24   : > { %s1101_s12 = sshll.u32 %s1526_s17, 3  ;;  %p1194_p13 = scmp.lt.s32.totalorder %s1530_s18, 2 }
  0x25   : > { %s1700_s28 = scalar_select %p71_p11, %s1518_s15, %s73_s3  }
  0x26   : > { %s1100_s29 = sshll.u32 %s391_s11, 3  ;;  %s399_s26 = scalar_lea.hbm %s1827_s1, %s1101_s12 }
  0x27   : > { %s401_s30 = sshll.u32 %s399_s26, 4  ;;  %s395_s19 = scalar_lea.vmem [#allocation2], %s1100_s29  ;;  %s402_s30 = int_to_ptr.hbm [resolvable:$true] %s401_s30 }
  0x28   : > { %s403_s21 = sshll.u32 %s395_s19, 4  ;;  %p1186_p0 = pnand %p1194_p13, %p1687_p10  ;;  %s404_s21 = int_to_ptr.vmem [resolvable:$true] %s403_s21 }
  0x29   : > { %s392_s10 = scalar_lea.sflag [#allocation3], %s391_s11  ;;  %412 = sbr.rel (%p1642_p3) target bundleno = 1760 (0x6e0), region = 60 }
  0x2a   : > { %1188 = dma.hbm_to_vmem [thread:$0]  (!%p1186_p0), %s402_s30, 128, %s404_s21, %s392_s10  }
  0x2b   : > { %s414_s22 = sand.u32 (!%p1642_p3), 1, %s1514_s14  }
  0x2c   : > { %s1711_s3 = sshll.u32 (!%p1642_p3), %s414_s22, 3  ;;  %s415_s25 = scalar_lea.sflag (!%p1642_p3), [#allocation3], %s414_s22 }
  0x2d   : > { %s418_s12 = scalar_lea.vmem (!%p1642_p3), [#allocation2], %s1711_s3 }
  0x2e   : > { %1493 = dma.done.wait (%p1693_p12), %s415_s25, 128  }
  0x2f   : > { %1495 = vsyncadd (%p1693_p12), %s415_s25, 4294967168 }
  0x30   : > { %1497 = dma.done.wait (%p1634_p1), [#allocation5], 512  }
  0x31   : > { %1499 = vsyncadd (%p1634_p1), [#allocation5], 4294966784 }
  0x32   : > { %1501 = dma.done.wait (%p1634_p1), [#allocation8], 272  }
  0x33   : > { %1503 = vsyncadd (%p1634_p1), [#allocation8], 4294967024 }
  0x34   : > { %1505 = dma.done.wait (%p1634_p1), [#allocation11], 16  }
  0x35   : > { %1507 = vsyncadd (%p1634_p1), [#allocation11], 4294967280  ;;  %p490_p2 = scmp.lt.s32.totalorder %s1522_s16, 1  ;;  %vm509_vm0 = vcmask 261120   ;;  %v1539_v2 = vmov 32.0   ;;  %v1146_v3 = vld [vmem:[#allocation6 + $0x8] sm:$0xff] }
  0x36   : > { %1268 = vrcp.f32 %v1539_v2  ;;  %614 = vmatpush.bf16.msra.mxu1 %v1146_v3  ;;  %v1145_v15 = vld [vmem:[#allocation6] sm:$0xff]  ;;  %v1144_v18 = vld [vmem:[#allocation4 + $0x8] sm:$0xff]  ;;  %v1143_v19 = vld [vmem:[#allocation4] sm:$0xff]  ;;  %vm628_vm5 = vcmask 64512   ;;  %s1540_s26 = smov 120   ;;  %s1848_s21 = sld [smem:[#allocation17_spill]] }
  0x37   : > { %s1858_s16 = smov (!%p490_p2, %s1522_s16), 1  ;;  %v506_v16 = vld [vmem:[%s418_s12] sm:$0xff]  ;;  %577 = vmatpush.bf16.msra.mxu0 %v1144_v18  ;;  %v1265_v36 = vld [vmem:[#allocation7] ss:$0 sm:$0xff]  ;;  %s1541_s10 = smov 96   ;;  %vm667_vm6 = vcmask 1043456  }
  0x38   : > { %s1109_s24 = sshll.u32 %s1858_s16, 3  ;;  %v588_v17 = vpack.c.bf16 %v506_v16, %v506_v16  ;;  %v1263_v29 = vld [vmem:[%s1834_s8] ss:$0 sm:$0xff]  ;;  %s1542_s22 = smov 104   ;;  %v622_v63 = vld [vmem:[#allocation9 + $0x4] sm:$0xf] }
  0x39   : > { %s496_s11 = scalar_lea.vmem %s1826_s0, %s1109_s24  ;;  %v1264_v32 = vld [vmem:[%s1835_s9] ss:$0 sm:$0xff]  ;;  %s1543_s3 = smov 88  }
  0x3a   : > { %v1740_v0 = vld [vmem:[%s496_s11] sm:$0xff]  ;;  %615 = vmatpush.bf16.msra.mxu1 %v1145_v15  ;;  %s1544_s25 = smov 112   ;;  %s1545_s12 = smov 80  }
  0x3b   : > { %v510_v1 = vsel %vm509_vm0, %v1740_v0, 0.0  ;;  %578 = vmatpush.bf16.msra.mxu0 %v1143_v19  ;;  %s1546_s5 = smov 72   ;;  %s1849_s20 = sld [smem:[#allocation19_spill]] }
  0x3c   : > { %511 = vadd.xlane.f32.xlu0 %v510_v1  ;;  %v1269_v4 = vpop.eup %1268  ;;  %v1266_v42 = vld [vmem:[%s1848_s21] ss:$0 sm:$0xff]  ;;  %v771_v1 = vsel %vm667_vm6, %v622_v63, 0 }
  0x3d   : > { %v514_v5 = vmul.f32 32.0, %v1269_v4  ;;  %vm518_vm1 = vweird.f32 %v1269_v4  ;;  %1128 = vmatmul.msk.bf16.vlgmr.msra.gmra.mxu1 %vm509_vm0, %v588_v17 }
  0x3f   : > { %v515_v6 = vsub.f32 1.0, %v514_v5 }
  0x41   : > { %v516_v7 = vmul.f32 %v1269_v4, %v515_v6  ;;  %s503_s29 = scalar_lea.vmem %s1849_s20, %s1109_s24 }
  0x43   : > { %v517_v8 = vadd.f32 %v1269_v4, %v516_v7 }
  0x45   : > { %v519_v9 = vsel %vm518_vm1, %v1269_v4, %v517_v8 }
  0xaf   : > { %v512_v10 = vpop.xlane.xlu0 %511 }
  0xb0   : > { %v520_v11 = vmul.f32 %v519_v9, %v512_v10 }
  0xb2   : > { %v521_v12 = vsub.f32 %v1740_v0, %v520_v11 }
  0xb4   : > { %v522_v13 = vmul.f32 %v521_v12, %v521_v12 }
  0xb6   : > { %v523_v14 = vsel %vm509_vm0, %v522_v13, 0.0 }
  0xb7   : > { %524 = vadd.xlane.f32.xlu0 %v523_v14 }
  0xba   : > { %v617_v37 = vpop.f32.mrf.mxu1 }
  0xbb   : > { %v618_v38 = vadd.f32 %v1265_v36, %v617_v37 }
  0xbd   : > { %v1756_v39 = vpack.c.bf16 %v618_v38, %v618_v38 }
  0xbf   : > { %711 = vrot.lane.b32.xlu1 %v1756_v39, %s1540_s26  ;;  %v633_v40 = vsel %vm628_vm5, %v1756_v39, 0 }
  0xc0   : > { %642 = vmatpush.bf16.xpose.msra.mxu2 %v633_v40  ;;  %v1267_v40 = vld [vmem:[#allocation10] ss:$0 sm:$0xff] }
  0xc2   : > { %v619_v41 = vpop.f32.mrf.mxu1 }
  0xc8   : > { %780 = vmatpush.bf16.msrb.mxu2 %v771_v1 }
 0x12a   : > { %v525_v20 = vpop.xlane.xlu0 %524 }
 0x12b   : > { %v526_v21 = vmul.f32 %v525_v20, %v519_v9  ;;  %v621_v9 = vld [vmem:[#allocation9] sm:$0xf] }
 0x12c   : > { %v689_v10 = vsel %vm667_vm6, %v621_v9, 0  ;;  %v624_v9 = vld [vmem:[#allocation9 + $0xc] sm:$0xf] }
 0x12d   : > { %v527_v22 = vadd.f32 1e-05, %v526_v21 }
 0x12f   : > { %1270 = vrsqrt.f32 %v527_v22  ;;  %vm534_vm3 = vweird.f32 %v527_v22 }
 0x131   : > { %v712_v47 = vpop.permute.xlu1 %711 }
 0x132   : > { %v717_v48 = vsel %vm628_vm5, %v712_v47, 0 }
 0x133   : > { %726 = vmatpush.bf16.xpose.msrb.mxu0 %v717_v48 }
 0x135   : > { %v1271_v23 = vpop.eup %1270 }
 0x136   : > { %v529_v24 = vmul.f32 %v1271_v23, %v527_v22  ;;  %vm535_vm2 = vweird.f32 %v1271_v23 }
 0x137   : > { %vm536_vm4 = vmor %vm534_vm3, %vm535_vm2 }
 0x138   : > { %v530_v25 = vmul.f32 %v1271_v23, %v529_v24 }
 0x13a   : > { %v531_v26 = vmul.f32 0.5, %v530_v25 }
 0x13c   : > { %v532_v27 = vsub.f32 1.5, %v531_v26 }
 0x13e   : > { %v533_v28 = vmul.f32 %v1271_v23, %v532_v27 }
 0x140   : > { %v537_v30 = vsel %vm536_vm4, %v1271_v23, %v533_v28 }
 0x141   : > { %v538_v31 = vmul.f32 %v537_v30, %v521_v12 }
 0x143   : > { %v542_v33 = vmul.f32 %v1263_v29, %v538_v31 }
 0x145   : > { %v546_v34 = vadd.f32 %v1264_v32, %v542_v33 }
 0x147   : > { %v551_v35 = vpack.c.bf16 %v546_v34, %v546_v34 }
 0x149   : > { %1119 = vmatmul.msk.bf16.vlgmr.msra.gmra.mxu0 %vm509_vm0, %v551_v35 }
 0x1c6   : > { %v580_v43 = vpop.f32.mrf.mxu0 }
 0x1c7   : > { %v581_v44 = vadd.f32 %v1266_v42, %v580_v43 }
 0x1c9   : > { %v626_v45 = vpack.c.bf16 %v581_v44, %v581_v44 }
 0x1cb   : > { %709 = vrot.lane.b32.xlu1 %v626_v45, %s1540_s26  ;;  %1129 = vmatmul.msk.bf16.vlgmr.msra.gmra.mxu2 %vm628_vm5, %v626_v45 }
 0x1ce   : > { %v582_v46 = vpop.f32.mrf.mxu0 }
 0x23d   : > { %v710_v49 = vpop.permute.xlu1 %709 }
 0x23e   : > { %1132 = vmatmul.msk.bf16.vlgmr.msrb.gmra.mxu0 %vm628_vm5, %v710_v49 }
 0x24e   : > { %v644_v50 = vpop.f32.mrf.mxu2 }
 0x24f   : > { %v648_v51 = vmul.f32 0.35355338, %v644_v50 }
 0x251   : > { %v649_v52 = vsel %vm628_vm5, %v648_v51, -inf }
 0x252   : > { %650 = vmax.xlane.f32.xlu2 %v649_v52 }
 0x256   : > { %v646_v53 = vpop.f32.mrf.mxu2 }
 0x2bb   : > { %v728_v54 = vpop.f32.mrf.mxu0 }
 0x2bc   : > { %v732_v55 = vmul.f32 0.35355338, %v728_v54 }
 0x2be   : > { %v733_v56 = vsel %vm628_vm5, %v732_v55, -inf }
 0x2bf   : > { %734 = vmax.xlane.f32.xlu2 %v733_v56 }
 0x2c3   : > { %v730_v57 = vpop.f32.mrf.mxu0 }
 0x2c5   : > { %v651_v58 = vpop.xlane.xlu2 %650 }
 0x2c6   : > { %v652_v59 = vsub.f32 %v648_v51, %v651_v58 }
 0x2c8   : > { %v653_v60 = vmul.f32 1.442695, %v652_v59 }
 0x2ca   : > { %1272 = vpow2.f32 %v653_v60 }
 0x2d0   : > { %v1273_v61 = vpop.eup %1272 }
 0x2d1   : > { %v655_v62 = vsel %vm628_vm5, %v1273_v61, 0.0 }
 0x2d2   : > { %656 = vadd.xlane.f32.xlu0 %v655_v62 }
 0x2d7   : > { %662 = vrot.lane.b32.xlu2 %v1756_v39, %s1541_s10 }
 0x2df   : > { %867 = vrot.lane.b32.xlu2 %v1756_v39, %s1542_s22 }
 0x2e6   : > { %745 = vrot.lane.b32.xlu0 %v1756_v39, %s1543_s3 }
 0x2e7   : > { %865 = vrot.lane.b32.xlu2 %v626_v45, %s1542_s22 }
 0x2ee   : > { %789 = vrot.lane.b32.xlu0 %v1756_v39, %s1544_s25 }
 0x2f6   : > { %787 = vrot.lane.b32.xlu0 %v626_v45, %s1544_s25 }
 0x332   : > { %v735_v2 = vpop.xlane.xlu2 %734 }
 0x333   : > { %v736_v3 = vsub.f32 %v732_v55, %v735_v2 }
 0x335   : > { %v737_v4 = vmul.f32 1.442695, %v736_v3 }
 0x337   : > { %1274 = vpow2.f32 %v737_v4  ;;  %v623_v4 = vld [vmem:[#allocation9 + $0x8] sm:$0xf] }
 0x33a   : > { %v663_v5 = vpop.permute.xlu2 %662 }
 0x33b   : > { %v669_v6 = vsel %vm667_vm6, %v663_v5, 0  ;;  %v849_v5 = vsel %vm667_vm6, %v623_v4, 0 }
 0x33c   : > { %678 = vmatpush.bf16.msra.mxu3 %v669_v6 }
 0x33d   : > { %v1275_v7 = vpop.eup %1274 }
 0x33e   : > { %v739_v8 = vsel %vm628_vm5, %v1275_v7, 0.0 }
 0x33f   : > { %740 = vadd.xlane.f32.xlu1 %v739_v8 }
 0x340   : > { %698 = vmatpush.bf16.msrb.mxu3 %v689_v10  ;;  %v927_v10 = vsel %vm667_vm6, %v624_v9, 0 }
 0x342   : > { %v868_v11 = vpop.permute.xlu2 %867 }
 0x343   : > { %v873_v12 = vsel %vm628_vm5, %v868_v11, 0 }
 0x344   : > { %882 = vmatpush.bf16.xpose.msra.mxu2 %v873_v12 }
 0x345   : > { %v657_v13 = vpop.xlane.xlu0 %656 }
 0x346   : > { %1276 = vrcp.f32 %v657_v13 }
 0x34a   : > { %v866_v32 = vpop.permute.xlu2 %865 }
 0x34c   : > { %v1277_v14 = vpop.eup %1276 }
 0x34d   : > { %v659_v15 = vmul.f32 %v1277_v14, %v1273_v61 }
 0x34f   : > { %v660_v16 = vpack.c.bf16 %v659_v15, %v659_v15 }
 0x351   : > { %1130 = vmatmul.msk.bf16.vlgmr.msra.gmra.mxu3 %vm628_vm5, %v660_v16 }
 0x358   : > { %v746_v17 = vpop.permute.xlu0 %745 }
 0x359   : > { %v751_v18 = vsel %vm667_vm6, %v746_v17, 0 }
 0x35a   : > { %760 = vmatpush.bf16.msrb.mxu1 %v751_v18 }
 0x35e   : > { %858 = vmatpush.bf16.msra.mxu1 %v849_v5 }
 0x360   : > { %v790_v19 = vpop.permute.xlu0 %789 }
 0x361   : > { %v795_v20 = vsel %vm628_vm5, %v790_v19, 0 }
 0x362   : > { %804 = vmatpush.bf16.xpose.msra.mxu3 %v795_v20 }
 0x368   : > { %v788_v28 = vpop.permute.xlu0 %787 }
 0x3b2   : > { %v741_v21 = vpop.xlane.xlu1 %740 }
 0x3b3   : > { %1278 = vrcp.f32 %v741_v21 }
 0x3b9   : > { %v1279_v22 = vpop.eup %1278 }
 0x3ba   : > { %v743_v23 = vmul.f32 %v1279_v22, %v1275_v7 }
 0x3bc   : > { %v744_v24 = vpack.c.bf16 %v743_v23, %v743_v23 }
 0x3be   : > { %1133 = vmatmul.msk.bf16.vlgmr.msrb.gmra.mxu1 %vm628_vm5, %v744_v24 }
 0x3d4   : > { %v680_v25 = vpop.f32.mrf.mxu3 }
 0x3d5   : > { %v684_v26 = vpack.c.bf16 %v680_v25, %v680_v25 }
 0x3d7   : > { %1131 = vmatmul.msk.bf16.vlgmr.msrb.gmra.mxu3 %vm628_vm5, %v684_v26 }
 0x3dc   : > { %v682_v27 = vpop.f32.mrf.mxu3 }
 0x3e7   : > { %1135 = vmatmul.msk.bf16.vlgmr.msra.gmra.mxu3 %vm628_vm5, %v788_v28 }
 0x43b   : > { %v762_v29 = vpop.f32.mrf.mxu1 }
 0x43c   : > { %v766_v30 = vpack.c.bf16 %v762_v29, %v762_v29 }
 0x43e   : > { %1134 = vmatmul.msk.bf16.vlgmr.msrb.gmra.mxu2 %vm628_vm5, %v766_v30 }
 0x443   : > { %v764_v31 = vpop.f32.mrf.mxu1 }
 0x44e   : > { %1138 = vmatmul.msk.bf16.vlgmr.msra.gmra.mxu2 %vm628_vm5, %v866_v32 }
 0x45a   : > { %v700_v33 = vpop.f32.mrf.mxu3 }
 0x45b   : > { %v707_v41 = vadd.f32 %v1267_v40, %v700_v33 }
 0x462   : > { %v702_v34 = vpop.f32.mrf.mxu3 }
 0x46a   : > { %v806_v35 = vpop.f32.mrf.mxu3 }
 0x46b   : > { %v810_v36 = vmul.f32 0.35355338, %v806_v35 }
 0x46d   : > { %v811_v37 = vsel %vm628_vm5, %v810_v36, -inf }
 0x46e   : > { %812 = vmax.xlane.f32.xlu1 %v811_v37 }
 0x472   : > { %v808_v38 = vpop.f32.mrf.mxu3 }
 0x4c1   : > { %v782_v42 = vpop.f32.mrf.mxu2 }
 0x4c2   : > { %v786_v43 = vadd.f32 %v782_v42, %v707_v41 }
 0x4c9   : > { %v784_v44 = vpop.f32.mrf.mxu2 }
 0x4d1   : > { %v884_v45 = vpop.f32.mrf.mxu2 }
 0x4d2   : > { %v888_v46 = vmul.f32 0.35355338, %v884_v45 }
 0x4d4   : > { %v889_v47 = vsel %vm628_vm5, %v888_v46, -inf }
 0x4d5   : > { %890 = vmax.xlane.f32.xlu2 %v889_v47 }
 0x4d9   : > { %v886_v48 = vpop.f32.mrf.mxu2 }
 0x4e1   : > { %v813_v49 = vpop.xlane.xlu1 %812 }
 0x4e2   : > { %v814_v50 = vsub.f32 %v810_v36, %v813_v49 }
 0x4e4   : > { %v815_v51 = vmul.f32 1.442695, %v814_v50 }
 0x4e6   : > { %1280 = vpow2.f32 %v815_v51 }
 0x4ec   : > { %v1281_v52 = vpop.eup %1280 }
 0x4ed   : > { %823 = vrot.lane.b32.xlu2 %v1756_v39, %s1545_s12  ;;  %v817_v53 = vsel %vm628_vm5, %v1281_v52, 0.0 }
 0x4ee   : > { %818 = vadd.xlane.f32.xlu1 %v817_v53 }
 0x507   : > { %901 = vrot.lane.b32.xlu1 %v1756_v39, %s1546_s5 }
 0x548   : > { %v891_v54 = vpop.xlane.xlu2 %890 }
 0x549   : > { %v892_v55 = vsub.f32 %v888_v46, %v891_v54 }
 0x54b   : > { %v893_v56 = vmul.f32 1.442695, %v892_v55 }
 0x54d   : > { %1282 = vpow2.f32 %v893_v56 }
 0x550   : > { %v824_v57 = vpop.permute.xlu2 %823 }
 0x551   : > { %v829_v58 = vsel %vm667_vm6, %v824_v57, 0 }
 0x552   : > { %838 = vmatpush.bf16.msra.mxu0 %v829_v58 }
 0x553   : > { %v1283_v59 = vpop.eup %1282 }
 0x554   : > { %v895_v60 = vsel %vm628_vm5, %v1283_v59, 0.0 }
 0x555   : > { %896 = vadd.xlane.f32.xlu0 %v895_v60 }
 0x556   : > { %936 = vmatpush.bf16.msrb.mxu0 %v927_v10 }
 0x561   : > { %v819_v61 = vpop.xlane.xlu1 %818 }
 0x562   : > { %1284 = vrcp.f32 %v819_v61 }
 0x568   : > { %v1285_v62 = vpop.eup %1284 }
 0x569   : > { %v821_v63 = vmul.f32 %v1285_v62, %v1281_v52 }
 0x56b   : > { %v822_v1 = vpack.c.bf16 %v821_v63, %v821_v63 }
 0x56d   : > { %1136 = vmatmul.msk.bf16.vlgmr.msra.gmra.mxu0 %vm628_vm5, %v822_v1 }
 0x579   : > { %v902_v39 = vpop.permute.xlu1 %901 }
 0x57a   : > { %v907_v2 = vsel %vm667_vm6, %v902_v39, 0 }
 0x57b   : > { %916 = vmatpush.bf16.msrb.mxu3 %v907_v2 }
 0x5c8   : > { %v897_v3 = vpop.xlane.xlu0 %896 }
 0x5c9   : > { %1286 = vrcp.f32 %v897_v3 }
 0x5cf   : > { %v1287_v6 = vpop.eup %1286 }
 0x5d0   : > { %v899_v7 = vmul.f32 %v1287_v6, %v1283_v59 }
 0x5d2   : > { %v900_v8 = vpack.c.bf16 %v899_v7, %v899_v7 }
 0x5d4   : > { %1139 = vmatmul.msk.bf16.vlgmr.msrb.gmra.mxu3 %vm628_vm5, %v900_v8 }
 0x5ea   : > { %v840_v11 = vpop.f32.mrf.mxu0 }
 0x5eb   : > { %v844_v12 = vpack.c.bf16 %v840_v11, %v840_v11 }
 0x5ed   : > { %1137 = vmatmul.msk.bf16.vlgmr.msra.gmra.mxu1 %vm628_vm5, %v844_v12 }
 0x5f2   : > { %v842_v13 = vpop.f32.mrf.mxu0 }
 0x657   : > { %v918_v14 = vpop.f32.mrf.mxu3 }
 0x658   : > { %v922_v15 = vpack.c.bf16 %v918_v14, %v918_v14 }
 0x65a   : > { %1140 = vmatmul.msk.bf16.vlgmr.msrb.gmra.mxu0 %vm628_vm5, %v922_v15 }
 0x65f   : > { %v920_v16 = vpop.f32.mrf.mxu3 }
 0x66a   : > { %v860_v17 = vpop.f32.mrf.mxu1 }
 0x66b   : > { %v864_v18 = vadd.f32 %v860_v17, %v786_v43 }
 0x672   : > { %v862_v19 = vpop.f32.mrf.mxu1 }
 0x6d7   : > { %v938_v20 = vpop.f32.mrf.mxu0 }
 0x6d8   : > { %v942_v21 = vadd.f32 %v938_v20, %v864_v18 }
 0x6da   : > { %v943_v22 = vadd.f32 %v942_v21, %v1740_v0 }
 0x6dc   : > { %944 = vst.msk [vmem:[%s503_s29] sm:$0xff] %vm509_vm0, %v943_v22 }
 0x6df   : > { %v940_v23 = vpop.f32.mrf.mxu0 }
 0x6e0 PF: > { %s26_s18 = sadd.s32 1, %s1530_s18   ;;  %s1850_s13 = smov %s1514_s14 }
 0x6e1   : > { %p23_p1 = scmp.ge.s32.totalorder %s26_s18, 4   ;;  %s1851_s14 = smov %s1518_s15 }
 0x6e2   : > { %s1852_s15 = smov %s1700_s28  ;;  %s1853_s16 = smov %s1526_s17 }
 0x6e3   : > { %s1854_s17 = smov %s1856_s2  ;;  %25 = sbr.rel (!%p23_p1) target bundleno = 12 (0xc), region = 123 }
 0x6e8   :  { %970 = vsyncpa [#allocation3], 1 }
 0x6e9   :  { %972 = vsyncpa [#allocation3 + $0x1], 1 }
 0x6ea   :  { %973 = vsyncpa [#allocation5], 1 }
 0x6eb   :  { %974 = vsyncpa [#allocation8], 1 }
 0x6ec   :  { %975 = vsyncpa [#allocation11], 1 }

</bundles_post_ra>
